<compile_context>
chip_gen: v7x
topology: tpu7x:2x2x1
jax: 0.10.0
libtpu: 0.0.40
codegen_flags: <defaults>
</compile_context>

<pallas_src>
import functools

import jax
import jax.numpy as jnp
from jax.experimental import pallas as pl
from jax.experimental.pallas import tpu as pltpu

IN_FEATURES = 512              # 512 * BasicBlock.expansion (expansion == 1)
LANES = 128                    # TPU vreg lane width
NEG_BIG = -1e30                # bias for padded class columns -> softmax gives 0
TN_MAX = 2048                  # max batch rows per tile (amortizes grid-step cost)
VMEM_TARGET = 36 * 1024 * 1024      # tile-sizing budget
VMEM_LIMIT_FLOOR = 32 * 1024 * 1024
VMEM_LIMIT_CEIL = 48 * 1024 * 1024  # <= v7x 64 MiB physical, <= v5e/v6e 128 MiB


def _round_up(n, m):
    return (n + m - 1) // m * m


def _vmem_estimate(tn, hk, num_heads, kpad):
    """Rough per-grid-step VMEM bytes: double-buffered I/O + live temporaries."""
    x_tile = 2 * tn * IN_FEATURES * 4            # double-buffered input tile
    w_res = 2 * IN_FEATURES * hk * 4             # resident fused weights (2 bufs)
    b_res = 2 * hk * 4                           # resident fused bias
    out_tiles = 2 * num_heads * tn * kpad * 4    # per-head out tiles (lane-padded)
    temps = 3 * tn * hk * 4                      # logits / exp / misc live values
    return x_tile + w_res + b_res + out_tiles + temps


def _pick_tn(n, hk, num_heads, kpad):
    """Batch-tile rows: multiple of 8, capped at TN_MAX, shrunk to fit VMEM."""
    tn = min(TN_MAX, _round_up(max(int(n), 1), 8))
    while tn > 8 and _vmem_estimate(tn, hk, num_heads, kpad) > VMEM_TARGET:
        tn = _round_up(tn // 2, 8)
    return tn


def _vmem_limit(tn, hk, num_heads, kpad):
    est = _vmem_estimate(tn, hk, num_heads, kpad)
    return int(min(max(2 * est, VMEM_LIMIT_FLOOR), VMEM_LIMIT_CEIL))


# --------------------------------------------------------------------------
# Kernels
# --------------------------------------------------------------------------
def _heads_kernel(x_ref, w_ref, b_ref, *o_refs, num_heads, kpad, k):
    """Fused multi-head linear + per-head softmax.

    x_ref: (TN, 512)       VMEM batch tile
    w_ref: (512, H*Kpad)   VMEM fused, lane-padded weights (resident)
    b_ref: (1,   H*Kpad)   VMEM fused bias (pad cols = -1e30)
    o_refs[h]: (TN, K)     per-head probability outputs (no padded columns)
    """
    logits = (
        jnp.dot(x_ref[...], w_ref[...], preferred_element_type=jnp.float32)
        + b_ref[...]
    )  # (TN, H*Kpad), f32

    # Per-head numerically stable softmax; each head owns one lane-aligned
    # Kpad-column block so these static slices are layout-cheap.
    for h in range(num_heads):
        lo = h * kpad
        seg = logits[:, lo:lo + kpad]
        m = jnp.max(seg, axis=1, keepdims=True)
        e = jnp.exp(seg - m)                       # padded cols -> exp(-big) = 0
        s = jnp.sum(e, axis=1, keepdims=True)
        probs = e / s                              # exact; kernel is HBM-bound
        o_refs[h][...] = probs[:, :k].astype(o_refs[h].dtype)


def _linear_kernel(x_ref, w_ref, b_ref, o_ref, *, k):
    """Semisup head: plain linear, writes only the K valid columns."""
    y = (
        jnp.dot(x_ref[...], w_ref[...], preferred_element_type=jnp.float32)
        + b_ref[...]
    )
    o_ref[...] = y[:, :k].astype(o_ref.dtype)


# --------------------------------------------------------------------------
# pallas_call wrappers
# --------------------------------------------------------------------------
@functools.partial(jax.jit, static_argnames=("num_heads", "kpad", "k", "tn"))
def _run_heads(x, w_pad, b_pad, *, num_heads, kpad, k, tn):
    """x: (N, 512), w_pad: (512, H*Kpad), b_pad: (1, H*Kpad) -> H x (N, K)."""
    n, d = x.shape
    hk = w_pad.shape[1]
    out_shape = tuple(
        jax.ShapeDtypeStruct((n, k), x.dtype) for _ in range(num_heads))
    out_specs = tuple(
        pl.BlockSpec((tn, k), lambda i: (i, 0)) for _ in range(num_heads))
    return pl.pallas_call(
        functools.partial(_heads_kernel, num_heads=num_heads, kpad=kpad, k=k),
        out_shape=out_shape,
        grid_spec=pltpu.PrefetchScalarGridSpec(
            num_scalar_prefetch=0,
            grid=(pl.cdiv(n, tn),),
            in_specs=[
                pl.BlockSpec((tn, d), lambda i: (i, 0)),    # batch tile
                pl.BlockSpec((d, hk), lambda i: (0, 0)),    # resident weights
                pl.BlockSpec((1, hk), lambda i: (0, 0)),    # resident bias
            ],
            out_specs=out_specs,
        ),
        compiler_params=pltpu.CompilerParams(
            dimension_semantics=("parallel",),              # megacore-shard N
            vmem_limit_bytes=_vmem_limit(tn, hk, num_heads, kpad)),
    )(x, w_pad, b_pad)


@functools.partial(jax.jit, static_argnames=("k", "tn"))
def _run_semisup(x, w_pad, b_pad, *, k, tn):
    """x: (N, 512), w_pad: (512, Kpad), b_pad: (1, Kpad) -> (N, K)."""
    n, d = x.shape
    kp = w_pad.shape[1]
    return pl.pallas_call(
        functools.partial(_linear_kernel, k=k),
        out_shape=jax.ShapeDtypeStruct((n, k), x.dtype),
        grid_spec=pltpu.PrefetchScalarGridSpec(
            num_scalar_prefetch=0,
            grid=(pl.cdiv(n, tn),),
            in_specs=[
                pl.BlockSpec((tn, d), lambda i: (i, 0)),
                pl.BlockSpec((d, kp), lambda i: (0, 0)),
                pl.BlockSpec((1, kp), lambda i: (0, 0)),
            ],
            out_specs=pl.BlockSpec((tn, k), lambda i: (i, 0)),
        ),
        compiler_params=pltpu.CompilerParams(
            dimension_semantics=("parallel",),
            vmem_limit_bytes=_vmem_limit(tn, kp, 1, kp)),
    )(x, w_pad, b_pad)


# --------------------------------------------------------------------------
# Module
# --------------------------------------------------------------------------
class ClusterNet5gTwoHeadHead:
    """JAX/Pallas port of the PyTorch module (deterministic synthetic init).

    Note: config.batchnorm_track is stored but unused in forward (as in the
    PyTorch module).
    """

    def __init__(self, output_k, num_sub_heads=2, semisup=False, seed=0):
        self.semisup = semisup
        self.output_k = output_k
        self.kpad = _round_up(output_k, LANES)

        key = jax.random.PRNGKey(seed)
        kw, kb = jax.random.split(key)
        bound = 1.0 / float(IN_FEATURES) ** 0.5

        if not semisup:
            self.num_sub_heads = num_sub_heads
            # PyTorch Linear weight is (K, 512); keep transposed (H, 512, K).
            self.w_t = jax.random.uniform(
                kw, (num_sub_heads, IN_FEATURES, output_k),
                minval=-bound, maxval=bound, dtype=jnp.float32)
            self.b = jax.random.uniform(
                kb, (num_sub_heads, output_k),
                minval=-bound, maxval=bound, dtype=jnp.float32)
            # Fused, lane-padded parameters (built once, eagerly).
            w_pad = jnp.zeros((IN_FEATURES, num_sub_heads * self.kpad),
                              jnp.float32)
            b_pad = jnp.full((1, num_sub_heads * self.kpad), NEG_BIG,
                             jnp.float32)
            for h in range(num_sub_heads):
                lo = h * self.kpad
                w_pad = w_pad.at[:, lo:lo + output_k].set(self.w_t[h])
                b_pad = b_pad.at[0, lo:lo + output_k].set(self.b[h])
            self.w_pad = w_pad
            self.b_pad = b_pad
        else:
            self.num_sub_heads = 1
            self.w_t = jax.random.uniform(
                kw, (IN_FEATURES, output_k),
                minval=-bound, maxval=bound, dtype=jnp.float32)
            self.b = jax.random.uniform(
                kb, (output_k,), minval=-bound, maxval=bound,
                dtype=jnp.float32)
            self.w_pad = jnp.zeros((IN_FEATURES, self.kpad), jnp.float32
                                   ).at[:, :output_k].set(self.w_t)
            self.b_pad = jnp.zeros((1, self.kpad), jnp.float32
                                   ).at[0, :output_k].set(self.b)

    def __call__(self, x, kmeans_use_features=False):
        hk = self.w_pad.shape[1]
        tn = _pick_tn(x.shape[0], hk, self.num_sub_heads, self.kpad)
        if not self.semisup:
            if kmeans_use_features:
                return [x for _ in range(self.num_sub_heads)]
            outs = _run_heads(x, self.w_pad, self.b_pad,
                              num_heads=self.num_sub_heads,
                              kpad=self.kpad, k=self.output_k, tn=tn)
            return list(outs)                    # H arrays of (N, output_k)
        else:
            return _run_semisup(x, self.w_pad, self.b_pad,
                                k=self.output_k, tn=tn)


if __name__ == "__main__":
    # Use highest matmul precision for the pure-JAX references so the
    # comparison measures kernel correctness, not XLA's default bf16 matmul.
    jax.config.update("jax_default_matmul_precision", "highest")

    key = jax.random.PRNGKey(0)
    N = 8          # batch
    OUTPUT_K = 10  # clusters
    H = 2          # num_sub_heads

    kx, kx2 = jax.random.split(key)
    x = jax.random.normal(kx, (N, IN_FEATURES), dtype=jnp.float32)

    model = ClusterNet5gTwoHeadHead(output_k=OUTPUT_K, num_sub_heads=H,
                                    semisup=False, seed=0)
    results = [jax.block_until_ready(r) for r in model(x)]

    ok = True
    for h, r in enumerate(results):
        ref = jax.nn.softmax(x @ model.w_t[h] + model.b[h], axis=1)
        ok = ok and r.shape == (N, OUTPUT_K)
        ok = ok and bool(jnp.allclose(r, ref, atol=2e-3, rtol=2e-3))
        ok = ok and bool(jnp.allclose(jnp.sum(r, axis=1), 1.0, atol=1e-3))

    # Ragged batch (N not a multiple of the 8-row-aligned tile): Pallas masks
    # the boundary block's stores; rows are independent, so this is safe.
    x2 = jax.random.normal(kx2, (12, IN_FEATURES), dtype=jnp.float32)
    res2 = [jax.block_until_ready(r) for r in model(x2)]
    for h, r in enumerate(res2):
        ref = jax.nn.softmax(x2 @ model.w_t[h] + model.b[h], axis=1)
        ok = ok and r.shape == (12, OUTPUT_K)
        ok = ok and bool(jnp.allclose(r, ref, atol=2e-3, rtol=2e-3))

    # kmeans_use_features path (identity passthrough).
    feats = model(x, kmeans_use_features=True)
    ok = ok and len(feats) == H and bool(jnp.array_equal(feats[0], x))

    # Semisup path (plain linear).
    semi = ClusterNet5gTwoHeadHead(output_k=OUTPUT_K, semisup=True, seed=1)
    y = jax.block_until_ready(semi(x))
    ref_semi = x @ semi.w_t + semi.b
    ok = ok and y.shape == (N, OUTPUT_K)
    ok = ok and bool(jnp.allclose(y, ref_semi, atol=2e-3, rtol=2e-3))

    print("KERNEL_OK" if ok else "MISMATCH")
</pallas_src>

<mosaic_0001>
module attributes {stable_mosaic.version = 11 : i64} {
  func.func @_heads_kernel(%arg0: i32, %arg1: memref<8x512xf32, #tpu.memory_space<vmem>>, %arg2: memref<512x256xf32, #tpu.memory_space<vmem>>, %arg3: memref<1x256xf32, #tpu.memory_space<vmem>>, %arg4: memref<8x10xf32, #tpu.memory_space<vmem>>, %arg5: memref<8x10xf32, #tpu.memory_space<vmem>>) attributes {dimension_semantics = [#tpu.dimension_semantics<parallel>], iteration_bounds = array<i64: 1>, scalar_prefetch = 0 : i64, scratch_operands = 0 : i64, tpu.core_type = #tpu.core_type<tc>, window_params = [{transform_indices = @transform_0, window_bounds = array<i64: 8, 512>}, {pipeline_mode = #tpu.pipeline_mode<synchronous>, transform_indices = @transform_1, window_bounds = array<i64: 512, 256>}, {pipeline_mode = #tpu.pipeline_mode<synchronous>, transform_indices = @transform_2, window_bounds = array<i64: 1, 256>}, {transform_indices = @transform_3, window_bounds = array<i64: 8, 10>}, {transform_indices = @transform_4, window_bounds = array<i64: 8, 10>}]} {
    %c0 = arith.constant 0 : index
    %c0_0 = arith.constant 0 : index
    %0 = vector.load %arg1[%c0, %c0_0] : memref<8x512xf32, #tpu.memory_space<vmem>>, vector<8x512xf32>
    %c0_1 = arith.constant 0 : index
    %c0_2 = arith.constant 0 : index
    %1 = vector.load %arg2[%c0_1, %c0_2] : memref<512x256xf32, #tpu.memory_space<vmem>>, vector<512x256xf32>
    %cst = arith.constant dense<0.000000e+00> : vector<8x256xf32>
    %2 = tpu.matmul %0, %1, %cst {dimension_numbers = #tpu.dot_dimension_numbers<[1], [0], [0], [1], [0, 0, 1, 1], [], []>, precision = #tpu.contract_precision<fp32>} : vector<8x512xf32>, vector<512x256xf32>, vector<8x256xf32> -> vector<8x256xf32>
    %c0_3 = arith.constant 0 : index
    %c0_4 = arith.constant 0 : index
    %3 = vector.load %arg3[%c0_3, %c0_4] : memref<1x256xf32, #tpu.memory_space<vmem>>, vector<1x256xf32>
    %4 = vector.broadcast %3 : vector<1x256xf32> to vector<8x256xf32>
    %5 = arith.addf %2, %4 : vector<8x256xf32>
    %6 = vector.extract_strided_slice %5 {offsets = [0, 0], sizes = [8, 128], strides = [1, 1]} : vector<8x256xf32> to vector<8x128xf32>
    %cst_5 = arith.constant dense<0xFF800000> : vector<8xf32>
    %7 = vector.multi_reduction <maximumf>, %6, %cst_5 [1] : vector<8x128xf32> to vector<8xf32>
    %8 = vector.shape_cast %7 : vector<8xf32> to vector<8x1xf32>
    %9 = vector.broadcast %8 : vector<8x1xf32> to vector<8x128xf32>
    %10 = arith.subf %6, %9 : vector<8x128xf32>
    %11 = math.exp %10 : vector<8x128xf32>
    %cst_6 = arith.constant dense<0.000000e+00> : vector<8xf32>
    %12 = vector.multi_reduction <add>, %11, %cst_6 [1] : vector<8x128xf32> to vector<8xf32>
    %13 = vector.shape_cast %12 : vector<8xf32> to vector<8x1xf32>
    %14 = vector.broadcast %13 : vector<8x1xf32> to vector<8x128xf32>
    %15 = arith.divf %11, %14 : vector<8x128xf32>
    %16 = vector.extract_strided_slice %15 {offsets = [0, 0], sizes = [8, 10], strides = [1, 1]} : vector<8x128xf32> to vector<8x10xf32>
    %c0_7 = arith.constant 0 : index
    %c0_8 = arith.constant 0 : index
    %17 = vector.load %arg4[%c0_7, %c0_8] : memref<8x10xf32, #tpu.memory_space<vmem>>, vector<8x10xf32>
    tpu.vector_store %arg4[%c0_7, %c0_8], %16 {strides = array<i32>} : memref<8x10xf32, #tpu.memory_space<vmem>>, vector<8x10xf32>,
    %18 = vector.extract_strided_slice %5 {offsets = [0, 128], sizes = [8, 128], strides = [1, 1]} : vector<8x256xf32> to vector<8x128xf32>
    %cst_9 = arith.constant dense<0xFF800000> : vector<8xf32>
    %19 = vector.multi_reduction <maximumf>, %18, %cst_9 [1] : vector<8x128xf32> to vector<8xf32>
    %20 = vector.shape_cast %19 : vector<8xf32> to vector<8x1xf32>
    %21 = vector.broadcast %20 : vector<8x1xf32> to vector<8x128xf32>
    %22 = arith.subf %18, %21 : vector<8x128xf32>
    %23 = math.exp %22 : vector<8x128xf32>
    %cst_10 = arith.constant dense<0.000000e+00> : vector<8xf32>
    %24 = vector.multi_reduction <add>, %23, %cst_10 [1] : vector<8x128xf32> to vector<8xf32>
    %25 = vector.shape_cast %24 : vector<8xf32> to vector<8x1xf32>
    %26 = vector.broadcast %25 : vector<8x1xf32> to vector<8x128xf32>
    %27 = arith.divf %23, %26 : vector<8x128xf32>
    %28 = vector.extract_strided_slice %27 {offsets = [0, 0], sizes = [8, 10], strides = [1, 1]} : vector<8x128xf32> to vector<8x10xf32>
    %c0_11 = arith.constant 0 : index
    %c0_12 = arith.constant 0 : index
    %29 = vector.load %arg5[%c0_11, %c0_12] : memref<8x10xf32, #tpu.memory_space<vmem>>, vector<8x10xf32>
    tpu.vector_store %arg5[%c0_11, %c0_12], %28 {strides = array<i32>} : memref<8x10xf32, #tpu.memory_space<vmem>>, vector<8x10xf32>,
    return
  }
  func.func @transform_0(%arg0: i32) -> (i32, i32) {
    %c0_i32 = arith.constant 0 : i32
    %c0_i32_0 = arith.constant 0 : i32
    return %arg0, %c0_i32 : i32, i32
  }
  func.func @transform_1(%arg0: i32) -> (i32, i32) {
    %c0_i32 = arith.constant 0 : i32
    %c0_i32_0 = arith.constant 0 : i32
    %c0_i32_1 = arith.constant 0 : i32
    return %c0_i32, %c0_i32_0 : i32, i32
  }
  func.func @transform_2(%arg0: i32) -> (i32, i32) {
    %c0_i32 = arith.constant 0 : i32
    %c0_i32_0 = arith.constant 0 : i32
    %c0_i32_1 = arith.constant 0 : i32
    return %c0_i32, %c0_i32_0 : i32, i32
  }
  func.func @transform_3(%arg0: i32) -> (i32, i32) {
    %c0_i32 = arith.constant 0 : i32
    %c0_i32_0 = arith.constant 0 : i32
    return %arg0, %c0_i32 : i32, i32
  }
  func.func @transform_4(%arg0: i32) -> (i32, i32) {
    %c0_i32 = arith.constant 0 : i32
    %c0_i32_0 = arith.constant 0 : i32
    return %arg0, %c0_i32 : i32, i32
  }
}

</mosaic_0001>

<bundles_post_ra>
// kernel: _run_heads.1
= control target key start
LH: loop header
LB: loop body
LE: loop exit
PB: predicated region body
PF: predicated region fallthrough
CT: control target
= control target key end

     0   :  { %10 = vsyncpa [#allocation3], 0  ;;  %s5422_s0 = inlined_call_operand.hbm [shape: f32[8,512], index: 0, kind: input, shape index: {}]   ;;  %s5423_s1 = inlined_call_operand.hbm [shape: f32[512,256], index: 1, kind: input, shape index: {}]   ;;  %s5424_s2 = inlined_call_operand.vmem [shape: f32[1,256], index: 2, kind: input, shape index: {}]   ;;  %s5425_s3 = inlined_call_operand.hbm [shape: f32[8,10], index: 3, kind: output, shape index: {0}]   ;;  %s5426_s4 = inlined_call_operand.hbm [shape: f32[8,10], index: 4, kind: output, shape index: {1}]  }
   0x1   :  { %11 = vsyncpa [#allocation6], 0 }
   0x2   :  { %12 = vsyncpa [#allocation4], 0 }
   0x3   :  { %13 = vsyncpa [#allocation9], 0  ;;  %s3709_s15 = smov [#allocation2]   ;;  %s3710_s17 = smov [#allocation5]  }
   0x4   :  { %s20_s16 = sshll.u32 %s3709_s15, 4  ;;  %s29_s18 = sshll.u32 %s3710_s17, 4  ;;  %s21_s16 = int_to_ptr.vmem [resolvable:$true] %s20_s16  ;;  %s3740_s18 = int_to_ptr.vmem [resolvable:$true] %s29_s18 }
   0x5   :  { %s3613_s21 = scalar_lea.hbm %s5422_s0, 512 }
   0x6   :  { %p3614_p0 = scmp.ne.s32.totalorder %s5422_s0, %s3613_s21  ;;  %p3617_p1 = scmp.lt.u32.totalorder %s3613_s21, %s5422_s0 }
   0x8   :  { %p3619_p2 = pnand %p3617_p1, %p3614_p0 }
   0xa   :  { %3622 = shalt.err (!%p3619_p2)
}
   0xb   :  { %s3623_s26 = scalar_lea.vmem %s21_s16, 512  ;;  %p3628_p4 = scmp.lt.s32.totalorder %s21_s16, %s21_s16 }
   0xc   :  { %p3624_p3 = scmp.ne.s32.totalorder %s21_s16, %s3623_s26  ;;  %p3629_p5 = scmp.lt.s32.totalorder %s3623_s26, %s3623_s26 }
   0xe   :  { %p3630_p6 = por %p3629_p5, %p3628_p4 }
  0x10   :  { %p3631_p7 = pnand %p3630_p6, %p3624_p3 }
  0x12   :  { %3634 = shalt.err (!%p3631_p7)
}
  0x13   :  { %23 = dma.hbm_to_vmem [thread:$0]  %s5422_s0, 512, %s21_s16, [#allocation3]  }
  0x14   :  { %s3635_s5 = scalar_lea.hbm %s5423_s1, 16384 }
  0x15   :  { %p3636_p8 = scmp.ne.s32.totalorder %s5423_s1, %s3635_s5  ;;  %p3639_p9 = scmp.lt.u32.totalorder %s3635_s5, %s5423_s1 }
  0x17   :  { %p3641_p10 = pnand %p3639_p9, %p3636_p8 }
  0x19   :  { %3644 = shalt.err (!%p3641_p10)
}
  0x1a   :  { %s3645_s10 = scalar_lea.vmem %s3740_s18, 16384  ;;  %p3650_p12 = scmp.lt.s32.totalorder %s3740_s18, %s3740_s18 }
  0x1b   :  { %p3646_p11 = scmp.ne.s32.totalorder %s3740_s18, %s3645_s10  ;;  %p3651_p13 = scmp.lt.s32.totalorder %s3645_s10, %s3645_s10 }
  0x1d   :  { %p3652_p0 = por %p3651_p13, %p3650_p12 }
  0x1f   :  { %p3653_p1 = pnand %p3652_p0, %p3646_p11 }
  0x21   :  { %3656 = shalt.err (!%p3653_p1)
}
  0x22   :  { %s3711_s0 = smov 256   ;;  %s3712_s11 = smov 16  }
  0x23   :  { %35 = dma.hbm_to_vmem [thread:$0]  %s5423_s1, 16384, %s3740_s18, [#allocation6], %s3711_s0, %s3711_s0, %s3712_s11  }
  0x24   :  { %3701 = dma.done.wait [#allocation3], 512  }
  0x25   :  { %3702 = vsyncadd [#allocation3], 4294966784 }
  0x26   :  { %3703 = dma.done.wait [#allocation6], 16384  }
  0x27   :  { %3704 = vsyncadd [#allocation6], 4294950912  ;;  %v49_v0 = vld [vmem:[#allocation5 + $0x8] sm:$0xff]  ;;  %v51_v1 = vld [vmem:[#allocation5 + $0x18] sm:$0xff]  ;;  %vm2765_vm0 = vcmask 80896   ;;  %s3714_s16 = smov [#allocation8]  }
  0x28   :  { %v113_v2 = vld [vmem:[#allocation5 + $0x208] sm:$0xff]  ;;  %v188_v3 = vand.u32 4294901760, %v49_v0  ;;  %v192_v4 = vand.u32 4294901760, %v51_v1  ;;  %v115_v5 = vld [vmem:[#allocation5 + $0x218] sm:$0xff]  ;;  %v48_v7 = vld [vmem:[#allocation5] sm:$0xff]  ;;  %s2793_s17 = sshll.u32 %s3714_s16, 4  ;;  %s2794_s17 = int_to_ptr.vmem [resolvable:$true] %s2793_s17 }
  0x29   :  { %v1472_v6 = vand.u32 4294901760, %v113_v2  ;;  %v50_v8 = vld [vmem:[#allocation5 + $0x10] sm:$0xff]  ;;  %v1476_v9 = vand.u32 4294901760, %v115_v5  ;;  %v190_v10 = vand.u32 4294901760, %v48_v7  ;;  %v112_v12 = vld [vmem:[#allocation5 + $0x200] sm:$0xff]  ;;  %v53_v14 = vld [vmem:[#allocation5 + $0x28] sm:$0xff] }
  0x2a   :  { %v194_v11 = vand.u32 4294901760, %v50_v8  ;;  %v114_v13 = vld [vmem:[#allocation5 + $0x210] sm:$0xff]  ;;  %v3771_v15 = vpack.c.bf16 %v192_v4, %v188_v3  ;;  %v3773_v16 = vsub.f32 %v49_v0, %v188_v3  ;;  %v3775_v17 = vsub.f32 %v51_v1, %v192_v4  ;;  %v55_v19 = vld [vmem:[#allocation5 + $0x38] sm:$0xff]  ;;  %v117_v20 = vld [vmem:[#allocation5 + $0x228] sm:$0xff] }
  0x2b   :  { %v3777_v18 = vsub.f32 %v113_v2, %v1472_v6  ;;  %v119_v21 = vld [vmem:[#allocation5 + $0x238] sm:$0xff]  ;;  %v3779_v22 = vpack.c.bf16 %v1476_v9, %v1472_v6  ;;  %v3781_v23 = vsub.f32 %v115_v5, %v1476_v9  ;;  %v3785_v25 = vsub.f32 %v48_v7, %v190_v10  ;;  %v52_v26 = vld [vmem:[#allocation5 + $0x20] sm:$0xff]  ;;  %v54_v31 = vld [vmem:[#allocation5 + $0x30] sm:$0xff] }
  0x2c   :  { %5935 = vst [vmem:[#allocation14_spill] sm:$0xff] %v3771_v15  ;;  %5936 = vst [vmem:[#allocation15_spill] sm:$0xff] %v3773_v16  ;;  %v3783_v24 = vpack.c.bf16 %v194_v11, %v190_v10  ;;  %2808 = vmatprep.subr.bf16.mxu1 %v3771_v15  ;;  %v3788_v27 = vsub.f32 %v50_v8, %v194_v11  ;;  %v1474_v28 = vand.u32 4294901760, %v112_v12  ;;  %v1478_v29 = vand.u32 4294901760, %v114_v13  ;;  %v116_v36 = vld [vmem:[#allocation5 + $0x220] sm:$0xff]  ;;  %v118_v37 = vld [vmem:[#allocation5 + $0x230] sm:$0xff] }
  0x2d   :  { %5937 = vst [vmem:[#allocation16_spill] sm:$0xff] %v3775_v17  ;;  %5938 = vst [vmem:[#allocation17_spill] sm:$0xff] %v3777_v18  ;;  %v196_v30 = vand.u32 4294901760, %v53_v14  ;;  %3192 = vmatprep.subr.bf16.mxu0 %v3779_v22  ;;  %v200_v32 = vand.u32 4294901760, %v55_v19  ;;  %v1480_v33 = vand.u32 4294901760, %v117_v20  ;;  %v1484_v34 = vand.u32 4294901760, %v119_v21 }
  0x2e   :  { %5939 = vst [vmem:[#allocation18_spill] sm:$0xff] %v3779_v22  ;;  %5940 = vst [vmem:[#allocation19_spill] sm:$0xff] %v3781_v23  ;;  %2810 = vmatpush1.bf16.msra.mxu1 %v3783_v24  ;;  %v198_v35 = vand.u32 4294901760, %v52_v26  ;;  %v3792_v38 = vpack.c.bf16 %v1478_v29, %v1474_v28  ;;  %v3794_v39 = vsub.f32 %v112_v12, %v1474_v28  ;;  %v57_v42 = vld [vmem:[#allocation5 + $0x48] sm:$0xff]  ;;  %v59_v43 = vld [vmem:[#allocation5 + $0x58] sm:$0xff]  ;;  %v202_v51 = vand.u32 4294901760, %v54_v31 }
  0x2f   :  { %5941 = vst [vmem:[#allocation20_spill] sm:$0xff] %v3783_v24  ;;  %5942 = vst [vmem:[#allocation21_spill] sm:$0xff] %v3785_v25  ;;  %v3796_v40 = vsub.f32 %v114_v13, %v1478_v29  ;;  %v3798_v41 = vsub.f32 %v53_v14, %v196_v30  ;;  %v121_v44 = vld [vmem:[#allocation5 + $0x248] sm:$0xff]  ;;  %v3800_v45 = vpack.c.bf16 %v200_v32, %v196_v30  ;;  %v123_v49 = vld [vmem:[#allocation5 + $0x258] sm:$0xff]  ;;  %v1482_v53 = vand.u32 4294901760, %v116_v36 }
  0x30   :  { %5943 = vst [vmem:[#allocation22_spill] sm:$0xff] %v3788_v27  ;;  %5944 = vst [vmem:[#allocation23_spill] sm:$0xff] %v3792_v38  ;;  %v3802_v46 = vsub.f32 %v55_v19, %v200_v32  ;;  %v3804_v47 = vpack.c.bf16 %v1484_v34, %v1480_v33  ;;  %v3806_v48 = vsub.f32 %v117_v20, %v1480_v33  ;;  %3194 = vmatpush1.bf16.msra.mxu0 %v3792_v38  ;;  %v56_v58 = vld [vmem:[#allocation5 + $0x40] sm:$0xff]  ;;  %v58_v59 = vld [vmem:[#allocation5 + $0x50] sm:$0xff] }
  0x31   :  { %5945 = vst [vmem:[#allocation24_spill] sm:$0xff] %v3794_v39  ;;  %5946 = vst [vmem:[#allocation25_spill] sm:$0xff] %v3796_v40  ;;  %v3809_v50 = vsub.f32 %v119_v21, %v1484_v34  ;;  %v3811_v52 = vsub.f32 %v52_v26, %v198_v35  ;;  %2812 = vmatprep.subr.bf16.mxu1 %v3800_v45  ;;  %v1486_v54 = vand.u32 4294901760, %v118_v37  ;;  %v204_v55 = vand.u32 4294901760, %v57_v42  ;;  %v120_v0 = vld [vmem:[#allocation5 + $0x240] sm:$0xff]  ;;  %v122_v1 = vld [vmem:[#allocation5 + $0x250] sm:$0xff] }
  0x32   :  { %5947 = vst [vmem:[#allocation26_spill] sm:$0xff] %v3798_v41  ;;  %5948 = vst [vmem:[#allocation27_spill] sm:$0xff] %v3800_v45  ;;  %3196 = vmatprep.subr.bf16.mxu0 %v3804_v47  ;;  %v208_v56 = vand.u32 4294901760, %v59_v43  ;;  %v1488_v57 = vand.u32 4294901760, %v121_v44  ;;  %v3815_v60 = vpack.c.bf16 %v202_v51, %v198_v35  ;;  %v3817_v61 = vsub.f32 %v54_v31, %v202_v51  ;;  %v61_v2 = vld [vmem:[#allocation5 + $0x68] sm:$0xff]  ;;  %v63_v7 = vld [vmem:[#allocation5 + $0x78] sm:$0xff] }
  0x33   :  { %5949 = vst [vmem:[#allocation28_spill] sm:$0xff] %v3802_v46  ;;  %5950 = vst [vmem:[#allocation29_spill] sm:$0xff] %v3804_v47  ;;  %v3819_v62 = vsub.f32 %v116_v36, %v1482_v53  ;;  %v1492_v63 = vand.u32 4294901760, %v123_v49  ;;  %v3821_v3 = vpack.c.bf16 %v1486_v54, %v1482_v53  ;;  %v3823_v4 = vsub.f32 %v118_v37, %v1486_v54  ;;  %v125_v8 = vld [vmem:[#allocation5 + $0x268] sm:$0xff]  ;;  %v127_v9 = vld [vmem:[#allocation5 + $0x278] sm:$0xff] }
  0x34   :  { %5951 = vst [vmem:[#allocation30_spill] sm:$0xff] %v3806_v48  ;;  %5952 = vst [vmem:[#allocation31_spill] sm:$0xff] %v3809_v50  ;;  %v3825_v5 = vpack.c.bf16 %v208_v56, %v204_v55  ;;  %v3827_v6 = vsub.f32 %v57_v42, %v204_v55  ;;  %2814 = vmatpush1.bf16.msra.mxu1 %v3815_v60  ;;  %v3830_v10 = vsub.f32 %v59_v43, %v208_v56  ;;  %v60_v31 = vld [vmem:[#allocation5 + $0x60] sm:$0xff]  ;;  %v62_v36 = vld [vmem:[#allocation5 + $0x70] sm:$0xff] }
  0x35   :  { %5953 = vst [vmem:[#allocation32_spill] sm:$0xff] %v3811_v52  ;;  %5954 = vst [vmem:[#allocation33_spill] sm:$0xff] %v3815_v60  ;;  %v3832_v11 = vpack.c.bf16 %v1492_v63, %v1488_v57  ;;  %v3834_v12 = vsub.f32 %v121_v44, %v1488_v57  ;;  %v3836_v13 = vsub.f32 %v123_v49, %v1492_v63  ;;  %3198 = vmatpush1.bf16.msra.mxu0 %v3821_v3  ;;  %v124_v37 = vld [vmem:[#allocation5 + $0x260] sm:$0xff]  ;;  %v126_v42 = vld [vmem:[#allocation5 + $0x270] sm:$0xff] }
  0x36   :  { %5955 = vst [vmem:[#allocation34_spill] sm:$0xff] %v3817_v61  ;;  %5956 = vst [vmem:[#allocation35_spill] sm:$0xff] %v3819_v62  ;;  %2816 = vmatprep.subr.bf16.mxu1 %v3825_v5  ;;  %v206_v14 = vand.u32 4294901760, %v56_v58  ;;  %v210_v19 = vand.u32 4294901760, %v58_v59  ;;  %v1490_v20 = vand.u32 4294901760, %v120_v0  ;;  %v1494_v21 = vand.u32 4294901760, %v122_v1 }
  0x37   :  { %5957 = vst [vmem:[#allocation36_spill] sm:$0xff] %v3821_v3  ;;  %5958 = vst [vmem:[#allocation37_spill] sm:$0xff] %v3823_v4  ;;  %3200 = vmatprep.subr.bf16.mxu0 %v3832_v11  ;;  %v212_v26 = vand.u32 4294901760, %v61_v2  ;;  %v216_v28 = vand.u32 4294901760, %v63_v7  ;;  %v1496_v29 = vand.u32 4294901760, %v125_v8  ;;  %v1500_v30 = vand.u32 4294901760, %v127_v9 }
  0x38   :  { %5959 = vst [vmem:[#allocation38_spill] sm:$0xff] %v3825_v5  ;;  %5960 = vst [vmem:[#allocation39_spill] sm:$0xff] %v3827_v6  ;;  %v3841_v32 = vpack.c.bf16 %v210_v19, %v206_v14  ;;  %v3843_v33 = vsub.f32 %v56_v58, %v206_v14  ;;  %v3845_v34 = vsub.f32 %v58_v59, %v210_v19  ;;  %v65_v53 = vld [vmem:[#allocation5 + $0x88] sm:$0xff]  ;;  %v67_v54 = vld [vmem:[#allocation5 + $0x98] sm:$0xff]  ;;  %v214_v59 = vand.u32 4294901760, %v60_v31 }
  0x39   :  { %5961 = vst [vmem:[#allocation40_spill] sm:$0xff] %v3830_v10  ;;  %5962 = vst [vmem:[#allocation41_spill] sm:$0xff] %v3832_v11  ;;  %v3847_v35 = vpack.c.bf16 %v1494_v21, %v1490_v20  ;;  %v3849_v43 = vsub.f32 %v120_v0, %v1490_v20  ;;  %v3851_v44 = vsub.f32 %v122_v1, %v1494_v21  ;;  %v129_v55 = vld [vmem:[#allocation5 + $0x288] sm:$0xff]  ;;  %v218_v0 = vand.u32 4294901760, %v62_v36  ;;  %v131_v14 = vld [vmem:[#allocation5 + $0x298] sm:$0xff] }
  0x3a   :  { %5963 = vst [vmem:[#allocation42_spill] sm:$0xff] %v3834_v12  ;;  %5964 = vst [vmem:[#allocation43_spill] sm:$0xff] %v3836_v13  ;;  %v3853_v49 = vpack.c.bf16 %v216_v28, %v212_v26  ;;  %v3855_v51 = vsub.f32 %v61_v2, %v212_v26  ;;  %2818 = vmatpush1.bf16.msra.mxu1 %v3841_v32  ;;  %v3859_v56 = vsub.f32 %v63_v7, %v216_v28  ;;  %v64_v26 = vld [vmem:[#allocation5 + $0x80] sm:$0xff]  ;;  %v66_v28 = vld [vmem:[#allocation5 + $0x90] sm:$0xff] }
  0x3b   :  { %5965 = vst [vmem:[#allocation44_spill] sm:$0xff] %v3841_v32  ;;  %5966 = vst [vmem:[#allocation45_spill] sm:$0xff] %v3843_v33  ;;  %3202 = vmatpush1.bf16.msra.mxu0 %v3847_v35  ;;  %v3861_v57 = vpack.c.bf16 %v1500_v30, %v1496_v29  ;;  %v3863_v58 = vsub.f32 %v125_v8, %v1496_v29  ;;  %v3866_v63 = vsub.f32 %v127_v9, %v1500_v30  ;;  %v128_v8 = vld [vmem:[#allocation5 + $0x280] sm:$0xff]  ;;  %v69_v32 = vld [vmem:[#allocation5 + $0xa8] sm:$0xff] }
  0x3c   :  { %5967 = vst [vmem:[#allocation46_spill] sm:$0xff] %v3845_v34  ;;  %5968 = vst [vmem:[#allocation47_spill] sm:$0xff] %v3847_v35  ;;  %2820 = vmatprep.subr.bf16.mxu1 %v3853_v49  ;;  %v1498_v1 = vand.u32 4294901760, %v124_v37  ;;  %v1502_v2 = vand.u32 4294901760, %v126_v42  ;;  %v3869_v19 = vsub.f32 %v60_v31, %v214_v59  ;;  %v220_v20 = vand.u32 4294901760, %v65_v53  ;;  %v71_v11 = vld [vmem:[#allocation5 + $0xb8] sm:$0xff] }
  0x3d   :  { %5969 = vst [vmem:[#allocation48_spill] sm:$0xff] %v3849_v43  ;;  %5970 = vst [vmem:[#allocation49_spill] sm:$0xff] %v3851_v44  ;;  %3204 = vmatprep.subr.bf16.mxu0 %v3861_v57  ;;  %v224_v7 = vand.u32 4294901760, %v67_v54  ;;  %v1504_v21 = vand.u32 4294901760, %v129_v55  ;;  %v3871_v29 = vpack.c.bf16 %v218_v0, %v214_v59  ;;  %v3873_v35 = vsub.f32 %v62_v36, %v218_v0  ;;  %v133_v47 = vld [vmem:[#allocation5 + $0x2a8] sm:$0xff]  ;;  %v132_v38 = vld [vmem:[#allocation5 + $0x2a0] sm:$0xff] }
  0x3e   :  { %5971 = vst [vmem:[#allocation50_spill] sm:$0xff] %v3853_v49  ;;  %5972 = vst [vmem:[#allocation51_spill] sm:$0xff] %v3855_v51  ;;  %v3875_v9 = vpack.c.bf16 %v1502_v2, %v1498_v1  ;;  %v3877_v30 = vsub.f32 %v124_v37, %v1498_v1  ;;  %v130_v49 = vld [vmem:[#allocation5 + $0x290] sm:$0xff]  ;;  %v3883_v3 = vsub.f32 %v65_v53, %v220_v20  ;;  %v1508_v36 = vand.u32 4294901760, %v131_v14  ;;  %v135_v53 = vld [vmem:[#allocation5 + $0x2b8] sm:$0xff] }
  0x3f   :  { %5973 = vst [vmem:[#allocation52_spill] sm:$0xff] %v3859_v56  ;;  %5974 = vst [vmem:[#allocation53_spill] sm:$0xff] %v3861_v57  ;;  %v3879_v57 = vsub.f32 %v126_v42, %v1502_v2  ;;  %v3881_v31 = vpack.c.bf16 %v224_v7, %v220_v20  ;;  %v3885_v5 = vsub.f32 %v67_v54, %v224_v7  ;;  %2822 = vmatpush1.bf16.msra.mxu1 %v3871_v29  ;;  %v134_v15 = vld [vmem:[#allocation5 + $0x2b0] sm:$0xff] }
  0x40   :  { %5975 = vst [vmem:[#allocation54_spill] sm:$0xff] %v3863_v58  ;;  %5976 = vst [vmem:[#allocation55_spill] sm:$0xff] %v3866_v63  ;;  %3206 = vmatpush1.bf16.msra.mxu0 %v3875_v9  ;;  %v3889_v59 = vsub.f32 %v129_v55, %v1504_v21  ;;  %v222_v37 = vand.u32 4294901760, %v64_v26  ;;  %v226_v0 = vand.u32 4294901760, %v66_v28  ;;  %v1506_v1 = vand.u32 4294901760, %v128_v8  ;;  %v68_v55 = vld [vmem:[#allocation5 + $0xa0] sm:$0xff] }
  0x41   :  { %5977 = vst [vmem:[#allocation56_spill] sm:$0xff] %v3869_v19  ;;  %5978 = vst [vmem:[#allocation57_spill] sm:$0xff] %v3871_v29  ;;  %2824 = vmatprep.subr.bf16.mxu1 %v3881_v31  ;;  %v1510_v42 = vand.u32 4294901760, %v130_v49  ;;  %v228_v2 = vand.u32 4294901760, %v69_v32  ;;  %v232_v60 = vand.u32 4294901760, %v71_v11  ;;  %v3892_v20 = vpack.c.bf16 %v1508_v36, %v1504_v21  ;;  %v70_v29 = vld [vmem:[#allocation5 + $0xb0] sm:$0xff] }
  0x42   :  { %5979 = vst [vmem:[#allocation58_spill] sm:$0xff] %v3873_v35  ;;  %5980 = vst [vmem:[#allocation59_spill] sm:$0xff] %v3875_v9  ;;  %v3894_v54 = vsub.f32 %v131_v14, %v1508_v36  ;;  %v3896_v7 = vpack.c.bf16 %v226_v0, %v222_v37  ;;  %v3898_v9 = vsub.f32 %v64_v26, %v222_v37  ;;  %v73_v21 = vld [vmem:[#allocation5 + $0xc8] sm:$0xff]  ;;  %v230_v37 = vand.u32 4294901760, %v68_v55 }
  0x43   :  { %5981 = vst [vmem:[#allocation60_spill] sm:$0xff] %v3877_v30  ;;  %5982 = vst [vmem:[#allocation61_spill] sm:$0xff] %v3879_v57  ;;  %v3900_v45 = vsub.f32 %v66_v28, %v226_v0  ;;  %v3904_v24 = vsub.f32 %v128_v8, %v1506_v1  ;;  %v3906_v22 = vsub.f32 %v130_v49, %v1510_v42  ;;  %3208 = vmatprep.subr.bf16.mxu0 %v3892_v20 }
  0x44   :  { %5983 = vst [vmem:[#allocation62_spill] sm:$0xff] %v3881_v31  ;;  %5984 = vst [vmem:[#allocation63_spill] sm:$0xff] %v3883_v3  ;;  %v3902_v31 = vpack.c.bf16 %v1510_v42, %v1506_v1  ;;  %2826 = vmatpush1.bf16.msra.mxu1 %v3896_v7  ;;  %v3910_v14 = vpack.c.bf16 %v232_v60, %v228_v2  ;;  %v3912_v26 = vsub.f32 %v69_v32, %v228_v2 }
  0x45   :  { %5985 = vst [vmem:[#allocation64_spill] sm:$0xff] %v3885_v5  ;;  %5986 = vst [vmem:[#allocation65_spill] sm:$0xff] %v3889_v59  ;;  %v75_v59 = vld [vmem:[#allocation5 + $0xd8] sm:$0xff]  ;;  %v3914_v36 = vsub.f32 %v71_v11, %v232_v60  ;;  %v1512_v28 = vand.u32 4294901760, %v133_v47  ;;  %v1516_v8 = vand.u32 4294901760, %v135_v53  ;;  %v234_v49 = vand.u32 4294901760, %v70_v29 }
  0x46   :  { %5987 = vst [vmem:[#allocation66_spill] sm:$0xff] %v3892_v20  ;;  %5988 = vst [vmem:[#allocation67_spill] sm:$0xff] %v3894_v54  ;;  %3210 = vmatpush1.bf16.msra.mxu0 %v3902_v31  ;;  %v1514_v0 = vand.u32 4294901760, %v132_v38  ;;  %2828 = vmatprep.subr.bf16.mxu1 %v3910_v14  ;;  %v1518_v42 = vand.u32 4294901760, %v134_v15  ;;  %v236_v20 = vand.u32 4294901760, %v73_v21  ;;  %v3926_v2 = vsub.f32 %v68_v55, %v230_v37  ;;  %v79_v54 = vld [vmem:[#allocation5 + $0xf8] sm:$0xff] }
  0x47   :  { %5989 = vst [vmem:[#allocation68_spill] sm:$0xff] %v3896_v7  ;;  %5990 = vst [vmem:[#allocation69_spill] sm:$0xff] %v3898_v9  ;;  %v3918_v1 = vsub.f32 %v133_v47, %v1512_v28  ;;  %v240_v7 = vand.u32 4294901760, %v75_v59  ;;  %v3920_v32 = vpack.c.bf16 %v1516_v8, %v1512_v28  ;;  %v3922_v60 = vsub.f32 %v135_v53, %v1516_v8  ;;  %v138_v9 = vld [vmem:[#allocation5 + $0x2d0] sm:$0xff]  ;;  %v77_v28 = vld [vmem:[#allocation5 + $0xe8] sm:$0xff] }
  0x48   :  { %5991 = vst [vmem:[#allocation70_spill] sm:$0xff] %v3900_v45  ;;  %5992 = vst [vmem:[#allocation71_spill] sm:$0xff] %v3902_v31  ;;  %v3924_v11 = vpack.c.bf16 %v234_v49, %v230_v37  ;;  %v72_v31 = vld [vmem:[#allocation5 + $0xc0] sm:$0xff]  ;;  %v3928_v45 = vsub.f32 %v70_v29, %v234_v49  ;;  %v3930_v47 = vpack.c.bf16 %v1518_v42, %v1514_v0 }
  0x49   :  { %5993 = vst [vmem:[#allocation72_spill] sm:$0xff] %v3904_v24  ;;  %5994 = vst [vmem:[#allocation73_spill] sm:$0xff] %v3906_v22  ;;  %v137_v22 = vld [vmem:[#allocation5 + $0x2c8] sm:$0xff]  ;;  %v139_v24 = vld [vmem:[#allocation5 + $0x2d8] sm:$0xff]  ;;  %3212 = vmatprep.subr.bf16.mxu0 %v3920_v32  ;;  %v3938_v53 = vpack.c.bf16 %v240_v7, %v236_v20  ;;  %v3940_v55 = vsub.f32 %v73_v21, %v236_v20  ;;  %v3942_v8 = vsub.f32 %v75_v59, %v240_v7 }
  0x4a   :  { %5995 = vst [vmem:[#allocation74_spill] sm:$0xff] %v3910_v14  ;;  %5996 = vst [vmem:[#allocation75_spill] sm:$0xff] %v3912_v26  ;;  %v136_v26 = vld [vmem:[#allocation5 + $0x2c0] sm:$0xff]  ;;  %v3932_v14 = vsub.f32 %v132_v38, %v1514_v0  ;;  %2830 = vmatpush1.bf16.msra.mxu1 %v3924_v11  ;;  %v1520_v29 = vand.u32 4294901760, %v137_v22  ;;  %3214 = vmatpush1.bf16.msra.mxu0 %v3930_v47  ;;  %v1524_v38 = vand.u32 4294901760, %v139_v24  ;;  %v238_v37 = vand.u32 4294901760, %v72_v31 }
  0x4b   :  { %5997 = vst [vmem:[#allocation76_spill] sm:$0xff] %v3914_v36  ;;  %5998 = vst [vmem:[#allocation77_spill] sm:$0xff] %v3918_v1  ;;  %v74_v36 = vld [vmem:[#allocation5 + $0xd0] sm:$0xff]  ;;  %v3934_v1 = vsub.f32 %v134_v15, %v1518_v42  ;;  %v1522_v49 = vand.u32 4294901760, %v136_v26  ;;  %2832 = vmatprep.subr.bf16.mxu1 %v3938_v53  ;;  %v1526_v42 = vand.u32 4294901760, %v138_v9 }
  0x4c   :  { %5999 = vst [vmem:[#allocation78_spill] sm:$0xff] %v3920_v32  ;;  %6000 = vst [vmem:[#allocation79_spill] sm:$0xff] %v3922_v60  ;;  %v242_v15 = vand.u32 4294901760, %v74_v36  ;;  %v3946_v0 = vsub.f32 %v137_v22, %v1520_v29  ;;  %v244_v32 = vand.u32 4294901760, %v77_v28  ;;  %v3948_v20 = vpack.c.bf16 %v1524_v38, %v1520_v29  ;;  %v81_v29 = vld [vmem:[#allocation5 + $0x108] sm:$0xff]  ;;  %v83_v60 = vld [vmem:[#allocation5 + $0x118] sm:$0xff] }
  0x4d   :  { %6001 = vst [vmem:[#allocation80_spill] sm:$0xff] %v3924_v11  ;;  %6002 = vst [vmem:[#allocation81_spill] sm:$0xff] %v3926_v2  ;;  %v248_v11 = vand.u32 4294901760, %v79_v54  ;;  %v3950_v59 = vsub.f32 %v139_v24, %v1524_v38  ;;  %v3954_v21 = vsub.f32 %v72_v31, %v238_v37  ;;  %v3958_v22 = vpack.c.bf16 %v1526_v42, %v1522_v49  ;;  %v142_v2 = vld [vmem:[#allocation5 + $0x2f0] sm:$0xff] }
  0x4e   :  { %6003 = vst [vmem:[#allocation82_spill] sm:$0xff] %v3928_v45  ;;  %6004 = vst [vmem:[#allocation83_spill] sm:$0xff] %v3930_v47  ;;  %v3952_v7 = vpack.c.bf16 %v242_v15, %v238_v37  ;;  %v76_v47 = vld [vmem:[#allocation5 + $0xe0] sm:$0xff]  ;;  %v3956_v45 = vsub.f32 %v74_v36, %v242_v15  ;;  %3216 = vmatprep.subr.bf16.mxu0 %v3948_v20  ;;  %v3968_v31 = vsub.f32 %v77_v28, %v244_v32 }
  0x4f   :  { %6005 = vst [vmem:[#allocation84_spill] sm:$0xff] %v3932_v14  ;;  %6006 = vst [vmem:[#allocation85_spill] sm:$0xff] %v3934_v1  ;;  %v141_v1 = vld [vmem:[#allocation5 + $0x2e8] sm:$0xff]  ;;  %v143_v14 = vld [vmem:[#allocation5 + $0x2f8] sm:$0xff]  ;;  %v3966_v24 = vpack.c.bf16 %v248_v11, %v244_v32  ;;  %v3970_v38 = vsub.f32 %v79_v54, %v248_v11  ;;  %3218 = vmatpush1.bf16.msra.mxu0 %v3958_v22  ;;  %v246_v37 = vand.u32 4294901760, %v76_v47 }
  0x50   :  { %6007 = vst [vmem:[#allocation86_spill] sm:$0xff] %v3938_v53  ;;  %6008 = vst [vmem:[#allocation87_spill] sm:$0xff] %v3940_v55  ;;  %v140_v55 = vld [vmem:[#allocation5 + $0x2e0] sm:$0xff]  ;;  %v3960_v53 = vsub.f32 %v136_v26, %v1522_v49  ;;  %2834 = vmatpush1.bf16.msra.mxu1 %v3952_v7  ;;  %v1528_v36 = vand.u32 4294901760, %v141_v1  ;;  %v1532_v26 = vand.u32 4294901760, %v143_v14 }
  0x51   :  { %6009 = vst [vmem:[#allocation88_spill] sm:$0xff] %v3942_v8  ;;  %6010 = vst [vmem:[#allocation89_spill] sm:$0xff] %v3946_v0  ;;  %v78_v8 = vld [vmem:[#allocation5 + $0xf0] sm:$0xff]  ;;  %v3962_v0 = vsub.f32 %v138_v9, %v1526_v42  ;;  %v1530_v15 = vand.u32 4294901760, %v140_v55  ;;  %2836 = vmatprep.subr.bf16.mxu1 %v3966_v24  ;;  %v1534_v42 = vand.u32 4294901760, %v142_v2  ;;  %v3982_v28 = vsub.f32 %v76_v47, %v246_v37 }
  0x52   :  { %6011 = vst [vmem:[#allocation90_spill] sm:$0xff] %v3948_v20  ;;  %6012 = vst [vmem:[#allocation91_spill] sm:$0xff] %v3950_v59  ;;  %v250_v9 = vand.u32 4294901760, %v78_v8  ;;  %v3974_v49 = vsub.f32 %v141_v1, %v1528_v36  ;;  %v252_v20 = vand.u32 4294901760, %v81_v29  ;;  %v3976_v32 = vpack.c.bf16 %v1532_v26, %v1528_v36  ;;  %v85_v36 = vld [vmem:[#allocation5 + $0x128] sm:$0xff]  ;;  %v87_v59 = vld [vmem:[#allocation5 + $0x138] sm:$0xff] }
  0x53   :  { %6013 = vst [vmem:[#allocation92_spill] sm:$0xff] %v3952_v7  ;;  %6014 = vst [vmem:[#allocation93_spill] sm:$0xff] %v3954_v21  ;;  %v256_v7 = vand.u32 4294901760, %v83_v60  ;;  %v3978_v54 = vsub.f32 %v143_v14, %v1532_v26  ;;  %v3986_v1 = vpack.c.bf16 %v1534_v42, %v1530_v15  ;;  %v146_v21 = vld [vmem:[#allocation5 + $0x310] sm:$0xff] }
  0x54   :  { %6015 = vst [vmem:[#allocation94_spill] sm:$0xff] %v3956_v45  ;;  %6016 = vst [vmem:[#allocation95_spill] sm:$0xff] %v3958_v22  ;;  %v3980_v11 = vpack.c.bf16 %v250_v9, %v246_v37  ;;  %v80_v22 = vld [vmem:[#allocation5 + $0x100] sm:$0xff]  ;;  %v3984_v45 = vsub.f32 %v78_v8, %v250_v9  ;;  %3220 = vmatprep.subr.bf16.mxu0 %v3976_v32  ;;  %v3996_v47 = vsub.f32 %v81_v29, %v252_v20 }
  0x55   :  { %6017 = vst [vmem:[#allocation96_spill] sm:$0xff] %v3960_v53  ;;  %6018 = vst [vmem:[#allocation97_spill] sm:$0xff] %v3962_v0  ;;  %v145_v0 = vld [vmem:[#allocation5 + $0x308] sm:$0xff]  ;;  %v147_v53 = vld [vmem:[#allocation5 + $0x318] sm:$0xff]  ;;  %v3994_v14 = vpack.c.bf16 %v256_v7, %v252_v20  ;;  %v3998_v26 = vsub.f32 %v83_v60, %v256_v7  ;;  %3222 = vmatpush1.bf16.msra.mxu0 %v3986_v1  ;;  %v254_v37 = vand.u32 4294901760, %v80_v22 }
  0x56   :  { %6019 = vst [vmem:[#allocation98_spill] sm:$0xff] %v3966_v24  ;;  %6020 = vst [vmem:[#allocation99_spill] sm:$0xff] %v3968_v31  ;;  %v144_v31 = vld [vmem:[#allocation5 + $0x300] sm:$0xff]  ;;  %v3988_v24 = vsub.f32 %v140_v55, %v1530_v15  ;;  %2838 = vmatpush1.bf16.msra.mxu1 %v3980_v11  ;;  %v1536_v8 = vand.u32 4294901760, %v145_v0  ;;  %v1540_v55 = vand.u32 4294901760, %v147_v53 }
  0x57   :  { %6021 = vst [vmem:[#allocation100_spill] sm:$0xff] %v3970_v38  ;;  %6022 = vst [vmem:[#allocation101_spill] sm:$0xff] %v3974_v49  ;;  %v82_v38 = vld [vmem:[#allocation5 + $0x110] sm:$0xff]  ;;  %v3990_v49 = vsub.f32 %v142_v2, %v1534_v42  ;;  %v1538_v9 = vand.u32 4294901760, %v144_v31  ;;  %2840 = vmatprep.subr.bf16.mxu1 %v3994_v14  ;;  %v1542_v42 = vand.u32 4294901760, %v146_v21  ;;  %v4010_v29 = vsub.f32 %v80_v22, %v254_v37 }
  0x58   :  { %6023 = vst [vmem:[#allocation102_spill] sm:$0xff] %v3976_v32  ;;  %6024 = vst [vmem:[#allocation103_spill] sm:$0xff] %v3978_v54  ;;  %v258_v2 = vand.u32 4294901760, %v82_v38  ;;  %v4002_v15 = vsub.f32 %v145_v0, %v1536_v8  ;;  %v260_v32 = vand.u32 4294901760, %v85_v36  ;;  %v4004_v20 = vpack.c.bf16 %v1540_v55, %v1536_v8  ;;  %v89_v8 = vld [vmem:[#allocation5 + $0x148] sm:$0xff]  ;;  %v91_v54 = vld [vmem:[#allocation5 + $0x158] sm:$0xff] }
  0x59   :  { %6025 = vst [vmem:[#allocation104_spill] sm:$0xff] %v3980_v11  ;;  %6026 = vst [vmem:[#allocation105_spill] sm:$0xff] %v3982_v28  ;;  %v264_v11 = vand.u32 4294901760, %v87_v59  ;;  %v4006_v60 = vsub.f32 %v147_v53, %v1540_v55  ;;  %v4014_v0 = vpack.c.bf16 %v1542_v42, %v1538_v9  ;;  %v150_v28 = vld [vmem:[#allocation5 + $0x330] sm:$0xff] }
  0x5a   :  { %6027 = vst [vmem:[#allocation106_spill] sm:$0xff] %v3984_v45  ;;  %6028 = vst [vmem:[#allocation107_spill] sm:$0xff] %v3986_v1  ;;  %v4008_v7 = vpack.c.bf16 %v258_v2, %v254_v37  ;;  %v84_v1 = vld [vmem:[#allocation5 + $0x120] sm:$0xff]  ;;  %v4012_v45 = vsub.f32 %v82_v38, %v258_v2  ;;  %3224 = vmatprep.subr.bf16.mxu0 %v4004_v20  ;;  %v4024_v22 = vsub.f32 %v85_v36, %v260_v32 }
  0x5b   :  { %6029 = vst [vmem:[#allocation108_spill] sm:$0xff] %v3988_v24  ;;  %6030 = vst [vmem:[#allocation109_spill] sm:$0xff] %v3990_v49  ;;  %v149_v49 = vld [vmem:[#allocation5 + $0x328] sm:$0xff]  ;;  %v151_v24 = vld [vmem:[#allocation5 + $0x338] sm:$0xff]  ;;  %v4022_v53 = vpack.c.bf16 %v264_v11, %v260_v32  ;;  %v4026_v55 = vsub.f32 %v87_v59, %v264_v11  ;;  %3226 = vmatpush1.bf16.msra.mxu0 %v4014_v0  ;;  %v262_v37 = vand.u32 4294901760, %v84_v1 }
  0x5c   :  { %6031 = vst [vmem:[#allocation110_spill] sm:$0xff] %v3994_v14  ;;  %6032 = vst [vmem:[#allocation111_spill] sm:$0xff] %v3996_v47  ;;  %v148_v47 = vld [vmem:[#allocation5 + $0x320] sm:$0xff]  ;;  %v4016_v14 = vsub.f32 %v144_v31, %v1538_v9  ;;  %2842 = vmatpush1.bf16.msra.mxu1 %v4008_v7  ;;  %v1544_v38 = vand.u32 4294901760, %v149_v49  ;;  %v1548_v31 = vand.u32 4294901760, %v151_v24 }
  0x5d   :  { %6033 = vst [vmem:[#allocation112_spill] sm:$0xff] %v3998_v26  ;;  %6034 = vst [vmem:[#allocation113_spill] sm:$0xff] %v4002_v15  ;;  %v86_v26 = vld [vmem:[#allocation5 + $0x130] sm:$0xff]  ;;  %v4018_v15 = vsub.f32 %v146_v21, %v1542_v42  ;;  %v1546_v2 = vand.u32 4294901760, %v148_v47  ;;  %2844 = vmatprep.subr.bf16.mxu1 %v4022_v53  ;;  %v1550_v42 = vand.u32 4294901760, %v150_v28  ;;  %v4038_v36 = vsub.f32 %v84_v1, %v262_v37 }
  0x5e   :  { %6035 = vst [vmem:[#allocation114_spill] sm:$0xff] %v4004_v20  ;;  %6036 = vst [vmem:[#allocation115_spill] sm:$0xff] %v4006_v60  ;;  %v266_v21 = vand.u32 4294901760, %v86_v26  ;;  %v4030_v9 = vsub.f32 %v149_v49, %v1544_v38  ;;  %v268_v20 = vand.u32 4294901760, %v89_v8  ;;  %v4032_v32 = vpack.c.bf16 %v1548_v31, %v1544_v38  ;;  %v93_v38 = vld [vmem:[#allocation5 + $0x168] sm:$0xff]  ;;  %v95_v60 = vld [vmem:[#allocation5 + $0x178] sm:$0xff] }
  0x5f   :  { %6037 = vst [vmem:[#allocation116_spill] sm:$0xff] %v4008_v7  ;;  %6038 = vst [vmem:[#allocation117_spill] sm:$0xff] %v4010_v29  ;;  %v272_v7 = vand.u32 4294901760, %v91_v54  ;;  %v4034_v59 = vsub.f32 %v151_v24, %v1548_v31  ;;  %v4042_v49 = vpack.c.bf16 %v1550_v42, %v1546_v2  ;;  %v154_v29 = vld [vmem:[#allocation5 + $0x350] sm:$0xff] }
  0x60   :  { %6039 = vst [vmem:[#allocation118_spill] sm:$0xff] %v4012_v45  ;;  %6040 = vst [vmem:[#allocation119_spill] sm:$0xff] %v4014_v0  ;;  %v4036_v11 = vpack.c.bf16 %v266_v21, %v262_v37  ;;  %v88_v0 = vld [vmem:[#allocation5 + $0x140] sm:$0xff]  ;;  %v4040_v45 = vsub.f32 %v86_v26, %v266_v21  ;;  %3228 = vmatprep.subr.bf16.mxu0 %v4032_v32  ;;  %v4052_v1 = vsub.f32 %v89_v8, %v268_v20 }
  0x61   :  { %6041 = vst [vmem:[#allocation120_spill] sm:$0xff] %v4016_v14  ;;  %6042 = vst [vmem:[#allocation121_spill] sm:$0xff] %v4018_v15  ;;  %v153_v15 = vld [vmem:[#allocation5 + $0x348] sm:$0xff]  ;;  %v155_v14 = vld [vmem:[#allocation5 + $0x358] sm:$0xff]  ;;  %v4050_v24 = vpack.c.bf16 %v272_v7, %v268_v20  ;;  %v4054_v31 = vsub.f32 %v91_v54, %v272_v7  ;;  %3230 = vmatpush1.bf16.msra.mxu0 %v4042_v49  ;;  %v270_v37 = vand.u32 4294901760, %v88_v0 }
  0x62   :  { %6043 = vst [vmem:[#allocation122_spill] sm:$0xff] %v4022_v53  ;;  %6044 = vst [vmem:[#allocation123_spill] sm:$0xff] %v4024_v22  ;;  %v152_v22 = vld [vmem:[#allocation5 + $0x340] sm:$0xff]  ;;  %v4044_v53 = vsub.f32 %v148_v47, %v1546_v2  ;;  %2846 = vmatpush1.bf16.msra.mxu1 %v4036_v11  ;;  %v1552_v26 = vand.u32 4294901760, %v153_v15  ;;  %v1556_v47 = vand.u32 4294901760, %v155_v14 }
  0x63   :  { %6045 = vst [vmem:[#allocation124_spill] sm:$0xff] %v4026_v55  ;;  %6046 = vst [vmem:[#allocation125_spill] sm:$0xff] %v4030_v9  ;;  %v90_v55 = vld [vmem:[#allocation5 + $0x150] sm:$0xff]  ;;  %v4046_v9 = vsub.f32 %v150_v28, %v1550_v42  ;;  %v1554_v21 = vand.u32 4294901760, %v152_v22  ;;  %2848 = vmatprep.subr.bf16.mxu1 %v4050_v24  ;;  %v1558_v42 = vand.u32 4294901760, %v154_v29  ;;  %v4066_v8 = vsub.f32 %v88_v0, %v270_v37 }
  0x64   :  { %6047 = vst [vmem:[#allocation126_spill] sm:$0xff] %v4032_v32  ;;  %6048 = vst [vmem:[#allocation127_spill] sm:$0xff] %v4034_v59  ;;  %v274_v28 = vand.u32 4294901760, %v90_v55  ;;  %v4058_v2 = vsub.f32 %v153_v15, %v1552_v26  ;;  %v276_v32 = vand.u32 4294901760, %v93_v38  ;;  %v4060_v20 = vpack.c.bf16 %v1556_v47, %v1552_v26  ;;  %v97_v26 = vld [vmem:[#allocation5 + $0x188] sm:$0xff]  ;;  %v99_v59 = vld [vmem:[#allocation5 + $0x198] sm:$0xff] }
  0x65   :  { %6049 = vst [vmem:[#allocation128_spill] sm:$0xff] %v4036_v11  ;;  %6050 = vst [vmem:[#allocation129_spill] sm:$0xff] %v4038_v36  ;;  %v280_v11 = vand.u32 4294901760, %v95_v60  ;;  %v4062_v54 = vsub.f32 %v155_v14, %v1556_v47  ;;  %v4070_v15 = vpack.c.bf16 %v1558_v42, %v1554_v21  ;;  %v158_v36 = vld [vmem:[#allocation5 + $0x370] sm:$0xff] }
  0x66   :  { %6051 = vst [vmem:[#allocation130_spill] sm:$0xff] %v4040_v45  ;;  %6052 = vst [vmem:[#allocation131_spill] sm:$0xff] %v4042_v49  ;;  %v4064_v7 = vpack.c.bf16 %v274_v28, %v270_v37  ;;  %v92_v49 = vld [vmem:[#allocation5 + $0x160] sm:$0xff]  ;;  %v4068_v45 = vsub.f32 %v90_v55, %v274_v28  ;;  %3232 = vmatprep.subr.bf16.mxu0 %v4060_v20  ;;  %v4080_v0 = vsub.f32 %v93_v38, %v276_v32 }
  0x67   :  { %6053 = vst [vmem:[#allocation132_spill] sm:$0xff] %v4044_v53  ;;  %6054 = vst [vmem:[#allocation133_spill] sm:$0xff] %v4046_v9  ;;  %v157_v9 = vld [vmem:[#allocation5 + $0x368] sm:$0xff]  ;;  %v159_v53 = vld [vmem:[#allocation5 + $0x378] sm:$0xff]  ;;  %v4078_v14 = vpack.c.bf16 %v280_v11, %v276_v32  ;;  %v4082_v47 = vsub.f32 %v95_v60, %v280_v11  ;;  %3234 = vmatpush1.bf16.msra.mxu0 %v4070_v15  ;;  %v278_v37 = vand.u32 4294901760, %v92_v49 }
  0x68   :  { %6055 = vst [vmem:[#allocation134_spill] sm:$0xff] %v4050_v24  ;;  %6056 = vst [vmem:[#allocation135_spill] sm:$0xff] %v4052_v1  ;;  %v156_v1 = vld [vmem:[#allocation5 + $0x360] sm:$0xff]  ;;  %v4072_v24 = vsub.f32 %v152_v22, %v1554_v21  ;;  %2850 = vmatpush1.bf16.msra.mxu1 %v4064_v7  ;;  %v1560_v55 = vand.u32 4294901760, %v157_v9  ;;  %v1564_v22 = vand.u32 4294901760, %v159_v53 }
  0x69   :  { %6057 = vst [vmem:[#allocation136_spill] sm:$0xff] %v4054_v31  ;;  %6058 = vst [vmem:[#allocation137_spill] sm:$0xff] %v4058_v2  ;;  %v94_v31 = vld [vmem:[#allocation5 + $0x170] sm:$0xff]  ;;  %v4074_v2 = vsub.f32 %v154_v29, %v1558_v42  ;;  %v1562_v28 = vand.u32 4294901760, %v156_v1  ;;  %2852 = vmatprep.subr.bf16.mxu1 %v4078_v14  ;;  %v1566_v42 = vand.u32 4294901760, %v158_v36  ;;  %v4094_v38 = vsub.f32 %v92_v49, %v278_v37 }
  0x6a   :  { %6059 = vst [vmem:[#allocation138_spill] sm:$0xff] %v4060_v20  ;;  %6060 = vst [vmem:[#allocation139_spill] sm:$0xff] %v4062_v54  ;;  %v282_v29 = vand.u32 4294901760, %v94_v31  ;;  %v4086_v21 = vsub.f32 %v157_v9, %v1560_v55  ;;  %v284_v20 = vand.u32 4294901760, %v97_v26  ;;  %v4088_v32 = vpack.c.bf16 %v1564_v22, %v1560_v55  ;;  %v101_v55 = vld [vmem:[#allocation5 + $0x1a8] sm:$0xff]  ;;  %v103_v54 = vld [vmem:[#allocation5 + $0x1b8] sm:$0xff] }
  0x6b   :  { %6061 = vst [vmem:[#allocation140_spill] sm:$0xff] %v4064_v7  ;;  %6062 = vst [vmem:[#allocation141_spill] sm:$0xff] %v4066_v8  ;;  %v288_v7 = vand.u32 4294901760, %v99_v59  ;;  %v4090_v60 = vsub.f32 %v159_v53, %v1564_v22  ;;  %v4098_v9 = vpack.c.bf16 %v1566_v42, %v1562_v28  ;;  %v162_v8 = vld [vmem:[#allocation5 + $0x390] sm:$0xff] }
  0x6c   :  { %6063 = vst [vmem:[#allocation142_spill] sm:$0xff] %v4068_v45  ;;  %6064 = vst [vmem:[#allocation143_spill] sm:$0xff] %v4070_v15  ;;  %v4092_v11 = vpack.c.bf16 %v282_v29, %v278_v37  ;;  %v96_v15 = vld [vmem:[#allocation5 + $0x180] sm:$0xff]  ;;  %v4096_v45 = vsub.f32 %v94_v31, %v282_v29  ;;  %3236 = vmatprep.subr.bf16.mxu0 %v4088_v32  ;;  %v4108_v49 = vsub.f32 %v97_v26, %v284_v20 }
  0x6d   :  { %6065 = vst [vmem:[#allocation144_spill] sm:$0xff] %v4072_v24  ;;  %6066 = vst [vmem:[#allocation145_spill] sm:$0xff] %v4074_v2  ;;  %v161_v2 = vld [vmem:[#allocation5 + $0x388] sm:$0xff]  ;;  %v163_v24 = vld [vmem:[#allocation5 + $0x398] sm:$0xff]  ;;  %v4106_v53 = vpack.c.bf16 %v288_v7, %v284_v20  ;;  %v4110_v22 = vsub.f32 %v99_v59, %v288_v7  ;;  %3238 = vmatpush1.bf16.msra.mxu0 %v4098_v9  ;;  %v286_v37 = vand.u32 4294901760, %v96_v15 }
  0x6e   :  { %6067 = vst [vmem:[#allocation146_spill] sm:$0xff] %v4078_v14  ;;  %6068 = vst [vmem:[#allocation147_spill] sm:$0xff] %v4080_v0  ;;  %v160_v0 = vld [vmem:[#allocation5 + $0x380] sm:$0xff]  ;;  %v4100_v14 = vsub.f32 %v156_v1, %v1562_v28  ;;  %2854 = vmatpush1.bf16.msra.mxu1 %v4092_v11  ;;  %v1568_v31 = vand.u32 4294901760, %v161_v2  ;;  %v1572_v1 = vand.u32 4294901760, %v163_v24 }
  0x6f   :  { %6069 = vst [vmem:[#allocation148_spill] sm:$0xff] %v4082_v47  ;;  %6070 = vst [vmem:[#allocation149_spill] sm:$0xff] %v4086_v21  ;;  %v98_v47 = vld [vmem:[#allocation5 + $0x190] sm:$0xff]  ;;  %v4102_v21 = vsub.f32 %v158_v36, %v1566_v42  ;;  %v1570_v29 = vand.u32 4294901760, %v160_v0  ;;  %2856 = vmatprep.subr.bf16.mxu1 %v4106_v53  ;;  %v1574_v42 = vand.u32 4294901760, %v162_v8  ;;  %v4122_v26 = vsub.f32 %v96_v15, %v286_v37 }
  0x70   :  { %6071 = vst [vmem:[#allocation150_spill] sm:$0xff] %v4088_v32  ;;  %6072 = vst [vmem:[#allocation151_spill] sm:$0xff] %v4090_v60  ;;  %v290_v36 = vand.u32 4294901760, %v98_v47  ;;  %v4114_v28 = vsub.f32 %v161_v2, %v1568_v31  ;;  %v292_v32 = vand.u32 4294901760, %v101_v55  ;;  %v4116_v20 = vpack.c.bf16 %v1572_v1, %v1568_v31  ;;  %v105_v31 = vld [vmem:[#allocation5 + $0x1c8] sm:$0xff]  ;;  %v107_v60 = vld [vmem:[#allocation5 + $0x1d8] sm:$0xff] }
  0x71   :  { %6073 = vst [vmem:[#allocation152_spill] sm:$0xff] %v4092_v11  ;;  %6074 = vst [vmem:[#allocation153_spill] sm:$0xff] %v4094_v38  ;;  %v296_v11 = vand.u32 4294901760, %v103_v54  ;;  %v4118_v59 = vsub.f32 %v163_v24, %v1572_v1  ;;  %v4126_v2 = vpack.c.bf16 %v1574_v42, %v1570_v29  ;;  %v166_v38 = vld [vmem:[#allocation5 + $0x3b0] sm:$0xff] }
  0x72   :  { %6075 = vst [vmem:[#allocation154_spill] sm:$0xff] %v4096_v45  ;;  %6076 = vst [vmem:[#allocation155_spill] sm:$0xff] %v4098_v9  ;;  %v4120_v7 = vpack.c.bf16 %v290_v36, %v286_v37  ;;  %v100_v9 = vld [vmem:[#allocation5 + $0x1a0] sm:$0xff]  ;;  %v4124_v45 = vsub.f32 %v98_v47, %v290_v36  ;;  %3240 = vmatprep.subr.bf16.mxu0 %v4116_v20  ;;  %v4136_v15 = vsub.f32 %v101_v55, %v292_v32 }
  0x73   :  { %6077 = vst [vmem:[#allocation156_spill] sm:$0xff] %v4100_v14  ;;  %6078 = vst [vmem:[#allocation157_spill] sm:$0xff] %v4102_v21  ;;  %v165_v21 = vld [vmem:[#allocation5 + $0x3a8] sm:$0xff]  ;;  %v167_v14 = vld [vmem:[#allocation5 + $0x3b8] sm:$0xff]  ;;  %v4134_v24 = vpack.c.bf16 %v296_v11, %v292_v32  ;;  %v4138_v1 = vsub.f32 %v103_v54, %v296_v11  ;;  %3242 = vmatpush1.bf16.msra.mxu0 %v4126_v2  ;;  %v294_v37 = vand.u32 4294901760, %v100_v9 }
  0x74   :  { %6079 = vst [vmem:[#allocation158_spill] sm:$0xff] %v4106_v53  ;;  %6080 = vst [vmem:[#allocation159_spill] sm:$0xff] %v4108_v49  ;;  %v164_v49 = vld [vmem:[#allocation5 + $0x3a0] sm:$0xff]  ;;  %v4128_v53 = vsub.f32 %v160_v0, %v1570_v29  ;;  %2858 = vmatpush1.bf16.msra.mxu1 %v4120_v7  ;;  %v1576_v47 = vand.u32 4294901760, %v165_v21  ;;  %v1580_v0 = vand.u32 4294901760, %v167_v14 }
  0x75   :  { %6081 = vst [vmem:[#allocation160_spill] sm:$0xff] %v4110_v22  ;;  %6082 = vst [vmem:[#allocation161_spill] sm:$0xff] %v4114_v28  ;;  %v102_v22 = vld [vmem:[#allocation5 + $0x1b0] sm:$0xff]  ;;  %v4130_v28 = vsub.f32 %v162_v8, %v1574_v42  ;;  %v1578_v36 = vand.u32 4294901760, %v164_v49  ;;  %2860 = vmatprep.subr.bf16.mxu1 %v4134_v24  ;;  %v1582_v42 = vand.u32 4294901760, %v166_v38  ;;  %v4150_v55 = vsub.f32 %v100_v9, %v294_v37 }
  0x76   :  { %6083 = vst [vmem:[#allocation162_spill] sm:$0xff] %v4116_v20  ;;  %6084 = vst [vmem:[#allocation163_spill] sm:$0xff] %v4118_v59  ;;  %v298_v8 = vand.u32 4294901760, %v102_v22  ;;  %v4142_v29 = vsub.f32 %v165_v21, %v1576_v47  ;;  %v300_v20 = vand.u32 4294901760, %v105_v31  ;;  %v4144_v32 = vpack.c.bf16 %v1580_v0, %v1576_v47  ;;  %v109_v47 = vld [vmem:[#allocation5 + $0x1e8] sm:$0xff]  ;;  %v111_v59 = vld [vmem:[#allocation5 + $0x1f8] sm:$0xff] }
  0x77   :  { %6085 = vst [vmem:[#allocation164_spill] sm:$0xff] %v4120_v7  ;;  %6086 = vst [vmem:[#allocation165_spill] sm:$0xff] %v4122_v26  ;;  %v304_v7 = vand.u32 4294901760, %v107_v60  ;;  %v4146_v54 = vsub.f32 %v167_v14, %v1580_v0  ;;  %v4154_v21 = vpack.c.bf16 %v1582_v42, %v1578_v36  ;;  %v170_v26 = vld [vmem:[#allocation5 + $0x3d0] sm:$0xff] }
  0x78   :  { %6087 = vst [vmem:[#allocation166_spill] sm:$0xff] %v4124_v45  ;;  %6088 = vst [vmem:[#allocation167_spill] sm:$0xff] %v4126_v2  ;;  %v4148_v11 = vpack.c.bf16 %v298_v8, %v294_v37  ;;  %v104_v2 = vld [vmem:[#allocation5 + $0x1c0] sm:$0xff]  ;;  %v4152_v45 = vsub.f32 %v102_v22, %v298_v8  ;;  %3244 = vmatprep.subr.bf16.mxu0 %v4144_v32  ;;  %v4164_v9 = vsub.f32 %v105_v31, %v300_v20 }
  0x79   :  { %6089 = vst [vmem:[#allocation168_spill] sm:$0xff] %v4128_v53  ;;  %6090 = vst [vmem:[#allocation169_spill] sm:$0xff] %v4130_v28  ;;  %v169_v28 = vld [vmem:[#allocation5 + $0x3c8] sm:$0xff]  ;;  %v171_v53 = vld [vmem:[#allocation5 + $0x3d8] sm:$0xff]  ;;  %v4162_v14 = vpack.c.bf16 %v304_v7, %v300_v20  ;;  %v4166_v0 = vsub.f32 %v107_v60, %v304_v7  ;;  %3246 = vmatpush1.bf16.msra.mxu0 %v4154_v21  ;;  %v302_v37 = vand.u32 4294901760, %v104_v2 }
  0x7a   :  { %6091 = vst [vmem:[#allocation170_spill] sm:$0xff] %v4134_v24  ;;  %6092 = vst [vmem:[#allocation171_spill] sm:$0xff] %v4136_v15  ;;  %v168_v15 = vld [vmem:[#allocation5 + $0x3c0] sm:$0xff]  ;;  %v4156_v24 = vsub.f32 %v164_v49, %v1578_v36  ;;  %2862 = vmatpush1.bf16.msra.mxu1 %v4148_v11  ;;  %v1584_v22 = vand.u32 4294901760, %v169_v28  ;;  %v1588_v49 = vand.u32 4294901760, %v171_v53 }
  0x7b   :  { %6093 = vst [vmem:[#allocation172_spill] sm:$0xff] %v4138_v1  ;;  %6094 = vst [vmem:[#allocation173_spill] sm:$0xff] %v4142_v29  ;;  %v106_v1 = vld [vmem:[#allocation5 + $0x1d0] sm:$0xff]  ;;  %v4158_v29 = vsub.f32 %v166_v38, %v1582_v42  ;;  %v1586_v8 = vand.u32 4294901760, %v168_v15  ;;  %2864 = vmatprep.subr.bf16.mxu1 %v4162_v14  ;;  %v1590_v42 = vand.u32 4294901760, %v170_v26  ;;  %v4178_v31 = vsub.f32 %v104_v2, %v302_v37 }
  0x7c   :  { %6095 = vst [vmem:[#allocation174_spill] sm:$0xff] %v4144_v32  ;;  %6096 = vst [vmem:[#allocation175_spill] sm:$0xff] %v4146_v54  ;;  %v306_v38 = vand.u32 4294901760, %v106_v1  ;;  %v4170_v36 = vsub.f32 %v169_v28, %v1584_v22  ;;  %v308_v32 = vand.u32 4294901760, %v109_v47  ;;  %v4172_v20 = vpack.c.bf16 %v1588_v49, %v1584_v22  ;;  %v45_v22 = vld [vmem:[#allocation2 + $0x8] sm:$0xff] }
  0x7d   :  { %6097 = vst [vmem:[#allocation176_spill] sm:$0xff] %v4148_v11  ;;  %6098 = vst [vmem:[#allocation177_spill] sm:$0xff] %v4150_v55  ;;  %v312_v11 = vand.u32 4294901760, %v111_v59  ;;  %v4174_v60 = vsub.f32 %v171_v53, %v1588_v49  ;;  %v4182_v28 = vpack.c.bf16 %v1590_v42, %v1586_v8  ;;  %v174_v55 = vld [vmem:[#allocation5 + $0x3f0] sm:$0xff] }
  0x7e   :  { %6099 = vst [vmem:[#allocation178_spill] sm:$0xff] %v4152_v45  ;;  %6100 = vst [vmem:[#allocation179_spill] sm:$0xff] %v4154_v21  ;;  %v4176_v7 = vpack.c.bf16 %v306_v38, %v302_v37  ;;  %v108_v21 = vld [vmem:[#allocation5 + $0x1e0] sm:$0xff]  ;;  %v4180_v45 = vsub.f32 %v106_v1, %v306_v38  ;;  %3248 = vmatprep.subr.bf16.mxu0 %v4172_v20  ;;  %v4192_v2 = vsub.f32 %v109_v47, %v308_v32 }
  0x7f   :  { %6101 = vst [vmem:[#allocation180_spill] sm:$0xff] %v4156_v24  ;;  %6102 = vst [vmem:[#allocation181_spill] sm:$0xff] %v4158_v29  ;;  %v173_v29 = vld [vmem:[#allocation5 + $0x3e8] sm:$0xff]  ;;  %v175_v24 = vld [vmem:[#allocation5 + $0x3f8] sm:$0xff]  ;;  %v4190_v53 = vpack.c.bf16 %v312_v11, %v308_v32  ;;  %v4194_v49 = vsub.f32 %v111_v59, %v312_v11  ;;  %3250 = vmatpush1.bf16.msra.mxu0 %v4182_v28 }
  0x80   :  { %6103 = vst [vmem:[#allocation182_spill] sm:$0xff] %v4162_v14  ;;  %6104 = vst [vmem:[#allocation183_spill] sm:$0xff] %v4164_v9  ;;  %v172_v9 = vld [vmem:[#allocation5 + $0x3e0] sm:$0xff]  ;;  %v4184_v14 = vsub.f32 %v168_v15, %v1586_v8  ;;  %2866 = vmatpush1.bf16.msra.mxu1 %v4176_v7  ;;  %v1592_v1 = vand.u32 4294901760, %v173_v29  ;;  %v1596_v37 = vand.u32 4294901760, %v175_v24  ;;  %v310_v15 = vand.u32 4294901760, %v108_v21 }
  0x81   :  { %6105 = vst [vmem:[#allocation184_spill] sm:$0xff] %v4166_v0  ;;  %6106 = vst [vmem:[#allocation185_spill] sm:$0xff] %v4170_v36  ;;  %v110_v0 = vld [vmem:[#allocation5 + $0x1f0] sm:$0xff]  ;;  %v4186_v36 = vsub.f32 %v170_v26, %v1590_v42  ;;  %v1594_v26 = vand.u32 4294901760, %v172_v9  ;;  %2868 = vmatprep.subr.bf16.mxu1 %v4190_v53  ;;  %v1598_v42 = vand.u32 4294901760, %v174_v55  ;;  %v47_v32 = vld [vmem:[#allocation2 + $0x18] sm:$0xff] }
  0x82   :  { %6107 = vst [vmem:[#allocation186_spill] sm:$0xff] %v4172_v20  ;;  %6108 = vst [vmem:[#allocation187_spill] sm:$0xff] %v4174_v60  ;;  %v314_v38 = vand.u32 4294901760, %v110_v0  ;;  %v4198_v8 = vsub.f32 %v173_v29, %v1592_v1  ;;  %v4200_v20 = vand.u32 4294901760, %v45_v22  ;;  %v4203_v47 = vpack.c.bf16 %v1596_v37, %v1592_v1 }
  0x83   :  { %6109 = vst [vmem:[#allocation188_spill] sm:$0xff] %v4176_v7  ;;  %6110 = vst [vmem:[#allocation189_spill] sm:$0xff] %v4178_v31  ;;  %v5632_v7 = vand.u32 4294901760, %v3773_v16  ;;  %v4205_v59 = vsub.f32 %v175_v24, %v1596_v37  ;;  %v4215_v29 = vsub.f32 %v172_v9, %v1594_v26  ;;  %v4228_v1 = vand.u32 4294901760, %v47_v32 }
  0x84   :  { %6111 = vst [vmem:[#allocation190_spill] sm:$0xff] %v4180_v45  ;;  %6112 = vst [vmem:[#allocation191_spill] sm:$0xff] %v4182_v28  ;;  %v4207_v11 = vpack.c.bf16 %v314_v38, %v310_v15  ;;  %v4209_v28 = vsub.f32 %v108_v21, %v310_v15  ;;  %3252 = vmatprep.subr.bf16.mxu0 %v4203_v47  ;;  %v4222_v24 = vsub.f32 %v45_v22, %v4200_v20 }
  0x85   :  { %6113 = vst [vmem:[#allocation192_spill] sm:$0xff] %v4184_v14  ;;  %6114 = vst [vmem:[#allocation193_spill] sm:$0xff] %v4186_v36  ;;  %v336_v21 = vsub.f32 %v3773_v16, %v5632_v7  ;;  %v5647_v9 = vand.u32 4294901760, %v3781_v23 }
  0x86   :  { %6115 = vst [vmem:[#allocation194_spill] sm:$0xff] %v4190_v53  ;;  %6116 = vst [vmem:[#allocation195_spill] sm:$0xff] %v4192_v2  ;;  %v4211_v2 = vsub.f32 %v110_v0, %v314_v38  ;;  %v4213_v53 = vpack.c.bf16 %v1598_v42, %v1594_v26  ;;  %2870 = vmatpush1.bf16.msra.mxu1 %v4207_v11  ;;  %v5635_v0 = vand.u32 4294901760, %v3775_v17 }
  0x87   :  { %6117 = vst [vmem:[#allocation196_spill] sm:$0xff] %v4194_v49  ;;  %6118 = vst [vmem:[#allocation197_spill] sm:$0xff] %v4198_v8  ;;  %v44_v49 = vld [vmem:[#allocation2] sm:$0xff]  ;;  %v4217_v8 = vsub.f32 %v174_v55, %v1598_v42  ;;  %v5640_v55 = vand.u32 4294901760, %v3777_v18  ;;  %v337_v38 = vand.u32 4294901760, %v336_v21  ;;  %v4241_v42 = vsub.f32 %v47_v32, %v4228_v1 }
  0x88   :  { %6119 = vst [vmem:[#allocation198_spill] sm:$0xff] %v4200_v20  ;;  %6120 = vst [vmem:[#allocation199_spill] sm:$0xff] %v4203_v47  ;;  %3254 = vmatpush1.bf16.msra.mxu0 %v4213_v53  ;;  %v4233_v37 = vand.u32 4294901760, %v44_v49  ;;  %v348_v26 = vsub.f32 %v3775_v17, %v5635_v0  ;;  %v6133_v21 = vand.u32 4294901760, %v3785_v25  ;;  %v6134_v0 = vand.u32 4294901760, %v4222_v24 }
  0x89   :  { %6121 = vst [vmem:[#allocation200_spill] sm:$0xff] %v4205_v59  ;;  %6122 = vst [vmem:[#allocation201_spill] sm:$0xff] %v4207_v11  ;;  %v1620_v7 = vsub.f32 %v3777_v18, %v5640_v55  ;;  %v5654_v47 = vand.u32 4294901760, %v4241_v42  ;;  %v5661_v55 = vand.u32 4294901760, %v3788_v27  ;;  %v46_v18 = vld [vmem:[#allocation2 + $0x10] sm:$0xff] }
  0x8a   :  { %6123 = vst [vmem:[#allocation202_spill] sm:$0xff] %v4209_v28  ;;  %6124 = vst [vmem:[#allocation203_spill] sm:$0xff] %v4211_v2  ;;  %v4250_v15 = vsub.f32 %v44_v49, %v4233_v37  ;;  %v342_v22 = vsub.f32 %v3785_v25, %v6133_v21  ;;  %v319_v32 = vsub.f32 %v4222_v24, %v6134_v0  ;;  %v349_v11 = vand.u32 4294901760, %v348_v26 }
  0x8b   :  { %6125 = vst [vmem:[#allocation204_spill] sm:$0xff] %v4213_v53  ;;  %6126 = vst [vmem:[#allocation205_spill] sm:$0xff] %v4215_v29  ;;  %v1632_v53 = vsub.f32 %v3781_v23, %v5647_v9  ;;  %v1621_v17 = vand.u32 4294901760, %v1620_v7  ;;  %v1603_v21 = vsub.f32 %v4241_v42, %v5654_v47  ;;  %v354_v0 = vsub.f32 %v3788_v27, %v5661_v55 }
  0x8c   :  { %6127 = vst [vmem:[#allocation206_spill] sm:$0xff] %v4217_v8  ;;  %6128 = vst [vmem:[#allocation207_spill] sm:$0xff] %v4222_v24  ;;  %v5655_v9 = vand.u32 4294901760, %v4250_v15  ;;  %v343_v49 = vand.u32 4294901760, %v342_v22  ;;  %v2871_v23 = vpack.c.bf16 %v349_v11, %v337_v38  ;;  %v4270_v7 = vand.u32 4294901760, %v46_v18 }
  0x8d   :  { %6129 = vst [vmem:[#allocation208_spill] sm:$0xff] %v4228_v1  ;;  %6130 = vst [vmem:[#allocation209_spill] sm:$0xff] %v4233_v37  ;;  %v1633_v16 = vand.u32 4294901760, %v1632_v53  ;;  %v320_v37 = vand.u32 4294901760, %v319_v32  ;;  %v5657_v53 = vand.u32 4294901760, %v3794_v39  ;;  %v1604_v11 = vand.u32 4294901760, %v1603_v21 }
  0x8e   :  { %6131 = vst [vmem:[#allocation210_spill] sm:$0xff] %v4241_v42  ;;  %6132 = vst [vmem:[#allocation211_spill] sm:$0xff] %v4250_v15  ;;  %v325_v24 = vsub.f32 %v4250_v15, %v5655_v9  ;;  %2872 = vmatprep.subr.bf16.mxu1 %v2871_v23  ;;  %v355_v22 = vand.u32 4294901760, %v354_v0  ;;  %v5656_v38 = vand.u32 4294901760, %v3796_v40  ;;  %v5660_v32 = vand.u32 4294901760, %v3798_v41 }
  0x8f   :  { %v3255_v26 = vpack.c.bf16 %v1633_v16, %v1621_v17  ;;  %6135 = vst [vmem:[#allocation212_spill] sm:$0xff] %v4270_v7  ;;  %321 = vmatprep.mubr.f32.mxu1 %v320_v37  ;;  %v4276_v16 = vsub.f32 %v46_v18, %v4270_v7  ;;  %v1626_v17 = vsub.f32 %v3794_v39, %v5657_v53  ;;  %v5658_v9 = vand.u32 4294901760, %v3802_v46 }
  0x90   :  { %v326_v47 = vand.u32 4294901760, %v325_v24  ;;  %1605 = vmatprep.mubr.f32.mxu0 %v1604_v11  ;;  %v2873_v37 = vpack.c.bf16 %v355_v22, %v343_v49  ;;  %v1638_v23 = vsub.f32 %v3796_v40, %v5656_v38  ;;  %v360_v21 = vsub.f32 %v3798_v41, %v5660_v32 }
  0x91   :  { %3256 = vmatprep.subr.bf16.mxu0 %v3255_v26  ;;  %6136 = vst [vmem:[#allocation213_spill] sm:$0xff] %v4276_v16  ;;  %v5659_v24 = vand.u32 4294901760, %v3806_v48  ;;  %v5666_v18 = vand.u32 4294901760, %v4276_v16  ;;  %v1627_v0 = vand.u32 4294901760, %v1626_v17  ;;  %v372_v26 = vsub.f32 %v3802_v46, %v5658_v9 }
  0x92   :  { %327 = vmatmul.mubr.f32.vlgmr.msra.gmra.mrb[0].mxu1 %v326_v47  ;;  %v5667_v49 = vand.u32 4294901760, %v3809_v50  ;;  %v1639_v11 = vand.u32 4294901760, %v1638_v23  ;;  %v361_v22 = vand.u32 4294901760, %v360_v21  ;;  %v5668_v53 = vand.u32 4294901760, %v3811_v52 }
  0x93   :  { %2874 = vmatpush1.bf16.msra.mxu1 %v2873_v37  ;;  %v1644_v38 = vsub.f32 %v3806_v48, %v5659_v24  ;;  %718 = vmatprep.mubr.f32.mxu1 %v4200_v20  ;;  %v1609_v47 = vsub.f32 %v4276_v16, %v5666_v18  ;;  %v373_v17 = vand.u32 4294901760, %v372_v26  ;;  %v5675_v37 = vand.u32 4294901760, %v3817_v61 }
  0x94   :  { %v1656_v9 = vsub.f32 %v3809_v50, %v5667_v49  ;;  %v3257_v23 = vpack.c.bf16 %v1639_v11, %v1627_v0  ;;  %v366_v24 = vsub.f32 %v3811_v52, %v5668_v53  ;;  %v5669_v32 = vand.u32 4294901760, %v3819_v62 }
  0x95   :  { %v1645_v21 = vand.u32 4294901760, %v1644_v38  ;;  %v1610_v55 = vand.u32 4294901760, %v1609_v47  ;;  %v2875_v20 = vpack.c.bf16 %v373_v17, %v361_v22  ;;  %v378_v26 = vsub.f32 %v3817_v61, %v5675_v37 }
  0x96   :  { %v1657_v15 = vand.u32 4294901760, %v1656_v9  ;;  %v367_v18 = vand.u32 4294901760, %v366_v24  ;;  %v1650_v49 = vsub.f32 %v3819_v62, %v5669_v32  ;;  %v5670_v38 = vand.u32 4294901760, %v3823_v4 }
  0x97   :  { %v5673_v0 = vand.u32 4294901760, %v3827_v6  ;;  %1611 = vmatmul.mubr.f32.vlgmr.msra.gmra.mrb[0].mxu0 %v1610_v55  ;;  %2876 = vmatprep.subr.bf16.mxu1 %v2875_v20  ;;  %v379_v53 = vand.u32 4294901760, %v378_v26  ;;  %v5671_v22 = vand.u32 4294901760, %v3830_v10  ;;  %v5672_v9 = vand.u32 4294901760, %v3834_v12 }
  0x98   :  { %v3259_v11 = vpack.c.bf16 %v1657_v15, %v1645_v21  ;;  %3258 = vmatpush1.bf16.msra.mxu0 %v3257_v23  ;;  %v1651_v47 = vand.u32 4294901760, %v1650_v49  ;;  %v1662_v24 = vsub.f32 %v3823_v4, %v5670_v38  ;;  %v5674_v32 = vand.u32 4294901760, %v3836_v13  ;;  %2002 = vmatprep.mubr.f32.mxu0 %v4228_v1 }
  0x99   :  { %v384_v17 = vsub.f32 %v3827_v6, %v5673_v0  ;;  %v2877_v20 = vpack.c.bf16 %v379_v53, %v367_v18  ;;  %v396_v55 = vsub.f32 %v3830_v10, %v5671_v22  ;;  %v1668_v15 = vsub.f32 %v3834_v12, %v5672_v9 }
  0x9a   :  { %3260 = vmatprep.subr.bf16.mxu0 %v3259_v11  ;;  %v5676_v49 = vand.u32 4294901760, %v3843_v33  ;;  %v1663_v23 = vand.u32 4294901760, %v1662_v24  ;;  %v1680_v26 = vsub.f32 %v3836_v13, %v5674_v32  ;;  %v5683_v38 = vand.u32 4294901760, %v3845_v34 }
  0x9b   :  { %v385_v21 = vand.u32 4294901760, %v384_v17  ;;  %2878 = vmatpush1.bf16.msra.mxu1 %v2877_v20  ;;  %v397_v53 = vand.u32 4294901760, %v396_v55  ;;  %v1669_v18 = vand.u32 4294901760, %v1668_v15  ;;  %v5678_v22 = vand.u32 4294901760, %v3849_v43 }
  0x9c   :  { %v390_v11 = vsub.f32 %v3843_v33, %v5676_v49  ;;  %v3261_v9 = vpack.c.bf16 %v1663_v23, %v1651_v47  ;;  %v1681_v0 = vand.u32 4294901760, %v1680_v26  ;;  %v402_v24 = vsub.f32 %v3845_v34, %v5683_v38 }
  0x9d   :  { %v5677_v17 = vand.u32 4294901760, %v3851_v44  ;;  %v2879_v32 = vpack.c.bf16 %v397_v53, %v385_v21  ;;  %v1674_v20 = vsub.f32 %v3849_v43, %v5678_v22  ;;  %v5681_v55 = vand.u32 4294901760, %v3855_v51 }
  0x9e   :  { %v391_v37 = vand.u32 4294901760, %v390_v11  ;;  %3262 = vmatpush1.bf16.msra.mxu0 %v3261_v9  ;;  %v3263_v15 = vpack.c.bf16 %v1681_v0, %v1669_v18  ;;  %v403_v49 = vand.u32 4294901760, %v402_v24  ;;  %v5679_v23 = vand.u32 4294901760, %v3859_v56 }
  0x9f   :  { %v1686_v47 = vsub.f32 %v3851_v44, %v5677_v17  ;;  %2880 = vmatprep.subr.bf16.mxu1 %v2879_v32  ;;  %v1675_v26 = vand.u32 4294901760, %v1674_v20  ;;  %v408_v21 = vsub.f32 %v3855_v51, %v5681_v55  ;;  %v5680_v53 = vand.u32 4294901760, %v3863_v58 }
  0xa0   :  { %v5682_v11 = vand.u32 4294901760, %v3866_v63  ;;  %3264 = vmatprep.subr.bf16.mxu0 %v3263_v15  ;;  %v2881_v9 = vpack.c.bf16 %v403_v49, %v391_v37  ;;  %v420_v18 = vsub.f32 %v3859_v56, %v5679_v23  ;;  %v5686_v24 = vand.u32 4294901760, %v3869_v19 }
  0xa1   :  { %v1687_v0 = vand.u32 4294901760, %v1686_v47  ;;  %v409_v17 = vand.u32 4294901760, %v408_v21  ;;  %v1692_v32 = vsub.f32 %v3863_v58, %v5680_v53  ;;  %v5684_v22 = vand.u32 4294901760, %v3873_v35 }
  0xa2   :  { %v1704_v20 = vsub.f32 %v3866_v63, %v5682_v11  ;;  %2882 = vmatpush1.bf16.msra.mxu1 %v2881_v9  ;;  %v421_v49 = vand.u32 4294901760, %v420_v18  ;;  %v414_v15 = vsub.f32 %v3869_v19, %v5686_v24  ;;  %v5685_v47 = vand.u32 4294901760, %v3877_v30 }
  0xa3   :  { %v3265_v37 = vpack.c.bf16 %v1687_v0, %v1675_v26  ;;  %v1693_v21 = vand.u32 4294901760, %v1692_v32  ;;  %v426_v53 = vsub.f32 %v3873_v35, %v5684_v22  ;;  %v5687_v55 = vand.u32 4294901760, %v3879_v57 }
  0xa4   :  { %v1705_v23 = vand.u32 4294901760, %v1704_v20  ;;  %v2883_v11 = vpack.c.bf16 %v421_v49, %v409_v17  ;;  %v415_v38 = vand.u32 4294901760, %v414_v15  ;;  %v1698_v26 = vsub.f32 %v3877_v30, %v5685_v47  ;;  %v6138_v15 = vld [vmem:[#allocation67_spill] sm:$0xff] }
  0xa5   :  { %3266 = vmatpush1.bf16.msra.mxu0 %v3265_v37  ;;  %v5690_v9 = vand.u32 4294901760, %v3883_v3  ;;  %v427_v18 = vand.u32 4294901760, %v426_v53  ;;  %v1710_v32 = vsub.f32 %v3879_v57, %v5687_v55  ;;  %v5693_v20 = vand.u32 4294901760, %v3885_v5  ;;  %v6137_v37 = vld [vmem:[#allocation65_spill] sm:$0xff] }
  0xa6   :  { %v3267_v0 = vpack.c.bf16 %v1705_v23, %v1693_v21  ;;  %2884 = vmatprep.subr.bf16.mxu1 %v2883_v11  ;;  %v1699_v22 = vand.u32 4294901760, %v1698_v26  ;;  %v5696_v49 = vand.u32 4294901760, %v6137_v37  ;;  %v5700_v47 = vand.u32 4294901760, %v6138_v15  ;;  %v6139_v21 = vld [vmem:[#allocation69_spill] sm:$0xff] }
  0xa7   :  { %v432_v17 = vsub.f32 %v3883_v3, %v5690_v9  ;;  %v2885_v24 = vpack.c.bf16 %v427_v18, %v415_v38  ;;  %v1711_v23 = vand.u32 4294901760, %v1710_v32  ;;  %v444_v53 = vsub.f32 %v3885_v5, %v5693_v20  ;;  %v6140_v9 = vld [vmem:[#allocation70_spill] sm:$0xff]  ;;  %v6141_v32 = vld [vmem:[#allocation72_spill] sm:$0xff] }
  0xa8   :  { %3268 = vmatprep.subr.bf16.mxu0 %v3267_v0  ;;  %v5702_v55 = vand.u32 4294901760, %v6139_v21  ;;  %v1716_v11 = vsub.f32 %v6137_v37, %v5696_v49  ;;  %v1728_v26 = vsub.f32 %v6138_v15, %v5700_v47  ;;  %v5704_v16 = vand.u32 4294901760, %v6140_v9  ;;  %v6142_v37 = vld [vmem:[#allocation73_spill] sm:$0xff] }
  0xa9   :  { %v433_v1 = vand.u32 4294901760, %v432_v17  ;;  %2886 = vmatpush1.bf16.msra.mxu1 %v2885_v24  ;;  %v3269_v38 = vpack.c.bf16 %v1711_v23, %v1699_v22  ;;  %v445_v0 = vand.u32 4294901760, %v444_v53  ;;  %v5705_v20 = vand.u32 4294901760, %v6141_v32  ;;  %v6143_v24 = vld [vmem:[#allocation75_spill] sm:$0xff] }
  0xaa   :  { %v438_v18 = vsub.f32 %v6139_v21, %v5702_v55  ;;  %v1717_v17 = vand.u32 4294901760, %v1716_v11  ;;  %v1729_v42 = vand.u32 4294901760, %v1728_v26  ;;  %v450_v49 = vsub.f32 %v6140_v9, %v5704_v16  ;;  %v6144_v26 = vld [vmem:[#allocation76_spill] sm:$0xff] }
  0xab   :  { %v5707_v57 = vand.u32 4294901760, %v6142_v37  ;;  %3270 = vmatpush1.bf16.msra.mxu0 %v3269_v38  ;;  %v2887_v47 = vpack.c.bf16 %v445_v0, %v433_v1  ;;  %v1722_v22 = vsub.f32 %v6141_v32, %v5705_v20  ;;  %v5709_v23 = vand.u32 4294901760, %v6143_v24  ;;  %v6145_v38 = vld [vmem:[#allocation77_spill] sm:$0xff] }
  0xac   :  { %v439_v15 = vand.u32 4294901760, %v438_v18  ;;  %v3271_v53 = vpack.c.bf16 %v1729_v42, %v1717_v17  ;;  %v451_v55 = vand.u32 4294901760, %v450_v49  ;;  %v5711_v21 = vand.u32 4294901760, %v6144_v26  ;;  %v6146_v18 = vld [vmem:[#allocation79_spill] sm:$0xff]  ;;  %v6147_v17 = vld [vmem:[#allocation81_spill] sm:$0xff] }
  0xad   :  { %v1734_v11 = vsub.f32 %v6142_v37, %v5707_v57  ;;  %2888 = vmatprep.subr.bf16.mxu1 %v2887_v47  ;;  %v1723_v16 = vand.u32 4294901760, %v1722_v22  ;;  %v456_v1 = vsub.f32 %v6143_v24, %v5709_v23  ;;  %v5713_v0 = vand.u32 4294901760, %v6145_v38  ;;  %v6148_v23 = vld [vmem:[#allocation82_spill] sm:$0xff] }
  0xae   :  { %v5716_v20 = vand.u32 4294901760, %v6146_v18  ;;  %3272 = vmatprep.subr.bf16.mxu0 %v3271_v53  ;;  %v2889_v32 = vpack.c.bf16 %v451_v55, %v439_v15  ;;  %v468_v49 = vsub.f32 %v6144_v26, %v5711_v21  ;;  %v5718_v57 = vand.u32 4294901760, %v6147_v17 }
  0xaf   :  { %v1735_v42 = vand.u32 4294901760, %v1734_v11  ;;  %v457_v37 = vand.u32 4294901760, %v456_v1  ;;  %v1740_v47 = vsub.f32 %v6145_v38, %v5713_v0  ;;  %v5720_v24 = vand.u32 4294901760, %v6148_v23  ;;  %v6149_v11 = vld [vmem:[#allocation84_spill] sm:$0xff]  ;;  %v6150_v38 = vld [vmem:[#allocation85_spill] sm:$0xff] }
  0xb0   :  { %v1752_v22 = vsub.f32 %v6146_v18, %v5716_v20  ;;  %2890 = vmatpush1.bf16.msra.mxu1 %v2889_v32  ;;  %v469_v15 = vand.u32 4294901760, %v468_v49  ;;  %v462_v53 = vsub.f32 %v6147_v17, %v5718_v57  ;;  %v5721_v21 = vand.u32 4294901760, %v6149_v11  ;;  %v6151_v32 = vld [vmem:[#allocation87_spill] sm:$0xff] }
  0xb1   :  { %v3273_v55 = vpack.c.bf16 %v1735_v42, %v1723_v16  ;;  %v1741_v1 = vand.u32 4294901760, %v1740_v47  ;;  %v474_v0 = vsub.f32 %v6148_v23, %v5720_v24  ;;  %v5723_v9 = vand.u32 4294901760, %v6150_v38 }
  0xb2   :  { %v1753_v26 = vand.u32 4294901760, %v1752_v22  ;;  %v2891_v20 = vpack.c.bf16 %v469_v15, %v457_v37  ;;  %v463_v18 = vand.u32 4294901760, %v462_v53  ;;  %v1746_v16 = vsub.f32 %v6149_v11, %v5721_v21  ;;  %v6152_v22 = vld [vmem:[#allocation88_spill] sm:$0xff]  ;;  %v6154_v53 = vld [vmem:[#allocation91_spill] sm:$0xff] }
  0xb3   :  { %3274 = vmatpush1.bf16.msra.mxu0 %v3273_v55  ;;  %v5725_v42 = vand.u32 4294901760, %v6151_v32  ;;  %v475_v57 = vand.u32 4294901760, %v474_v0  ;;  %v1758_v47 = vsub.f32 %v6150_v38, %v5723_v9  ;;  %v5727_v17 = vand.u32 4294901760, %v6152_v22  ;;  %v6153_v55 = vld [vmem:[#allocation89_spill] sm:$0xff] }
  0xb4   :  { %v3275_v49 = vpack.c.bf16 %v1753_v26, %v1741_v1  ;;  %2892 = vmatprep.subr.bf16.mxu1 %v2891_v20  ;;  %v1747_v24 = vand.u32 4294901760, %v1746_v16  ;;  %v5729_v15 = vand.u32 4294901760, %v6153_v55  ;;  %v5732_v21 = vand.u32 4294901760, %v6154_v53  ;;  %v6155_v1 = vld [vmem:[#allocation93_spill] sm:$0xff] }
  0xb5   :  { %v480_v37 = vsub.f32 %v6151_v32, %v5725_v42  ;;  %v2893_v11 = vpack.c.bf16 %v475_v57, %v463_v18  ;;  %v1759_v26 = vand.u32 4294901760, %v1758_v47  ;;  %v492_v0 = vsub.f32 %v6152_v22, %v5727_v17  ;;  %v6156_v42 = vld [vmem:[#allocation94_spill] sm:$0xff]  ;;  %v6157_v47 = vld [vmem:[#allocation96_spill] sm:$0xff] }
  0xb6   :  { %3276 = vmatprep.subr.bf16.mxu0 %v3275_v49  ;;  %v5734_v9 = vand.u32 4294901760, %v6155_v1  ;;  %v1764_v20 = vsub.f32 %v6153_v55, %v5729_v15  ;;  %v1776_v16 = vsub.f32 %v6154_v53, %v5732_v21  ;;  %v5736_v32 = vand.u32 4294901760, %v6156_v42  ;;  %v6158_v55 = vld [vmem:[#allocation97_spill] sm:$0xff] }
  0xb7   :  { %v481_v38 = vand.u32 4294901760, %v480_v37  ;;  %2894 = vmatpush1.bf16.msra.mxu1 %v2893_v11  ;;  %v3277_v57 = vpack.c.bf16 %v1759_v26, %v1747_v24  ;;  %v493_v18 = vand.u32 4294901760, %v492_v0  ;;  %v5737_v17 = vand.u32 4294901760, %v6157_v47  ;;  %v6159_v11 = vld [vmem:[#allocation99_spill] sm:$0xff] }
  0xb8   :  { %v486_v49 = vsub.f32 %v6155_v1, %v5734_v9  ;;  %v1765_v37 = vand.u32 4294901760, %v1764_v20  ;;  %v1777_v22 = vand.u32 4294901760, %v1776_v16  ;;  %v498_v15 = vsub.f32 %v6156_v42, %v5736_v32  ;;  %v6160_v16 = vld [vmem:[#allocation100_spill] sm:$0xff] }
  0xb9   :  { %v5739_v23 = vand.u32 4294901760, %v6158_v55  ;;  %3278 = vmatpush1.bf16.msra.mxu0 %v3277_v57  ;;  %v2895_v21 = vpack.c.bf16 %v493_v18, %v481_v38  ;;  %v1770_v24 = vsub.f32 %v6157_v47, %v5737_v17  ;;  %v5741_v26 = vand.u32 4294901760, %v6159_v11  ;;  %v6161_v57 = vld [vmem:[#allocation101_spill] sm:$0xff] }
  0xba   :  { %v487_v53 = vand.u32 4294901760, %v486_v49  ;;  %v3279_v0 = vpack.c.bf16 %v1777_v22, %v1765_v37  ;;  %v499_v9 = vand.u32 4294901760, %v498_v15  ;;  %v5743_v1 = vand.u32 4294901760, %v6160_v16  ;;  %v6162_v49 = vld [vmem:[#allocation103_spill] sm:$0xff]  ;;  %v6163_v37 = vld [vmem:[#allocation105_spill] sm:$0xff] }
  0xbb   :  { %v1782_v20 = vsub.f32 %v6158_v55, %v5739_v23  ;;  %2896 = vmatprep.subr.bf16.mxu1 %v2895_v21  ;;  %v1771_v32 = vand.u32 4294901760, %v1770_v24  ;;  %v504_v38 = vsub.f32 %v6159_v11, %v5741_v26  ;;  %v5745_v18 = vand.u32 4294901760, %v6161_v57  ;;  %v6164_v26 = vld [vmem:[#allocation106_spill] sm:$0xff] }
  0xbc   :  { %v5748_v17 = vand.u32 4294901760, %v6162_v49  ;;  %3280 = vmatprep.subr.bf16.mxu0 %v3279_v0  ;;  %v2897_v47 = vpack.c.bf16 %v499_v9, %v487_v53  ;;  %v516_v15 = vsub.f32 %v6160_v16, %v5743_v1  ;;  %v5750_v23 = vand.u32 4294901760, %v6163_v37 }
  0xbd   :  { %v1783_v22 = vand.u32 4294901760, %v1782_v20  ;;  %v505_v55 = vand.u32 4294901760, %v504_v38  ;;  %v1788_v21 = vsub.f32 %v6161_v57, %v5745_v18  ;;  %v5752_v11 = vand.u32 4294901760, %v6164_v26  ;;  %v6165_v20 = vld [vmem:[#allocation108_spill] sm:$0xff]  ;;  %v6166_v57 = vld [vmem:[#allocation109_spill] sm:$0xff] }
  0xbe   :  { %v1800_v24 = vsub.f32 %v6162_v49, %v5748_v17  ;;  %2898 = vmatpush1.bf16.msra.mxu1 %v2897_v47  ;;  %v517_v53 = vand.u32 4294901760, %v516_v15  ;;  %v510_v0 = vsub.f32 %v6163_v37, %v5750_v23  ;;  %v5753_v1 = vand.u32 4294901760, %v6165_v20  ;;  %v6167_v47 = vld [vmem:[#allocation111_spill] sm:$0xff] }
  0xbf   :  { %v3281_v9 = vpack.c.bf16 %v1783_v22, %v1771_v32  ;;  %v1789_v38 = vand.u32 4294901760, %v1788_v21  ;;  %v522_v18 = vsub.f32 %v6164_v26, %v5752_v11  ;;  %v5755_v42 = vand.u32 4294901760, %v6166_v57 }
  0xc0   :  { %v1801_v16 = vand.u32 4294901760, %v1800_v24  ;;  %v2899_v17 = vpack.c.bf16 %v517_v53, %v505_v55  ;;  %v511_v49 = vand.u32 4294901760, %v510_v0  ;;  %v1794_v32 = vsub.f32 %v6165_v20, %v5753_v1  ;;  %v6168_v24 = vld [vmem:[#allocation112_spill] sm:$0xff]  ;;  %v6170_v0 = vld [vmem:[#allocation115_spill] sm:$0xff] }
  0xc1   :  { %3282 = vmatpush1.bf16.msra.mxu0 %v3281_v9  ;;  %v5757_v22 = vand.u32 4294901760, %v6167_v47  ;;  %v523_v23 = vand.u32 4294901760, %v522_v18  ;;  %v1806_v21 = vsub.f32 %v6166_v57, %v5755_v42  ;;  %v5759_v37 = vand.u32 4294901760, %v6168_v24  ;;  %v6169_v9 = vld [vmem:[#allocation113_spill] sm:$0xff] }
  0xc2   :  { %v3283_v15 = vpack.c.bf16 %v1801_v16, %v1789_v38  ;;  %2900 = vmatprep.subr.bf16.mxu1 %v2899_v17  ;;  %v1795_v11 = vand.u32 4294901760, %v1794_v32  ;;  %v5761_v53 = vand.u32 4294901760, %v6169_v9  ;;  %v5764_v1 = vand.u32 4294901760, %v6170_v0  ;;  %v6171_v38 = vld [vmem:[#allocation117_spill] sm:$0xff] }
  0xc3   :  { %v528_v55 = vsub.f32 %v6167_v47, %v5757_v22  ;;  %v2901_v20 = vpack.c.bf16 %v523_v23, %v511_v49  ;;  %v1807_v16 = vand.u32 4294901760, %v1806_v21  ;;  %v540_v18 = vsub.f32 %v6168_v24, %v5759_v37  ;;  %v6172_v22 = vld [vmem:[#allocation118_spill] sm:$0xff]  ;;  %v6173_v21 = vld [vmem:[#allocation120_spill] sm:$0xff] }
  0xc4   :  { %3284 = vmatprep.subr.bf16.mxu0 %v3283_v15  ;;  %v5766_v42 = vand.u32 4294901760, %v6171_v38  ;;  %v1812_v17 = vsub.f32 %v6169_v9, %v5761_v53  ;;  %v1824_v32 = vsub.f32 %v6170_v0, %v5764_v1  ;;  %v5769_v47 = vand.u32 4294901760, %v6172_v22  ;;  %v6174_v9 = vld [vmem:[#allocation121_spill] sm:$0xff] }
  0xc5   :  { %v529_v57 = vand.u32 4294901760, %v528_v55  ;;  %2902 = vmatpush1.bf16.msra.mxu1 %v2901_v20  ;;  %v3285_v23 = vpack.c.bf16 %v1807_v16, %v1795_v11  ;;  %v541_v49 = vand.u32 4294901760, %v540_v18  ;;  %v5770_v37 = vand.u32 4294901760, %v6173_v21  ;;  %v6175_v20 = vld [vmem:[#allocation123_spill] sm:$0xff] }
  0xc6   :  { %v534_v15 = vsub.f32 %v6171_v38, %v5766_v42  ;;  %v1813_v55 = vand.u32 4294901760, %v1812_v17  ;;  %v1825_v24 = vand.u32 4294901760, %v1824_v32  ;;  %v546_v53 = vsub.f32 %v6172_v22, %v5769_v47  ;;  %v6176_v32 = vld [vmem:[#allocation124_spill] sm:$0xff] }
  0xc7   :  { %v5772_v26 = vand.u32 4294901760, %v6174_v9  ;;  %3286 = vmatpush1.bf16.msra.mxu0 %v3285_v23  ;;  %v2903_v1 = vpack.c.bf16 %v541_v49, %v529_v57  ;;  %v1818_v11 = vsub.f32 %v6173_v21, %v5770_v37  ;;  %v5774_v16 = vand.u32 4294901760, %v6175_v20  ;;  %v6177_v23 = vld [vmem:[#allocation125_spill] sm:$0xff] }
  0xc8   :  { %v535_v0 = vand.u32 4294901760, %v534_v15  ;;  %v3287_v18 = vpack.c.bf16 %v1825_v24, %v1813_v55  ;;  %v547_v42 = vand.u32 4294901760, %v546_v53  ;;  %v5776_v30 = vand.u32 4294901760, %v6176_v32  ;;  %v6178_v15 = vld [vmem:[#allocation127_spill] sm:$0xff]  ;;  %v6179_v55 = vld [vmem:[#allocation129_spill] sm:$0xff] }
  0xc9   :  { %v1830_v17 = vsub.f32 %v6174_v9, %v5772_v26  ;;  %2904 = vmatprep.subr.bf16.mxu1 %v2903_v1  ;;  %v1819_v47 = vand.u32 4294901760, %v1818_v11  ;;  %v552_v57 = vsub.f32 %v6175_v20, %v5774_v16  ;;  %v5778_v49 = vand.u32 4294901760, %v6177_v23  ;;  %v6180_v16 = vld [vmem:[#allocation130_spill] sm:$0xff] }
  0xca   :  { %v5781_v37 = vand.u32 4294901760, %v6178_v15  ;;  %3288 = vmatprep.subr.bf16.mxu0 %v3287_v18  ;;  %v2905_v21 = vpack.c.bf16 %v547_v42, %v535_v0  ;;  %v564_v53 = vsub.f32 %v6176_v32, %v5776_v30  ;;  %v5783_v26 = vand.u32 4294901760, %v6179_v55 }
  0xcb   :  { %v1831_v24 = vand.u32 4294901760, %v1830_v17  ;;  %v553_v9 = vand.u32 4294901760, %v552_v57  ;;  %v1836_v1 = vsub.f32 %v6177_v23, %v5778_v49  ;;  %v5785_v20 = vand.u32 4294901760, %v6180_v16  ;;  %v6181_v17 = vld [vmem:[#allocation132_spill] sm:$0xff]  ;;  %v6182_v23 = vld [vmem:[#allocation133_spill] sm:$0xff] }
  0xcc   :  { %v1848_v11 = vsub.f32 %v6178_v15, %v5781_v37  ;;  %2906 = vmatpush1.bf16.msra.mxu1 %v2905_v21  ;;  %v565_v0 = vand.u32 4294901760, %v564_v53  ;;  %v558_v18 = vsub.f32 %v6179_v55, %v5783_v26  ;;  %v5786_v30 = vand.u32 4294901760, %v6181_v17  ;;  %v6183_v21 = vld [vmem:[#allocation135_spill] sm:$0xff] }
  0xcd   :  { %v3289_v42 = vpack.c.bf16 %v1831_v24, %v1819_v47  ;;  %v1837_v57 = vand.u32 4294901760, %v1836_v1  ;;  %v570_v49 = vsub.f32 %v6180_v16, %v5785_v20  ;;  %v5788_v22 = vand.u32 4294901760, %v6182_v23 }
  0xce   :  { %v1849_v32 = vand.u32 4294901760, %v1848_v11  ;;  %v2907_v37 = vpack.c.bf16 %v565_v0, %v553_v9  ;;  %v559_v15 = vand.u32 4294901760, %v558_v18  ;;  %v1842_v47 = vsub.f32 %v6181_v17, %v5786_v30  ;;  %v6184_v11 = vld [vmem:[#allocation136_spill] sm:$0xff]  ;;  %v6186_v18 = vld [vmem:[#allocation139_spill] sm:$0xff] }
  0xcf   :  { %3290 = vmatpush1.bf16.msra.mxu0 %v3289_v42  ;;  %v5790_v24 = vand.u32 4294901760, %v6183_v21  ;;  %v571_v26 = vand.u32 4294901760, %v570_v49  ;;  %v1854_v1 = vsub.f32 %v6182_v23, %v5788_v22  ;;  %v5792_v55 = vand.u32 4294901760, %v6184_v11  ;;  %v6185_v42 = vld [vmem:[#allocation137_spill] sm:$0xff] }
  0xd0   :  { %v3291_v53 = vpack.c.bf16 %v1849_v32, %v1837_v57  ;;  %2908 = vmatprep.subr.bf16.mxu1 %v2907_v37  ;;  %v1843_v20 = vand.u32 4294901760, %v1842_v47  ;;  %v5794_v0 = vand.u32 4294901760, %v6185_v42  ;;  %v5797_v30 = vand.u32 4294901760, %v6186_v18  ;;  %v6187_v57 = vld [vmem:[#allocation141_spill] sm:$0xff] }
  0xd1   :  { %v576_v9 = vsub.f32 %v6183_v21, %v5790_v24  ;;  %v2909_v17 = vpack.c.bf16 %v571_v26, %v559_v15  ;;  %v1855_v32 = vand.u32 4294901760, %v1854_v1  ;;  %v588_v49 = vsub.f32 %v6184_v11, %v5792_v55  ;;  %v6188_v24 = vld [vmem:[#allocation142_spill] sm:$0xff]  ;;  %v6189_v1 = vld [vmem:[#allocation144_spill] sm:$0xff] }
  0xd2   :  { %3292 = vmatprep.subr.bf16.mxu0 %v3291_v53  ;;  %v5799_v22 = vand.u32 4294901760, %v6187_v57  ;;  %v1860_v37 = vsub.f32 %v6185_v42, %v5794_v0  ;;  %v1872_v47 = vsub.f32 %v6186_v18, %v5797_v30  ;;  %v5801_v21 = vand.u32 4294901760, %v6188_v24  ;;  %v6190_v42 = vld [vmem:[#allocation145_spill] sm:$0xff] }
  0xd3   :  { %v577_v23 = vand.u32 4294901760, %v576_v9  ;;  %2910 = vmatpush1.bf16.msra.mxu1 %v2909_v17  ;;  %v3293_v26 = vpack.c.bf16 %v1855_v32, %v1843_v20  ;;  %v589_v15 = vand.u32 4294901760, %v588_v49  ;;  %v5802_v55 = vand.u32 4294901760, %v6189_v1  ;;  %v6191_v17 = vld [vmem:[#allocation147_spill] sm:$0xff] }
  0xd4   :  { %v582_v53 = vsub.f32 %v6187_v57, %v5799_v22  ;;  %v1861_v9 = vand.u32 4294901760, %v1860_v37  ;;  %v1873_v11 = vand.u32 4294901760, %v1872_v47  ;;  %v594_v0 = vsub.f32 %v6188_v24, %v5801_v21  ;;  %v6192_v47 = vld [vmem:[#allocation148_spill] sm:$0xff] }
  0xd5   :  { %v5804_v16 = vand.u32 4294901760, %v6190_v42  ;;  %3294 = vmatpush1.bf16.msra.mxu0 %v3293_v26  ;;  %v2911_v30 = vpack.c.bf16 %v589_v15, %v577_v23  ;;  %v1866_v20 = vsub.f32 %v6189_v1, %v5802_v55  ;;  %v5806_v32 = vand.u32 4294901760, %v6191_v17  ;;  %v6193_v26 = vld [vmem:[#allocation149_spill] sm:$0xff] }
  0xd6   :  { %v583_v18 = vand.u32 4294901760, %v582_v53  ;;  %v3295_v49 = vpack.c.bf16 %v1873_v11, %v1861_v9  ;;  %v595_v22 = vand.u32 4294901760, %v594_v0  ;;  %v5808_v57 = vand.u32 4294901760, %v6192_v47  ;;  %v6194_v53 = vld [vmem:[#allocation151_spill] sm:$0xff]  ;;  %v6195_v9 = vld [vmem:[#allocation153_spill] sm:$0xff] }
  0xd7   :  { %v1878_v37 = vsub.f32 %v6190_v42, %v5804_v16  ;;  %2912 = vmatprep.subr.bf16.mxu1 %v2911_v30  ;;  %v1867_v21 = vand.u32 4294901760, %v1866_v20  ;;  %v600_v23 = vsub.f32 %v6191_v17, %v5806_v32  ;;  %v5810_v15 = vand.u32 4294901760, %v6193_v26  ;;  %v6196_v32 = vld [vmem:[#allocation154_spill] sm:$0xff] }
  0xd8   :  { %v5813_v55 = vand.u32 4294901760, %v6194_v53  ;;  %3296 = vmatprep.subr.bf16.mxu0 %v3295_v49  ;;  %v2913_v1 = vpack.c.bf16 %v595_v22, %v583_v18  ;;  %v612_v0 = vsub.f32 %v6192_v47, %v5808_v57  ;;  %v5815_v16 = vand.u32 4294901760, %v6195_v9 }
  0xd9   :  { %v1879_v11 = vand.u32 4294901760, %v1878_v37  ;;  %v601_v42 = vand.u32 4294901760, %v600_v23  ;;  %v1884_v30 = vsub.f32 %v6193_v26, %v5810_v15  ;;  %v5817_v17 = vand.u32 4294901760, %v6196_v32  ;;  %v6197_v37 = vld [vmem:[#allocation156_spill] sm:$0xff]  ;;  %v6198_v26 = vld [vmem:[#allocation157_spill] sm:$0xff] }
  0xda   :  { %v1896_v20 = vsub.f32 %v6194_v53, %v5813_v55  ;;  %2914 = vmatpush1.bf16.msra.mxu1 %v2913_v1  ;;  %v613_v18 = vand.u32 4294901760, %v612_v0  ;;  %v606_v49 = vsub.f32 %v6195_v9, %v5815_v16  ;;  %v5818_v57 = vand.u32 4294901760, %v6197_v37  ;;  %v6199_v1 = vld [vmem:[#allocation159_spill] sm:$0xff] }
  0xdb   :  { %v3297_v22 = vpack.c.bf16 %v1879_v11, %v1867_v21  ;;  %v1885_v23 = vand.u32 4294901760, %v1884_v30  ;;  %v618_v15 = vsub.f32 %v6196_v32, %v5817_v17  ;;  %v5820_v24 = vand.u32 4294901760, %v6198_v26 }
  0xdc   :  { %v1897_v47 = vand.u32 4294901760, %v1896_v20  ;;  %v2915_v55 = vpack.c.bf16 %v613_v18, %v601_v42  ;;  %v607_v53 = vand.u32 4294901760, %v606_v49  ;;  %v1890_v21 = vsub.f32 %v6197_v37, %v5818_v57  ;;  %v6200_v20 = vld [vmem:[#allocation160_spill] sm:$0xff]  ;;  %v6202_v49 = vld [vmem:[#allocation163_spill] sm:$0xff] }
  0xdd   :  { %3298 = vmatpush1.bf16.msra.mxu0 %v3297_v22  ;;  %v5822_v11 = vand.u32 4294901760, %v6199_v1  ;;  %v619_v16 = vand.u32 4294901760, %v618_v15  ;;  %v1902_v30 = vsub.f32 %v6198_v26, %v5820_v24  ;;  %v5824_v9 = vand.u32 4294901760, %v6200_v20  ;;  %v6201_v22 = vld [vmem:[#allocation161_spill] sm:$0xff] }
  0xde   :  { %v3299_v0 = vpack.c.bf16 %v1897_v47, %v1885_v23  ;;  %2916 = vmatprep.subr.bf16.mxu1 %v2915_v55  ;;  %v1891_v17 = vand.u32 4294901760, %v1890_v21  ;;  %v5826_v18 = vand.u32 4294901760, %v6201_v22  ;;  %v5829_v57 = vand.u32 4294901760, %v6202_v49  ;;  %v6203_v23 = vld [vmem:[#allocation165_spill] sm:$0xff] }
  0xdf   :  { %v624_v42 = vsub.f32 %v6199_v1, %v5822_v11  ;;  %v2917_v37 = vpack.c.bf16 %v619_v16, %v607_v53  ;;  %v1903_v47 = vand.u32 4294901760, %v1902_v30  ;;  %v636_v15 = vsub.f32 %v6200_v20, %v5824_v9  ;;  %v6204_v11 = vld [vmem:[#allocation166_spill] sm:$0xff]  ;;  %v6205_v30 = vld [vmem:[#allocation168_spill] sm:$0xff] }
  0xe0   :  { %3300 = vmatprep.subr.bf16.mxu0 %v3299_v0  ;;  %v5831_v24 = vand.u32 4294901760, %v6203_v23  ;;  %v1908_v55 = vsub.f32 %v6201_v22, %v5826_v18  ;;  %v1920_v21 = vsub.f32 %v6202_v49, %v5829_v57  ;;  %v5833_v1 = vand.u32 4294901760, %v6204_v11  ;;  %v6206_v22 = vld [vmem:[#allocation169_spill] sm:$0xff] }
  0xe1   :  { %v625_v26 = vand.u32 4294901760, %v624_v42  ;;  %2918 = vmatpush1.bf16.msra.mxu1 %v2917_v37  ;;  %v3301_v16 = vpack.c.bf16 %v1903_v47, %v1891_v17  ;;  %v637_v53 = vand.u32 4294901760, %v636_v15  ;;  %v5834_v9 = vand.u32 4294901760, %v6205_v30  ;;  %v6207_v37 = vld [vmem:[#allocation171_spill] sm:$0xff] }
  0xe2   :  { %v630_v0 = vsub.f32 %v6203_v23, %v5831_v24  ;;  %v1909_v42 = vand.u32 4294901760, %v1908_v55  ;;  %v1921_v20 = vand.u32 4294901760, %v1920_v21  ;;  %v642_v18 = vsub.f32 %v6204_v11, %v5833_v1  ;;  %v6208_v21 = vld [vmem:[#allocation172_spill] sm:$0xff] }
  0xe3   :  { %v5835_v32 = vand.u32 4294901760, %v6206_v22  ;;  %3302 = vmatpush1.bf16.msra.mxu0 %v3301_v16  ;;  %v2919_v57 = vpack.c.bf16 %v637_v53, %v625_v26  ;;  %v1914_v17 = vsub.f32 %v6205_v30, %v5834_v9  ;;  %v5837_v47 = vand.u32 4294901760, %v6207_v37  ;;  %v6209_v16 = vld [vmem:[#allocation173_spill] sm:$0xff] }
  0xe4   :  { %v631_v49 = vand.u32 4294901760, %v630_v0  ;;  %v3303_v15 = vpack.c.bf16 %v1921_v20, %v1909_v42  ;;  %v643_v24 = vand.u32 4294901760, %v642_v18  ;;  %v5839_v23 = vand.u32 4294901760, %v6208_v21  ;;  %v6210_v42 = vld [vmem:[#allocation177_spill] sm:$0xff] }
  0xe5   :  { %v1926_v55 = vsub.f32 %v6206_v22, %v5835_v32  ;;  %2920 = vmatprep.subr.bf16.mxu1 %v2919_v57  ;;  %v1915_v1 = vand.u32 4294901760, %v1914_v17  ;;  %v648_v26 = vsub.f32 %v6207_v37, %v5837_v47  ;;  %v5841_v53 = vand.u32 4294901760, %v6209_v16  ;;  %v6211_v47 = vld [vmem:[#allocation178_spill] sm:$0xff] }
  0xe6   :  { %v5844_v0 = vand.u32 4294901760, %v4146_v54  ;;  %3304 = vmatprep.subr.bf16.mxu0 %v3303_v15  ;;  %v2921_v9 = vpack.c.bf16 %v643_v24, %v631_v49  ;;  %v660_v18 = vsub.f32 %v6208_v21, %v5839_v23  ;;  %v5847_v32 = vand.u32 4294901760, %v6210_v42 }
  0xe7   :  { %v1927_v20 = vand.u32 4294901760, %v1926_v55  ;;  %v649_v22 = vand.u32 4294901760, %v648_v26  ;;  %v1932_v57 = vsub.f32 %v6209_v16, %v5841_v53  ;;  %v5849_v37 = vand.u32 4294901760, %v6211_v47  ;;  %v6212_v55 = vld [vmem:[#allocation180_spill] sm:$0xff]  ;;  %v6213_v16 = vld [vmem:[#allocation181_spill] sm:$0xff] }
  0xe8   :  { %v1944_v17 = vsub.f32 %v4146_v54, %v5844_v0  ;;  %2922 = vmatpush1.bf16.msra.mxu1 %v2921_v9  ;;  %v661_v49 = vand.u32 4294901760, %v660_v18  ;;  %v654_v15 = vsub.f32 %v6210_v42, %v5847_v32  ;;  %v5850_v23 = vand.u32 4294901760, %v6212_v55 }
  0xe9   :  { %v3305_v24 = vpack.c.bf16 %v1927_v20, %v1915_v1  ;;  %v1933_v26 = vand.u32 4294901760, %v1932_v57  ;;  %v666_v53 = vsub.f32 %v6211_v47, %v5849_v37  ;;  %v5851_v30 = vand.u32 4294901760, %v6213_v16  ;;  %v6214_v1 = vld [vmem:[#allocation183_spill] sm:$0xff] }
  0xea   :  { %v1945_v21 = vand.u32 4294901760, %v1944_v17  ;;  %v2923_v0 = vpack.c.bf16 %v661_v49, %v649_v22  ;;  %v655_v54 = vand.u32 4294901760, %v654_v15  ;;  %v1938_v9 = vsub.f32 %v6212_v55, %v5850_v23  ;;  %v6215_v17 = vld [vmem:[#allocation184_spill] sm:$0xff]  ;;  %v6270_v55 = vld [vmem:[#allocation203_spill] sm:$0xff] }
  0xeb   :  { %3306 = vmatpush1.bf16.msra.mxu0 %v3305_v24  ;;  %v5852_v20 = vand.u32 4294901760, %v6214_v1  ;;  %v667_v32 = vand.u32 4294901760, %v666_v53  ;;  %v1950_v57 = vsub.f32 %v6213_v16, %v5851_v30  ;;  %v5853_v42 = vand.u32 4294901760, %v6215_v17  ;;  %v6216_v24 = vld [vmem:[#allocation185_spill] sm:$0xff]  ;;  %v6279_v16 = vld [vmem:[#allocation75_spill] sm:$0xff] }
  0xec   :  { %v3307_v18 = vpack.c.bf16 %v1945_v21, %v1933_v26  ;;  %2924 = vmatprep.subr.bf16.mxu1 %v2923_v0  ;;  %v1939_v37 = vand.u32 4294901760, %v1938_v9  ;;  %v5854_v49 = vand.u32 4294901760, %v6216_v24  ;;  %v5856_v15 = vand.u32 4294901760, %v4174_v60 }
  0xed   :  { %v672_v22 = vsub.f32 %v6214_v1, %v5852_v20  ;;  %v2925_v23 = vpack.c.bf16 %v667_v32, %v655_v54  ;;  %v1951_v21 = vand.u32 4294901760, %v1950_v57  ;;  %v684_v53 = vsub.f32 %v6215_v17, %v5853_v42 }
  0xee   :  { %3308 = vmatprep.subr.bf16.mxu0 %v3307_v18  ;;  %v5859_v26 = vand.u32 4294901760, %v4178_v31  ;;  %v1956_v0 = vsub.f32 %v6216_v24, %v5854_v49  ;;  %v1968_v9 = vsub.f32 %v4174_v60, %v5856_v15  ;;  %v5862_v20 = vand.u32 4294901760, %v4180_v45 }
  0xef   :  { %v673_v30 = vand.u32 4294901760, %v672_v22  ;;  %2926 = vmatpush1.bf16.msra.mxu1 %v2925_v23  ;;  %v3309_v54 = vpack.c.bf16 %v1951_v21, %v1939_v37  ;;  %v685_v32 = vand.u32 4294901760, %v684_v53  ;;  %v5863_v57 = vand.u32 4294901760, %v4184_v14  ;;  %v6217_v37 = vld [vmem:[#allocation195_spill] sm:$0xff] }
  0xf0   :  { %v678_v18 = vsub.f32 %v4178_v31, %v5859_v26  ;;  %v1957_v22 = vand.u32 4294901760, %v1956_v0  ;;  %v1969_v42 = vand.u32 4294901760, %v1968_v9  ;;  %v690_v49 = vsub.f32 %v4180_v45, %v5862_v20  ;;  %v6218_v9 = vld [vmem:[#allocation196_spill] sm:$0xff] }
  0xf1   :  { %v5864_v24 = vand.u32 4294901760, %v4186_v36  ;;  %3310 = vmatpush1.bf16.msra.mxu0 %v3309_v54  ;;  %v2927_v15 = vpack.c.bf16 %v685_v32, %v673_v30  ;;  %v1962_v23 = vsub.f32 %v4184_v14, %v5863_v57  ;;  %v5865_v21 = vand.u32 4294901760, %v6217_v37  ;;  %v6219_v54 = vld [vmem:[#allocation197_spill] sm:$0xff] }
  0xf2   :  { %v679_v60 = vand.u32 4294901760, %v678_v18  ;;  %v3311_v53 = vpack.c.bf16 %v1969_v42, %v1957_v22  ;;  %v691_v26 = vand.u32 4294901760, %v690_v49  ;;  %v5866_v31 = vand.u32 4294901760, %v6218_v9 }
  0xf3   :  { %v1974_v0 = vsub.f32 %v4186_v36, %v5864_v24  ;;  %2928 = vmatprep.subr.bf16.mxu1 %v2927_v15  ;;  %v1963_v20 = vand.u32 4294901760, %v1962_v23  ;;  %v696_v30 = vsub.f32 %v6217_v37, %v5865_v21  ;;  %v5867_v32 = vand.u32 4294901760, %v6219_v54 }
  0xf4   :  { %v5869_v18 = vand.u32 4294901760, %v4205_v59  ;;  %3312 = vmatprep.subr.bf16.mxu0 %v3311_v53  ;;  %v2929_v57 = vpack.c.bf16 %v691_v26, %v679_v60  ;;  %v708_v49 = vsub.f32 %v6218_v9, %v5866_v31  ;;  %v5872_v22 = vand.u32 4294901760, %v4209_v28 }
  0xf5   :  { %v1975_v42 = vand.u32 4294901760, %v1974_v0  ;;  %v697_v24 = vand.u32 4294901760, %v696_v30  ;;  %v1980_v15 = vsub.f32 %v6219_v54, %v5867_v32  ;;  %v5873_v21 = vand.u32 4294901760, %v4211_v2 }
  0xf6   :  { %v1992_v23 = vsub.f32 %v4205_v59, %v5869_v18  ;;  %2930 = vmatpush1.bf16.msra.mxu1 %v2929_v57  ;;  %v709_v26 = vand.u32 4294901760, %v708_v49  ;;  %v702_v53 = vsub.f32 %v4209_v28, %v5872_v22  ;;  %v5879_v0 = vand.u32 4294901760, %v4215_v29  ;;  %v6221_v22 = vld [vmem:[#allocation16_spill] sm:$0xff] }
  0xf7   :  { %v3313_v60 = vpack.c.bf16 %v1975_v42, %v1963_v20  ;;  %v1981_v30 = vand.u32 4294901760, %v1980_v15  ;;  %v714_v32 = vsub.f32 %v4211_v2, %v5873_v21  ;;  %v5878_v54 = vand.u32 4294901760, %v4217_v8 }
  0xf8   :  { %v1993_v31 = vand.u32 4294901760, %v1992_v23  ;;  %v2931_v18 = vpack.c.bf16 %v709_v26, %v697_v24  ;;  %v703_v59 = vand.u32 4294901760, %v702_v53  ;;  %v1986_v20 = vsub.f32 %v4215_v29, %v5879_v0  ;;  %v6220_v23 = vld [vmem:[#allocation15_spill] sm:$0xff]  ;;  %v6222_v24 = vld [vmem:[#allocation17_spill] sm:$0xff] }
  0xf9   :  { %3314 = vmatpush1.bf16.msra.mxu0 %v3313_v60  ;;  %v715_v42 = vand.u32 4294901760, %v714_v32  ;;  %v1998_v49 = vsub.f32 %v4217_v8, %v5878_v54  ;;  %v2935_v21 = vpack.c.bf16 %v6221_v22, %v6220_v23  ;;  %v6223_v26 = vld [vmem:[#allocation19_spill] sm:$0xff]  ;;  %v2939_v32 = vpack.c.bf16 %v3802_v46, %v3798_v41  ;;  %v6227_v0 = vld [vmem:[#allocation121_spill] sm:$0xff]  ;;  %v6253_v41 = vld [vmem:[#allocation160_spill] sm:$0xff] }
  0xfa   :  { %v3315_v57 = vpack.c.bf16 %v1993_v31, %v1981_v30  ;;  %2932 = vmatprep.subr.bf16.mxu1 %v2931_v18  ;;  %v1987_v15 = vand.u32 4294901760, %v1986_v20  ;;  %v3319_v53 = vpack.c.bf16 %v6223_v26, %v6222_v24  ;;  %v2937_v31 = vpack.c.bf16 %v3788_v27, %v3785_v25  ;;  %v6224_v30 = vld [vmem:[#allocation209_spill] sm:$0xff]  ;;  %v6255_v25 = vld [vmem:[#allocation163_spill] sm:$0xff]  ;;  %v6260_v23 = vld [vmem:[#allocation172_spill] sm:$0xff] }
  0xfb   :  { %v2933_v2 = vpack.c.bf16 %v715_v42, %v703_v59  ;;  %v1999_v60 = vand.u32 4294901760, %v1998_v49  ;;  %v3321_v18 = vpack.c.bf16 %v3796_v40, %v3794_v39  ;;  %v3323_v59 = vpack.c.bf16 %v3809_v50, %v3806_v48  ;;  %v6247_v50 = vld [vmem:[#allocation151_spill] sm:$0xff]  ;;  %v6251_v39 = vld [vmem:[#allocation157_spill] sm:$0xff]  ;;  %v6271_v22 = vld [vmem:[#allocation60_spill] sm:$0xff] }
  0xfc   :  { %3316 = vmatprep.subr.bf16.mxu0 %v3315_v57  ;;  %v2943_v20 = vpack.c.bf16 %v3830_v10, %v3827_v6  ;;  %v2945_v57 = vpack.c.bf16 %v3845_v34, %v3843_v33  ;;  %v3329_v42 = vpack.c.bf16 %v3851_v44, %v3849_v43  ;;  %v2947_v49 = vpack.c.bf16 %v3859_v56, %v3855_v51  ;;  %v6229_v44 = vld [vmem:[#allocation124_spill] sm:$0xff]  ;;  %v6230_v56 = vld [vmem:[#allocation125_spill] sm:$0xff]  ;;  %v6231_v51 = vld [vmem:[#allocation127_spill] sm:$0xff] }
  0xfd   :  { %2934 = vmatpush1.bf16.msra.mxu1 %v2933_v2  ;;  %v3317_v28 = vpack.c.bf16 %v1999_v60, %v1987_v15  ;;  %v2941_v2 = vpack.c.bf16 %v3817_v61, %v3811_v52  ;;  %v3331_v15 = vpack.c.bf16 %v3866_v63, %v3863_v58  ;;  %v2949_v60 = vpack.c.bf16 %v3873_v35, %v3869_v19  ;;  %v6233_v58 = vld [vmem:[#allocation130_spill] sm:$0xff]  ;;  %v6234_v35 = vld [vmem:[#allocation132_spill] sm:$0xff]  ;;  %v6235_v19 = vld [vmem:[#allocation133_spill] sm:$0xff] }
  0xfe   :  { %2936 = vmatprep.subr.bf16.mxu1 %v2935_v21  ;;  %v3325_v21 = vpack.c.bf16 %v3823_v4, %v3819_v62  ;;  %v6241_v4 = vld [vmem:[#allocation142_spill] sm:$0xff]  ;;  %v6242_v43 = vld [vmem:[#allocation144_spill] sm:$0xff]  ;;  %v6243_v10 = vld [vmem:[#allocation145_spill] sm:$0xff] }
  0xff   :  { %3318 = vmatpush1.bf16.msra.mxu0 %v3317_v28  ;;  %v3327_v28 = vpack.c.bf16 %v3836_v13, %v3834_v12  ;;  %v6238_v13 = vld [vmem:[#allocation137_spill] sm:$0xff]  ;;  %v6239_v12 = vld [vmem:[#allocation139_spill] sm:$0xff]  ;;  %v6245_v61 = vld [vmem:[#allocation148_spill] sm:$0xff] }
 0x100   :  { %3320 = vmatprep.subr.bf16.mxu0 %v3319_v53  ;;  %720 = vmatmul.mubr.f32.vlgmr.msra.gmra.mrb[0].mxu1 %v6224_v30  ;;  %v2951_v53 = vpack.c.bf16 %v3885_v5, %v3883_v3  ;;  %v6228_v30 = vld [vmem:[#allocation123_spill] sm:$0xff]  ;;  %v6237_v3 = vld [vmem:[#allocation136_spill] sm:$0xff]  ;;  %v6246_v52 = vld [vmem:[#allocation149_spill] sm:$0xff] }
 0x101   :  { %2938 = vmatpush1.bf16.msra.mxu1 %v2937_v31  ;;  %v6225_v31 = vld [vmem:[#allocation118_spill] sm:$0xff]  ;;  %v6236_v5 = vld [vmem:[#allocation135_spill] sm:$0xff]  ;;  %v6254_v27 = vld [vmem:[#allocation161_spill] sm:$0xff] }
 0x102   :  { %2004 = vmatmul.mubr.f32.vlgmr.msra.gmra.mrb[0].mxu0 %v4270_v7  ;;  %2940 = vmatprep.subr.bf16.mxu1 %v2939_v32  ;;  %v6226_v32 = vld [vmem:[#allocation120_spill] sm:$0xff]  ;;  %v6244_v63 = vld [vmem:[#allocation147_spill] sm:$0xff]  ;;  %v6258_v24 = vld [vmem:[#allocation169_spill] sm:$0xff] }
 0x103   :  { %3322 = vmatpush1.bf16.msra.mxu0 %v3321_v18  ;;  %v6232_v18 = vld [vmem:[#allocation129_spill] sm:$0xff]  ;;  %v6252_v7 = vld [vmem:[#allocation159_spill] sm:$0xff]  ;;  %v6276_v54 = vld [vmem:[#allocation210_spill] sm:$0xff] }
 0x104   :  { %3324 = vmatprep.subr.bf16.mxu0 %v3323_v59  ;;  %v6240_v59 = vld [vmem:[#allocation141_spill] sm:$0xff]  ;;  %v6259_v33 = vld [vmem:[#allocation171_spill] sm:$0xff]  ;;  %2204 = vmatprep.mubr.f32.mxu0 %v6276_v54  ;;  %v6278_v46 = vld [vmem:[#allocation70_spill] sm:$0xff] }
 0x105   :  { %2942 = vmatpush1.bf16.msra.mxu1 %v2941_v2  ;;  %v6261_v2 = vld [vmem:[#allocation173_spill] sm:$0xff]  ;;  %v6262_v48 = vld [vmem:[#allocation175_spill] sm:$0xff]  ;;  %v6288_v8 = vld [vmem:[#allocation88_spill] sm:$0xff] }
 0x106   :  { %2944 = vmatprep.subr.bf16.mxu1 %v2943_v20  ;;  %v6265_v20 = vld [vmem:[#allocation187_spill] sm:$0xff]  ;;  %v6272_v6 = vld [vmem:[#allocation61_spill] sm:$0xff] }
 0x107   :  { %3326 = vmatpush1.bf16.msra.mxu0 %v3325_v21  ;;  %v3333_v34 = vpack.c.bf16 %v6272_v6, %v6271_v22  ;;  %v6275_v40 = vld [vmem:[#allocation67_spill] sm:$0xff]  ;;  %v6277_v62 = vld [vmem:[#allocation69_spill] sm:$0xff] }
 0x108   :  { %3328 = vmatprep.subr.bf16.mxu0 %v3327_v28  ;;  %v6273_v28 = vld [vmem:[#allocation207_spill] sm:$0xff]  ;;  %v2953_v21 = vpack.c.bf16 %v6278_v46, %v6277_v62  ;;  %v6282_v29 = vld [vmem:[#allocation73_spill] sm:$0xff] }
 0x109   :  { %2946 = vmatpush1.bf16.msra.mxu1 %v2945_v57  ;;  %920 = vmatprep.mubr.f32.mxu1 %v6273_v28  ;;  %v6280_v57 = vld [vmem:[#allocation76_spill] sm:$0xff]  ;;  %v6283_v22 = vld [vmem:[#allocation77_spill] sm:$0xff] }
 0x10a   :  { %2948 = vmatprep.subr.bf16.mxu1 %v2947_v49  ;;  %v6274_v49 = vld [vmem:[#allocation65_spill] sm:$0xff]  ;;  %v2955_v26 = vpack.c.bf16 %v6280_v57, %v6279_v16  ;;  %v6292_v16 = vld [vmem:[#allocation91_spill] sm:$0xff] }
 0x10b   :  { %3330 = vmatpush1.bf16.msra.mxu0 %v3329_v42  ;;  %v3335_v14 = vpack.c.bf16 %v6275_v40, %v6274_v49  ;;  %v6281_v42 = vld [vmem:[#allocation72_spill] sm:$0xff]  ;;  %v6285_v40 = vld [vmem:[#allocation81_spill] sm:$0xff]  ;;  %v6286_v49 = vld [vmem:[#allocation82_spill] sm:$0xff] }
 0x10c   :  { %3332 = vmatprep.subr.bf16.mxu0 %v3331_v15  ;;  %v3337_v6 = vpack.c.bf16 %v6282_v29, %v6281_v42  ;;  %v6284_v15 = vld [vmem:[#allocation79_spill] sm:$0xff]  ;;  %v2957_v54 = vpack.c.bf16 %v6286_v49, %v6285_v40  ;;  %v6290_v62 = vld [vmem:[#allocation85_spill] sm:$0xff]  ;;  %v6294_v42 = vld [vmem:[#allocation94_spill] sm:$0xff] }
 0x10d   :  { %2950 = vmatpush1.bf16.msra.mxu1 %v2949_v60  ;;  %v3339_v28 = vpack.c.bf16 %v6284_v15, %v6283_v22  ;;  %v6287_v60 = vld [vmem:[#allocation87_spill] sm:$0xff]  ;;  %v6296_v22 = vld [vmem:[#allocation100_spill] sm:$0xff]  ;;  %v6298_v40 = vld [vmem:[#allocation97_spill] sm:$0xff] }
 0x10e   :  { %2952 = vmatprep.subr.bf16.mxu1 %v2951_v53  ;;  %v2959_v46 = vpack.c.bf16 %v6288_v8, %v6287_v60  ;;  %v6289_v53 = vld [vmem:[#allocation84_spill] sm:$0xff]  ;;  %v6300_v60 = vld [vmem:[#allocation103_spill] sm:$0xff] }
 0x10f   :  { %3334 = vmatpush1.bf16.msra.mxu0 %v3333_v34  ;;  %v3341_v57 = vpack.c.bf16 %v6290_v62, %v6289_v53  ;;  %v6291_v34 = vld [vmem:[#allocation89_spill] sm:$0xff]  ;;  %v6302_v53 = vld [vmem:[#allocation106_spill] sm:$0xff] }
 0x110   :  { %3336 = vmatprep.subr.bf16.mxu0 %v3335_v14  ;;  %v3343_v29 = vpack.c.bf16 %v6292_v16, %v6291_v34  ;;  %v6293_v14 = vld [vmem:[#allocation93_spill] sm:$0xff]  ;;  %v6304_v34 = vld [vmem:[#allocation112_spill] sm:$0xff] }
 0x111   :  { %2954 = vmatpush1.bf16.msra.mxu1 %v2953_v21  ;;  %v2961_v15 = vpack.c.bf16 %v6294_v42, %v6293_v14  ;;  %v6295_v21 = vld [vmem:[#allocation99_spill] sm:$0xff]  ;;  %v6306_v14 = vld [vmem:[#allocation109_spill] sm:$0xff] }
 0x112   :  { %2956 = vmatprep.subr.bf16.mxu1 %v2955_v26  ;;  %v2963_v49 = vpack.c.bf16 %v6296_v22, %v6295_v21  ;;  %v6297_v26 = vld [vmem:[#allocation96_spill] sm:$0xff]  ;;  %v6308_v21 = vld [vmem:[#allocation115_spill] sm:$0xff] }
 0x113   :  { %3338 = vmatpush1.bf16.msra.mxu0 %v3337_v6  ;;  %v3345_v8 = vpack.c.bf16 %v6298_v40, %v6297_v26  ;;  %v6299_v6 = vld [vmem:[#allocation101_spill] sm:$0xff] }
 0x114   :  { %3340 = vmatprep.subr.bf16.mxu0 %v3339_v28  ;;  %v3347_v62 = vpack.c.bf16 %v6300_v60, %v6299_v6  ;;  %v6301_v28 = vld [vmem:[#allocation105_spill] sm:$0xff] }
 0x115   :  { %2958 = vmatpush1.bf16.msra.mxu1 %v2957_v54  ;;  %v2965_v16 = vpack.c.bf16 %v6302_v53, %v6301_v28  ;;  %v6303_v54 = vld [vmem:[#allocation111_spill] sm:$0xff] }
 0x116   :  { %2960 = vmatprep.subr.bf16.mxu1 %v2959_v46  ;;  %v2967_v42 = vpack.c.bf16 %v6304_v34, %v6303_v54  ;;  %v6305_v46 = vld [vmem:[#allocation108_spill] sm:$0xff] }
 0x117   :  { %3342 = vmatpush1.bf16.msra.mxu0 %v3341_v57  ;;  %v3349_v22 = vpack.c.bf16 %v6306_v14, %v6305_v46  ;;  %v6307_v57 = vld [vmem:[#allocation113_spill] sm:$0xff] }
 0x118   :  { %3344 = vmatprep.subr.bf16.mxu0 %v3343_v29  ;;  %v3351_v40 = vpack.c.bf16 %v6308_v21, %v6307_v57  ;;  %v6309_v29 = vpack.c.bf16 %v6225_v31, %v6171_v38 }
 0x119   :  { %2962 = vmatpush1.bf16.msra.mxu1 %v2961_v15  ;;  %v6317_v15 = vpack.c.bf16 %v6241_v4, %v6240_v59 }
 0x11a   :  { %2964 = vmatprep.subr.bf16.mxu1 %v2963_v49  ;;  %v6310_v49 = vpack.c.bf16 %v6229_v44, %v6228_v30 }
 0x11b   :  { %3346 = vmatpush1.bf16.msra.mxu0 %v3345_v8  ;;  %v6311_v8 = vpack.c.bf16 %v6227_v0, %v6226_v32 }
 0x11c   :  { %3348 = vmatprep.subr.bf16.mxu0 %v3347_v62  ;;  %v6312_v62 = vpack.c.bf16 %v6231_v51, %v6230_v56 }
 0x11d   :  { %2966 = vmatpush1.bf16.msra.mxu1 %v2965_v16  ;;  %v6313_v16 = vpack.c.bf16 %v6233_v58, %v6232_v18 }
 0x11e   :  { %2968 = vmatprep.subr.bf16.mxu1 %v2967_v42  ;;  %v6316_v42 = vpack.c.bf16 %v6239_v12, %v6238_v13 }
 0x11f   :  { %3350 = vmatpush1.bf16.msra.mxu0 %v3349_v22  ;;  %v6315_v22 = vpack.c.bf16 %v6235_v19, %v6234_v35 }
 0x120   :  { %3352 = vmatprep.subr.bf16.mxu0 %v3351_v40  ;;  %v6314_v40 = vpack.c.bf16 %v6237_v3, %v6236_v5 }
 0x121   :  { %2970 = vmatpush1.bf16.msra.mxu1 %v6309_v29  ;;  %v6318_v29 = vpack.c.bf16 %v6245_v61, %v6244_v63 }
 0x122   :  { %2972 = vmatprep.subr.bf16.mxu1 %v6310_v49  ;;  %v6319_v49 = vpack.c.bf16 %v6243_v10, %v6242_v43 }
 0x123   :  { %3354 = vmatpush1.bf16.msra.mxu0 %v6311_v8  ;;  %v6320_v8 = vpack.c.bf16 %v6247_v50, %v6246_v52 }
 0x124   :  { %3356 = vmatprep.subr.bf16.mxu0 %v6312_v62  ;;  %v6321_v62 = vld [vmem:[#allocation154_spill] sm:$0xff] }
 0x125   :  { %2974 = vmatpush1.bf16.msra.mxu1 %v6313_v16  ;;  %v6322_v16 = vld [vmem:[#allocation153_spill] sm:$0xff] }
 0x126   :  { %2976 = vmatprep.subr.bf16.mxu1 %v6314_v40  ;;  %v6323_v40 = vpack.c.bf16 %v6321_v62, %v6322_v16 }
 0x127   :  { %3358 = vmatpush1.bf16.msra.mxu0 %v6315_v22  ;;  %v6324_v22 = vpack.c.bf16 %v6253_v41, %v6252_v7 }
 0x128   :  { %3360 = vmatprep.subr.bf16.mxu0 %v6316_v42  ;;  %v6325_v42 = vld [vmem:[#allocation156_spill] sm:$0xff] }
 0x129   :  { %2978 = vmatpush1.bf16.msra.mxu1 %v6317_v15  ;;  %v6326_v15 = vpack.c.bf16 %v6251_v39, %v6325_v42 }
 0x12a   :  { %2980 = vmatprep.subr.bf16.mxu1 %v6318_v29  ;;  %v6327_v29 = vpack.c.bf16 %v6255_v25, %v6254_v27 }
 0x12b   :  { %3362 = vmatpush1.bf16.msra.mxu0 %v6319_v49  ;;  %v6328_v49 = vld [vmem:[#allocation165_spill] sm:$0xff] }
 0x12c   :  { %3364 = vmatprep.subr.bf16.mxu0 %v6320_v8  ;;  %v6329_v50 = vpack.c.bf16 %v6204_v11, %v6328_v49  ;;  %v6330_v8 = vpack.c.bf16 %v6260_v23, %v6259_v33  ;;  %v6338_v11 = vld [vmem:[#allocation180_spill] sm:$0xff] }
 0x12d   :  { %2982 = vmatpush1.bf16.msra.mxu1 %v6323_v40  ;;  %v6331_v40 = vld [vmem:[#allocation168_spill] sm:$0xff] }
 0x12e   :  { %2984 = vmatprep.subr.bf16.mxu1 %v6324_v22  ;;  %v6332_v41 = vpack.c.bf16 %v6258_v24, %v6331_v40  ;;  %v6333_v22 = vpack.c.bf16 %v6262_v48, %v6261_v2  ;;  %v6440_v2 = vld [vmem:[#allocation204_spill] sm:$0xff]  ;;  %v6443_v40 = vld [vmem:[#allocation25_spill] sm:$0xff] }
 0x12f   :  { %3366 = vmatpush1.bf16.msra.mxu0 %v6326_v15  ;;  %v6334_v15 = vld [vmem:[#allocation177_spill] sm:$0xff] }
 0x130   :  { %3368 = vmatprep.subr.bf16.mxu0 %v6327_v29  ;;  %v6335_v25 = vpack.c.bf16 %v6211_v47, %v6334_v15  ;;  %v6336_v29 = vpack.c.bf16 %v6215_v17, %v6214_v1  ;;  %v6348_v1 = vld [vmem:[#allocation197_spill] sm:$0xff]  ;;  %v6434_v47 = vld [vmem:[#allocation22_spill] sm:$0xff] }
 0x131   :  { %2986 = vmatpush1.bf16.msra.mxu1 %v6329_v50  ;;  %v6337_v50 = vld [vmem:[#allocation181_spill] sm:$0xff] }
 0x132   :  { %2988 = vmatprep.subr.bf16.mxu1 %v6330_v8  ;;  %v6339_v23 = vpack.c.bf16 %v6337_v50, %v6338_v11  ;;  %v6340_v8 = vld [vmem:[#allocation185_spill] sm:$0xff] }
 0x133   :  { %3370 = vmatpush1.bf16.msra.mxu0 %v6332_v41  ;;  %v6341_v24 = vpack.c.bf16 %v6265_v20, %v6340_v8  ;;  %v6342_v41 = vld [vmem:[#allocation189_spill] sm:$0xff] }
 0x134   :  { %3372 = vmatprep.subr.bf16.mxu0 %v6333_v22  ;;  %v6343_v48 = vpack.c.bf16 %v4180_v45, %v6342_v41  ;;  %v6344_v22 = vpack.c.bf16 %v6218_v9, %v6217_v37  ;;  %v6353_v45 = vld [vmem:[#allocation206_spill] sm:$0xff]  ;;  %v6431_v11 = vld [vmem:[#allocation201_spill] sm:$0xff] }
 0x135   :  { %2990 = vmatpush1.bf16.msra.mxu1 %v6335_v25  ;;  %v6345_v25 = vld [vmem:[#allocation192_spill] sm:$0xff]  ;;  %v6356_v9 = vld [vmem:[#allocation18_spill] sm:$0xff] }
 0x136   :  { %2992 = vmatprep.subr.bf16.mxu1 %v6336_v29  ;;  %v6346_v17 = vpack.c.bf16 %v4186_v36, %v6345_v25  ;;  %v6347_v29 = vld [vmem:[#allocation200_spill] sm:$0xff] }
 0x137   :  { %3374 = vmatpush1.bf16.msra.mxu0 %v6339_v23  ;;  %v6349_v50 = vpack.c.bf16 %v6347_v29, %v6348_v1  ;;  %v6350_v23 = vld [vmem:[#allocation202_spill] sm:$0xff]  ;;  %v6358_v36 = vld [vmem:[#allocation20_spill] sm:$0xff]  ;;  %v6362_v29 = vld [vmem:[#allocation27_spill] sm:$0xff] }
 0x138   :  { %3376 = vmatprep.subr.bf16.mxu0 %v6341_v24  ;;  %v6351_v20 = vpack.c.bf16 %v6270_v55, %v6350_v23  ;;  %v6352_v24 = vld [vmem:[#allocation14_spill] sm:$0xff]  ;;  %v6423_v23 = vld [vmem:[#allocation16_spill] sm:$0xff] }
 0x139   :  { %2994 = vmatpush1.bf16.msra.mxu1 %v6343_v48  ;;  %v6354_v48 = vld [vmem:[#allocation205_spill] sm:$0xff] }
 0x13a   :  { %2996 = vmatprep.subr.bf16.mxu1 %v6344_v22  ;;  %v6355_v41 = vpack.c.bf16 %v6353_v45, %v6354_v48  ;;  %v6357_v22 = vld [vmem:[#allocation211_spill] sm:$0xff]  ;;  %v6366_v45 = vld [vmem:[#allocation29_spill] sm:$0xff]  ;;  %v6369_v48 = vld [vmem:[#allocation36_spill] sm:$0xff] }
 0x13b   :  { %3378 = vmatpush1.bf16.msra.mxu0 %v6346_v17  ;;  %v6359_v17 = vld [vmem:[#allocation207_spill] sm:$0xff] }
 0x13c   :  { %3380 = vmatprep.subr.bf16.mxu0 %v6349_v50  ;;  %v6360_v25 = vand.u32 4294901760, %v6359_v17  ;;  %v6361_v50 = vld [vmem:[#allocation213_spill] sm:$0xff]  ;;  %v6372_v17 = vld [vmem:[#allocation50_spill] sm:$0xff] }
 0x13d   :  { %2998 = vmatpush1.bf16.msra.mxu1 %v6351_v20  ;;  %v6363_v20 = vld [vmem:[#allocation23_spill] sm:$0xff] }
 0x13e   :  { %3000 = vmatprep.subr.bf16.mxu1 %v6352_v24  ;;  %v6364_v24 = vld [vmem:[#allocation210_spill] sm:$0xff] }
 0x13f   :  { %3382 = vmatpush1.bf16.msra.mxu0 %v6355_v41  ;;  %v6365_v55 = vand.u32 4294901760, %v6364_v24  ;;  %v6367_v41 = vld [vmem:[#allocation33_spill] sm:$0xff] }
 0x140   :  { %3384 = vmatprep.subr.bf16.mxu0 %v6356_v9  ;;  %923 = vmatmul.mubr.f32.vlgmr.msra.gmra.mrb[0].mxu1 %v6357_v22  ;;  %v6368_v9 = vld [vmem:[#allocation38_spill] sm:$0xff]  ;;  %v6375_v24 = vld [vmem:[#allocation57_spill] sm:$0xff] }
 0x141   :  { %3002 = vmatpush1.bf16.msra.mxu1 %v6358_v36  ;;  %1060 = vmatprep.mubr.f32.mxu1 %v6360_v25  ;;  %v6370_v36 = vld [vmem:[#allocation41_spill] sm:$0xff]  ;;  %v6371_v25 = vld [vmem:[#allocation44_spill] sm:$0xff] }
 0x142   :  { %2207 = vmatmul.mubr.f32.vlgmr.msra.gmra.mrb[0].mxu0 %v6361_v50  ;;  %3004 = vmatprep.subr.bf16.mxu1 %v6362_v29  ;;  %v6373_v29 = vld [vmem:[#allocation47_spill] sm:$0xff] }
 0x143   :  { %3386 = vmatpush1.bf16.msra.mxu0 %v6363_v20  ;;  %2344 = vmatprep.mubr.f32.mxu0 %v6365_v55  ;;  %v6374_v20 = vld [vmem:[#allocation53_spill] sm:$0xff]  ;;  %v6376_v55 = vld [vmem:[#allocation62_spill] sm:$0xff] }
 0x144   :  { %3388 = vmatprep.subr.bf16.mxu0 %v6366_v45  ;;  %v6377_v45 = vld [vmem:[#allocation59_spill] sm:$0xff] }
 0x145   :  { %3006 = vmatpush1.bf16.msra.mxu1 %v6367_v41  ;;  %v6378_v41 = vld [vmem:[#allocation66_spill] sm:$0xff] }
 0x146   :  { %3008 = vmatprep.subr.bf16.mxu1 %v6368_v9  ;;  %v6379_v9 = vld [vmem:[#allocation68_spill] sm:$0xff] }
 0x147   :  { %3390 = vmatpush1.bf16.msra.mxu0 %v6369_v48  ;;  %v6380_v48 = vld [vmem:[#allocation74_spill] sm:$0xff] }
 0x148   :  { %3392 = vmatprep.subr.bf16.mxu0 %v6370_v36  ;;  %v6381_v36 = vld [vmem:[#allocation71_spill] sm:$0xff] }
 0x149   :  { %3010 = vmatpush1.bf16.msra.mxu1 %v6371_v25  ;;  %v6382_v25 = vld [vmem:[#allocation78_spill] sm:$0xff] }
 0x14a   :  { %3012 = vmatprep.subr.bf16.mxu1 %v6372_v17  ;;  %v6383_v17 = vld [vmem:[#allocation80_spill] sm:$0xff] }
 0x14b   :  { %3394 = vmatpush1.bf16.msra.mxu0 %v6373_v29  ;;  %v6384_v29 = vld [vmem:[#allocation86_spill] sm:$0xff] }
 0x14c   :  { %3396 = vmatprep.subr.bf16.mxu0 %v6374_v20  ;;  %v6385_v20 = vld [vmem:[#allocation83_spill] sm:$0xff] }
 0x14d   :  { %3014 = vmatpush1.bf16.msra.mxu1 %v6375_v24  ;;  %v6386_v24 = vld [vmem:[#allocation90_spill] sm:$0xff] }
 0x14e   :  { %3016 = vmatprep.subr.bf16.mxu1 %v6376_v55  ;;  %v6387_v55 = vld [vmem:[#allocation92_spill] sm:$0xff] }
 0x14f   :  { %3398 = vmatpush1.bf16.msra.mxu0 %v6377_v45  ;;  %v6388_v45 = vld [vmem:[#allocation98_spill] sm:$0xff] }
 0x150   :  { %3400 = vmatprep.subr.bf16.mxu0 %v6378_v41  ;;  %v6389_v41 = vld [vmem:[#allocation95_spill] sm:$0xff] }
 0x151   :  { %3018 = vmatpush1.bf16.msra.mxu1 %v6379_v9  ;;  %v6390_v9 = vld [vmem:[#allocation102_spill] sm:$0xff] }
 0x152   :  { %3020 = vmatprep.subr.bf16.mxu1 %v6380_v48  ;;  %v6391_v48 = vld [vmem:[#allocation104_spill] sm:$0xff] }
 0x153   :  { %3402 = vmatpush1.bf16.msra.mxu0 %v6381_v36  ;;  %v6392_v36 = vld [vmem:[#allocation110_spill] sm:$0xff] }
 0x154   :  { %3404 = vmatprep.subr.bf16.mxu0 %v6382_v25  ;;  %v6393_v25 = vld [vmem:[#allocation107_spill] sm:$0xff] }
 0x155   :  { %3022 = vmatpush1.bf16.msra.mxu1 %v6383_v17  ;;  %v6394_v17 = vld [vmem:[#allocation114_spill] sm:$0xff] }
 0x156   :  { %3024 = vmatprep.subr.bf16.mxu1 %v6384_v29  ;;  %v6395_v29 = vld [vmem:[#allocation116_spill] sm:$0xff] }
 0x157   :  { %3406 = vmatpush1.bf16.msra.mxu0 %v6385_v20  ;;  %v6396_v20 = vld [vmem:[#allocation122_spill] sm:$0xff] }
 0x158   :  { %3408 = vmatprep.subr.bf16.mxu0 %v6386_v24  ;;  %v6397_v24 = vld [vmem:[#allocation119_spill] sm:$0xff] }
 0x159   :  { %3026 = vmatpush1.bf16.msra.mxu1 %v6387_v55  ;;  %v6398_v55 = vld [vmem:[#allocation126_spill] sm:$0xff] }
 0x15a   :  { %3028 = vmatprep.subr.bf16.mxu1 %v6388_v45  ;;  %v6399_v45 = vld [vmem:[#allocation128_spill] sm:$0xff] }
 0x15b   :  { %3410 = vmatpush1.bf16.msra.mxu0 %v6389_v41  ;;  %v6400_v41 = vld [vmem:[#allocation134_spill] sm:$0xff] }
 0x15c   :  { %3412 = vmatprep.subr.bf16.mxu0 %v6390_v9  ;;  %v6401_v9 = vld [vmem:[#allocation131_spill] sm:$0xff] }
 0x15d   :  { %3030 = vmatpush1.bf16.msra.mxu1 %v6391_v48  ;;  %v6402_v48 = vld [vmem:[#allocation138_spill] sm:$0xff] }
 0x15e   :  { %3032 = vmatprep.subr.bf16.mxu1 %v6392_v36  ;;  %v6403_v36 = vld [vmem:[#allocation140_spill] sm:$0xff] }
 0x15f   :  { %3414 = vmatpush1.bf16.msra.mxu0 %v6393_v25  ;;  %v6404_v25 = vld [vmem:[#allocation146_spill] sm:$0xff] }
 0x160   :  { %3416 = vmatprep.subr.bf16.mxu0 %v6394_v17  ;;  %v6405_v17 = vld [vmem:[#allocation143_spill] sm:$0xff] }
 0x161   :  { %3034 = vmatpush1.bf16.msra.mxu1 %v6395_v29  ;;  %v6406_v29 = vld [vmem:[#allocation150_spill] sm:$0xff] }
 0x162   :  { %3036 = vmatprep.subr.bf16.mxu1 %v6396_v20  ;;  %v6407_v20 = vld [vmem:[#allocation152_spill] sm:$0xff] }
 0x163   :  { %3418 = vmatpush1.bf16.msra.mxu0 %v6397_v24  ;;  %v6408_v24 = vld [vmem:[#allocation158_spill] sm:$0xff] }
 0x164   :  { %3420 = vmatprep.subr.bf16.mxu0 %v6398_v55  ;;  %v6409_v55 = vld [vmem:[#allocation155_spill] sm:$0xff] }
 0x165   :  { %3038 = vmatpush1.bf16.msra.mxu1 %v6399_v45  ;;  %v6410_v45 = vld [vmem:[#allocation162_spill] sm:$0xff] }
 0x166   :  { %3040 = vmatprep.subr.bf16.mxu1 %v6400_v41  ;;  %v6411_v41 = vld [vmem:[#allocation164_spill] sm:$0xff] }
 0x167   :  { %3422 = vmatpush1.bf16.msra.mxu0 %v6401_v9  ;;  %v6412_v9 = vld [vmem:[#allocation170_spill] sm:$0xff] }
 0x168   :  { %3424 = vmatprep.subr.bf16.mxu0 %v6402_v48  ;;  %v6413_v48 = vld [vmem:[#allocation167_spill] sm:$0xff] }
 0x169   :  { %3042 = vmatpush1.bf16.msra.mxu1 %v6403_v36  ;;  %v6414_v36 = vld [vmem:[#allocation174_spill] sm:$0xff] }
 0x16a   :  { %3044 = vmatprep.subr.bf16.mxu1 %v6404_v25  ;;  %v6415_v25 = vld [vmem:[#allocation176_spill] sm:$0xff] }
 0x16b   :  { %3426 = vmatpush1.bf16.msra.mxu0 %v6405_v17  ;;  %v6416_v17 = vld [vmem:[#allocation182_spill] sm:$0xff] }
 0x16c   :  { %3428 = vmatprep.subr.bf16.mxu0 %v6406_v29  ;;  %v6417_v29 = vld [vmem:[#allocation179_spill] sm:$0xff] }
 0x16d   :  { %3046 = vmatpush1.bf16.msra.mxu1 %v6407_v20  ;;  %v6418_v20 = vld [vmem:[#allocation186_spill] sm:$0xff] }
 0x16e   :  { %3048 = vmatprep.subr.bf16.mxu1 %v6408_v24  ;;  %v6419_v24 = vld [vmem:[#allocation188_spill] sm:$0xff] }
 0x16f   :  { %3430 = vmatpush1.bf16.msra.mxu0 %v6409_v55  ;;  %v6420_v55 = vld [vmem:[#allocation194_spill] sm:$0xff] }
 0x170   :  { %3432 = vmatprep.subr.bf16.mxu0 %v6410_v45  ;;  %v6421_v45 = vld [vmem:[#allocation15_spill] sm:$0xff] }
 0x171   :  { %3050 = vmatpush1.bf16.msra.mxu1 %v6411_v41  ;;  %v6422_v41 = vand.u32 4294901760, %v6421_v45  ;;  %v6436_v45 = vld [vmem:[#allocation26_spill] sm:$0xff] }
 0x172   :  { %3052 = vmatprep.subr.bf16.mxu1 %v6412_v9  ;;  %v6424_v9 = vand.u32 4294901760, %v6423_v23  ;;  %v6437_v23 = vand.u32 4294901760, %v6436_v45  ;;  %v6450_v45 = vld [vmem:[#allocation32_spill] sm:$0xff] }
 0x173   :  { %3434 = vmatpush1.bf16.msra.mxu0 %v6413_v48  ;;  %v6425_v48 = vld [vmem:[#allocation191_spill] sm:$0xff] }
 0x174   :  { %3436 = vmatprep.subr.bf16.mxu0 %v6414_v36  ;;  %v3063_v1 = vpack.c.bf16 %v6424_v9, %v6422_v41  ;;  %v6426_v36 = vld [vmem:[#allocation199_spill] sm:$0xff]  ;;  %v6438_v9 = vld [vmem:[#allocation28_spill] sm:$0xff] }
 0x175   :  { %3054 = vmatpush1.bf16.msra.mxu1 %v6415_v25  ;;  %v6427_v25 = vld [vmem:[#allocation17_spill] sm:$0xff]  ;;  %v6439_v41 = vand.u32 4294901760, %v6438_v9  ;;  %v6451_v9 = vand.u32 4294901760, %v6450_v45  ;;  %v6465_v45 = vld [vmem:[#allocation42_spill] sm:$0xff] }
 0x176   :  { %3056 = vmatprep.subr.bf16.mxu1 %v6416_v17  ;;  %v6428_v37 = vand.u32 4294901760, %v6427_v25  ;;  %v6429_v17 = vld [vmem:[#allocation19_spill] sm:$0xff] }
 0x177   :  { %3438 = vmatpush1.bf16.msra.mxu0 %v6417_v29  ;;  %v6430_v8 = vand.u32 4294901760, %v6429_v17  ;;  %v6444_v17 = vand.u32 4294901760, %v6443_v40  ;;  %v6456_v40 = vld [vmem:[#allocation39_spill] sm:$0xff] }
 0x178   :  { %3440 = vmatprep.subr.bf16.mxu0 %v6418_v20  ;;  %v6432_v20 = vld [vmem:[#allocation21_spill] sm:$0xff] }
 0x179   :  { %3058 = vmatpush1.bf16.msra.mxu1 %v6419_v24  ;;  %v3447_v29 = vpack.c.bf16 %v6430_v8, %v6428_v37  ;;  %v6433_v24 = vand.u32 4294901760, %v6432_v20  ;;  %v6445_v8 = vand.u32 4294901760, %v6357_v22  ;;  %v6446_v20 = vld [vmem:[#allocation30_spill] sm:$0xff]  ;;  %v6458_v22 = vld [vmem:[#allocation40_spill] sm:$0xff] }
 0x17a   :  { %3060 = vmatprep.subr.bf16.mxu1 %v6420_v55  ;;  %v6435_v55 = vand.u32 4294901760, %v6434_v47  ;;  %v6447_v47 = vand.u32 4294901760, %v6446_v20 }
 0x17b   :  { %3442 = vmatpush1.bf16.msra.mxu0 %v6425_v48  ;;  %v3067_v48 = vpack.c.bf16 %v6439_v41, %v6437_v23  ;;  %v6452_v23 = vld [vmem:[#allocation34_spill] sm:$0xff] }
 0x17c   :  { %3444 = vmatprep.subr.bf16.mxu0 %v6426_v36  ;;  %v3065_v15 = vpack.c.bf16 %v6435_v55, %v6433_v24  ;;  %v6441_v36 = vld [vmem:[#allocation24_spill] sm:$0xff]  ;;  %v6448_v24 = vld [vmem:[#allocation31_spill] sm:$0xff]  ;;  %v6453_v41 = vand.u32 4294901760, %v6452_v23 }
 0x17d   :  { %3062 = vmatpush1.bf16.msra.mxu1 %v6431_v11  ;;  %v6442_v25 = vand.u32 4294901760, %v6441_v36  ;;  %v6454_v11 = vld [vmem:[#allocation198_spill] sm:$0xff]  ;;  %v6455_v36 = vand.u32 4294901760, %v6361_v50  ;;  %v6467_v23 = vld [vmem:[#allocation43_spill] sm:$0xff] }
 0x17e   :  { %3064 = vmatprep.subr.bf16.mxu1 %v3063_v1  ;;  %v6449_v1 = vand.u32 4294901760, %v6448_v24  ;;  %v6468_v50 = vand.u32 4294901760, %v6467_v23  ;;  %v6483_v23 = vld [vmem:[#allocation55_spill] sm:$0xff] }
 0x17f   :  { %3446 = vmatpush1.bf16.msra.mxu0 %v6440_v2  ;;  %v3449_v37 = vpack.c.bf16 %v6444_v17, %v6442_v25  ;;  %v3069_v2 = vpack.c.bf16 %v6453_v41, %v6451_v9  ;;  %v6459_v25 = vand.u32 4294901760, %v6458_v22  ;;  %v6466_v9 = vand.u32 4294901760, %v6465_v45 }
 0x180   :  { %3448 = vmatprep.subr.bf16.mxu0 %v3447_v29  ;;  %1064 = vmatmul.mubr.f32.vlgmr.msra.gmra.mrb[0].mxu1 %v6445_v8  ;;  %v3451_v55 = vpack.c.bf16 %v6449_v1, %v6447_v47  ;;  %v6457_v29 = vand.u32 4294901760, %v6456_v40  ;;  %v6460_v8 = vld [vmem:[#allocation35_spill] sm:$0xff]  ;;  %v6464_v1 = vld [vmem:[#allocation208_spill] sm:$0xff]  ;;  %v6471_v40 = vld [vmem:[#allocation46_spill] sm:$0xff] }
 0x181   :  { %3066 = vmatpush1.bf16.msra.mxu1 %v3065_v15  ;;  %1327 = vmatprep.mubr.f32.mxu1 %v6454_v11  ;;  %v6461_v20 = vand.u32 4294901760, %v6460_v8  ;;  %v6462_v15 = vld [vmem:[#allocation37_spill] sm:$0xff]  ;;  %v3455_v41 = vpack.c.bf16 %v6468_v50, %v6466_v9  ;;  %v6472_v22 = vand.u32 4294901760, %v6471_v40  ;;  %v6475_v8 = vld [vmem:[#allocation52_spill] sm:$0xff]  ;;  %v6481_v9 = vld [vmem:[#allocation54_spill] sm:$0xff]  ;;  %v6484_v50 = vand.u32 4294901760, %v6483_v23 }
 0x182   :  { %2348 = vmatmul.mubr.f32.vlgmr.msra.gmra.mrb[0].mxu0 %v6455_v36  ;;  %3068 = vmatprep.subr.bf16.mxu1 %v3067_v48  ;;  %v3071_v17 = vpack.c.bf16 %v6459_v25, %v6457_v29  ;;  %v6463_v47 = vand.u32 4294901760, %v6462_v15  ;;  %v6469_v48 = vld [vmem:[#allocation45_spill] sm:$0xff]  ;;  %v6476_v15 = vand.u32 4294901760, %v6475_v8  ;;  %v6487_v40 = vld [vmem:[#allocation58_spill] sm:$0xff]  ;;  %v6491_v8 = vld [vmem:[#allocation64_spill] sm:$0xff] }
 0x183   :  { %3450 = vmatpush1.bf16.msra.mxu0 %v3449_v37  ;;  %2611 = vmatprep.mubr.f32.mxu0 %v6464_v1  ;;  %v6470_v36 = vand.u32 4294901760, %v6469_v48  ;;  %v6473_v37 = vld [vmem:[#allocation51_spill] sm:$0xff]  ;;  %v6479_v1 = vld [vmem:[#allocation49_spill] sm:$0xff] }
 0x184   :  { %v3453_v24 = vpack.c.bf16 %v6463_v47, %v6461_v20  ;;  %3452 = vmatprep.subr.bf16.mxu0 %v3451_v55  ;;  %v6474_v25 = vand.u32 4294901760, %v6473_v37  ;;  %v6477_v47 = vld [vmem:[#allocation48_spill] sm:$0xff]  ;;  %v6480_v45 = vand.u32 4294901760, %v6479_v1  ;;  %v6499_v23 = vld [vmem:[#allocation67_spill] sm:$0xff] }
 0x185   :  { %3070 = vmatpush1.bf16.msra.mxu1 %v3069_v2  ;;  %v3073_v29 = vpack.c.bf16 %v6472_v22, %v6470_v36  ;;  %v6478_v55 = vand.u32 4294901760, %v6477_v47  ;;  %v6482_v2 = vand.u32 4294901760, %v6481_v9  ;;  %v6485_v36 = vld [vmem:[#allocation56_spill] sm:$0xff]  ;;  %v6488_v22 = vand.u32 4294901760, %v6487_v40  ;;  %v6503_v40 = vld [vmem:[#allocation70_spill] sm:$0xff] }
 0x186   :  { %3072 = vmatprep.subr.bf16.mxu1 %v3071_v17  ;;  %v3075_v20 = vpack.c.bf16 %v6476_v15, %v6474_v25  ;;  %v6486_v17 = vand.u32 4294901760, %v6485_v36  ;;  %v6489_v25 = vld [vmem:[#allocation63_spill] sm:$0xff]  ;;  %v6492_v15 = vand.u32 4294901760, %v6491_v8  ;;  %v6493_v1 = vld [vmem:[#allocation60_spill] sm:$0xff] }
 0x187   :  { %3454 = vmatpush1.bf16.msra.mxu0 %v3453_v24  ;;  %v3457_v11 = vpack.c.bf16 %v6480_v45, %v6478_v55  ;;  %v3459_v48 = vpack.c.bf16 %v6484_v50, %v6482_v2  ;;  %v6490_v24 = vand.u32 4294901760, %v6489_v25  ;;  %v6495_v55 = vld [vmem:[#allocation61_spill] sm:$0xff]  ;;  %v6500_v50 = vand.u32 4294901760, %v6499_v23  ;;  %v6507_v8 = vld [vmem:[#allocation76_spill] sm:$0xff]  ;;  %v6515_v23 = vld [vmem:[#allocation79_spill] sm:$0xff] }
 0x188   :  { %3456 = vmatprep.subr.bf16.mxu0 %v3455_v41  ;;  %v3077_v37 = vpack.c.bf16 %v6488_v22, %v6486_v17  ;;  %v6494_v41 = vand.u32 4294901760, %v6493_v1  ;;  %v6496_v45 = vand.u32 4294901760, %v6495_v55  ;;  %v6497_v2 = vld [vmem:[#allocation65_spill] sm:$0xff]  ;;  %v6504_v22 = vand.u32 4294901760, %v6503_v40  ;;  %v6519_v40 = vld [vmem:[#allocation82_spill] sm:$0xff] }
 0x189   :  { %3074 = vmatpush1.bf16.msra.mxu1 %v3073_v29  ;;  %v3079_v47 = vpack.c.bf16 %v6492_v15, %v6490_v24  ;;  %v6498_v29 = vand.u32 4294901760, %v6497_v2  ;;  %v6501_v17 = vld [vmem:[#allocation69_spill] sm:$0xff]  ;;  %v6505_v24 = vld [vmem:[#allocation75_spill] sm:$0xff]  ;;  %v6508_v15 = vand.u32 4294901760, %v6507_v8  ;;  %v6523_v8 = vld [vmem:[#allocation88_spill] sm:$0xff] }
 0x18a   :  { %3076 = vmatprep.subr.bf16.mxu1 %v3075_v20  ;;  %v3461_v9 = vpack.c.bf16 %v6496_v45, %v6494_v41  ;;  %v6502_v20 = vand.u32 4294901760, %v6501_v17  ;;  %v6509_v41 = vld [vmem:[#allocation72_spill] sm:$0xff]  ;;  %v6511_v55 = vld [vmem:[#allocation73_spill] sm:$0xff] }
 0x18b   :  { %3458 = vmatpush1.bf16.msra.mxu0 %v3457_v11  ;;  %v3463_v36 = vpack.c.bf16 %v6500_v50, %v6498_v29  ;;  %v6506_v11 = vand.u32 4294901760, %v6505_v24  ;;  %v6512_v45 = vand.u32 4294901760, %v6511_v55  ;;  %v6513_v29 = vld [vmem:[#allocation77_spill] sm:$0xff]  ;;  %v6516_v50 = vand.u32 4294901760, %v6515_v23  ;;  %v6531_v23 = vld [vmem:[#allocation91_spill] sm:$0xff] }
 0x18c   :  { %3460 = vmatprep.subr.bf16.mxu0 %v3459_v48  ;;  %v3081_v25 = vpack.c.bf16 %v6504_v22, %v6502_v20  ;;  %v6510_v48 = vand.u32 4294901760, %v6509_v41  ;;  %v6517_v20 = vld [vmem:[#allocation81_spill] sm:$0xff]  ;;  %v6520_v22 = vand.u32 4294901760, %v6519_v40  ;;  %v6535_v40 = vld [vmem:[#allocation94_spill] sm:$0xff] }
 0x18d   :  { %3078 = vmatpush1.bf16.msra.mxu1 %v3077_v37  ;;  %v3083_v1 = vpack.c.bf16 %v6508_v15, %v6506_v11  ;;  %v6514_v37 = vand.u32 4294901760, %v6513_v29  ;;  %v6521_v11 = vld [vmem:[#allocation87_spill] sm:$0xff]  ;;  %v6524_v15 = vand.u32 4294901760, %v6523_v8  ;;  %v6527_v55 = vld [vmem:[#allocation85_spill] sm:$0xff]  ;;  %v6539_v8 = vld [vmem:[#allocation100_spill] sm:$0xff] }
 0x18e   :  { %3080 = vmatprep.subr.bf16.mxu1 %v3079_v47  ;;  %v3465_v2 = vpack.c.bf16 %v6512_v45, %v6510_v48  ;;  %v6518_v47 = vand.u32 4294901760, %v6517_v20  ;;  %v6525_v48 = vld [vmem:[#allocation84_spill] sm:$0xff]  ;;  %v6528_v45 = vand.u32 4294901760, %v6527_v55 }
 0x18f   :  { %3462 = vmatpush1.bf16.msra.mxu0 %v3461_v9  ;;  %v3467_v17 = vpack.c.bf16 %v6516_v50, %v6514_v37  ;;  %v6522_v9 = vand.u32 4294901760, %v6521_v11  ;;  %v6529_v37 = vld [vmem:[#allocation89_spill] sm:$0xff]  ;;  %v6532_v50 = vand.u32 4294901760, %v6531_v23  ;;  %v6547_v23 = vand.u32 4294901760, %v6302_v53 }
 0x190   :  { %3464 = vmatprep.subr.bf16.mxu0 %v3463_v36  ;;  %v3085_v24 = vpack.c.bf16 %v6520_v22, %v6518_v47  ;;  %v6526_v36 = vand.u32 4294901760, %v6525_v48  ;;  %v6533_v47 = vld [vmem:[#allocation93_spill] sm:$0xff]  ;;  %v6536_v22 = vand.u32 4294901760, %v6535_v40  ;;  %v6554_v53 = vand.u32 4294901760, %v6171_v38 }
 0x191   :  { %3082 = vmatpush1.bf16.msra.mxu1 %v3081_v25  ;;  %v3087_v41 = vpack.c.bf16 %v6524_v15, %v6522_v9  ;;  %v6530_v25 = vand.u32 4294901760, %v6529_v37  ;;  %v6537_v9 = vld [vmem:[#allocation99_spill] sm:$0xff]  ;;  %v6540_v15 = vand.u32 4294901760, %v6539_v8  ;;  %v6545_v37 = vand.u32 4294901760, %v6300_v60 }
 0x192   :  { %3084 = vmatprep.subr.bf16.mxu1 %v3083_v1  ;;  %v3469_v29 = vpack.c.bf16 %v6528_v45, %v6526_v36  ;;  %v6534_v1 = vand.u32 4294901760, %v6533_v47  ;;  %v6542_v36 = vld [vmem:[#allocation97_spill] sm:$0xff]  ;;  %v6552_v60 = vand.u32 4294901760, %v6307_v57  ;;  %v6559_v57 = vand.u32 4294901760, %v6227_v0 }
 0x193   :  { %3466 = vmatpush1.bf16.msra.mxu0 %v3465_v2  ;;  %v3471_v20 = vpack.c.bf16 %v6532_v50, %v6530_v25  ;;  %v6538_v2 = vand.u32 4294901760, %v6537_v9  ;;  %v6543_v55 = vand.u32 4294901760, %v6542_v36  ;;  %v6561_v38 = vand.u32 4294901760, %v6231_v51 }
 0x194   :  { %3468 = vmatprep.subr.bf16.mxu0 %v3467_v17  ;;  %v3089_v11 = vpack.c.bf16 %v6536_v22, %v6534_v1  ;;  %v6541_v17 = vand.u32 4294901760, %v6297_v26  ;;  %v6549_v26 = vand.u32 4294901760, %v6304_v34  ;;  %v6556_v34 = vand.u32 4294901760, %v6228_v30 }
 0x195   :  { %3086 = vmatpush1.bf16.msra.mxu1 %v3085_v24  ;;  %v3091_v48 = vpack.c.bf16 %v6540_v15, %v6538_v2  ;;  %v6544_v24 = vand.u32 4294901760, %v6299_v6  ;;  %v6551_v6 = vand.u32 4294901760, %v6306_v14  ;;  %v6558_v14 = vand.u32 4294901760, %v6226_v32 }
 0x196   :  { %3088 = vmatprep.subr.bf16.mxu1 %v3087_v41  ;;  %v3473_v45 = vpack.c.bf16 %v6543_v55, %v6541_v17  ;;  %v6546_v41 = vand.u32 4294901760, %v6301_v28  ;;  %v6553_v28 = vand.u32 4294901760, %v6308_v21  ;;  %v6560_v21 = vand.u32 4294901760, %v6230_v56 }
 0x197   :  { %3470 = vmatpush1.bf16.msra.mxu0 %v3469_v29  ;;  %v3475_v25 = vpack.c.bf16 %v6545_v37, %v6544_v24  ;;  %v6548_v29 = vand.u32 4294901760, %v6303_v54  ;;  %v6555_v54 = vand.u32 4294901760, %v6225_v31  ;;  %v3481_v9 = vpack.c.bf16 %v6559_v57, %v6558_v14  ;;  %v6577_v24 = vld [vmem:[#allocation151_spill] sm:$0xff]  ;;  %v6603_v14 = vld [vmem:[#allocation177_spill] sm:$0xff] }
 0x198   :  { %3472 = vmatprep.subr.bf16.mxu0 %v3471_v20  ;;  %v3093_v50 = vpack.c.bf16 %v6547_v23, %v6546_v41  ;;  %v6550_v20 = vand.u32 4294901760, %v6305_v46  ;;  %v3479_v40 = vpack.c.bf16 %v6553_v28, %v6552_v60  ;;  %v6557_v46 = vand.u32 4294901760, %v6229_v44  ;;  %v6582_v41 = vld [vmem:[#allocation160_spill] sm:$0xff] }
 0x199   :  { %3090 = vmatpush1.bf16.msra.mxu1 %v3089_v11  ;;  %v3095_v47 = vpack.c.bf16 %v6549_v26, %v6548_v29  ;;  %v3097_v22 = vpack.c.bf16 %v6555_v54, %v6554_v53  ;;  %v3483_v2 = vpack.c.bf16 %v6561_v38, %v6560_v21  ;;  %v6562_v31 = vand.u32 4294901760, %v6232_v18  ;;  %v6587_v26 = vld [vmem:[#allocation163_spill] sm:$0xff]  ;;  %v6593_v60 = vld [vmem:[#allocation172_spill] sm:$0xff]  ;;  %v6597_v53 = vld [vmem:[#allocation169_spill] sm:$0xff] }
 0x19a   :  { %3092 = vmatprep.subr.bf16.mxu1 %v3091_v48  ;;  %v3477_v1 = vpack.c.bf16 %v6551_v6, %v6550_v20  ;;  %v3099_v11 = vpack.c.bf16 %v6557_v46, %v6556_v34  ;;  %v6563_v30 = vand.u32 4294901760, %v6233_v58  ;;  %v6564_v44 = vand.u32 4294901760, %v6236_v5  ;;  %v6590_v20 = vld [vmem:[#allocation166_spill] sm:$0xff]  ;;  %v6601_v46 = vld [vmem:[#allocation175_spill] sm:$0xff] }
 0x19b   :  { %3474 = vmatpush1.bf16.msra.mxu0 %v3473_v45  ;;  %v6565_v32 = vand.u32 4294901760, %v6237_v3  ;;  %v6566_v0 = vand.u32 4294901760, %v6234_v35  ;;  %v6567_v56 = vand.u32 4294901760, %v6235_v19  ;;  %v6568_v51 = vand.u32 4294901760, %v6238_v13  ;;  %v6607_v38 = vld [vmem:[#allocation183_spill] sm:$0xff] }
 0x19c   :  { %3476 = vmatprep.subr.bf16.mxu0 %v3475_v25  ;;  %v3101_v8 = vpack.c.bf16 %v6563_v30, %v6562_v31  ;;  %v6569_v18 = vand.u32 4294901760, %v6239_v12  ;;  %v6570_v58 = vand.u32 4294901760, %v6240_v59  ;;  %v6571_v5 = vand.u32 4294901760, %v6241_v4  ;;  %v6609_v31 = vld [vmem:[#allocation184_spill] sm:$0xff] }
 0x19d   :  { %3094 = vmatpush1.bf16.msra.mxu1 %v3093_v50  ;;  %v3103_v15 = vpack.c.bf16 %v6565_v32, %v6564_v44  ;;  %v3485_v48 = vpack.c.bf16 %v6567_v56, %v6566_v0  ;;  %v6572_v3 = vand.u32 4294901760, %v6244_v63  ;;  %v6573_v35 = vand.u32 4294901760, %v6245_v61  ;;  %v6611_v44 = vld [vmem:[#allocation180_spill] sm:$0xff] }
 0x19e   :  { %3096 = vmatprep.subr.bf16.mxu1 %v3095_v47  ;;  %v3487_v17 = vpack.c.bf16 %v6569_v18, %v6568_v51  ;;  %v3105_v36 = vpack.c.bf16 %v6571_v5, %v6570_v58  ;;  %v6574_v19 = vand.u32 4294901760, %v6242_v43  ;;  %v6575_v13 = vand.u32 4294901760, %v6243_v10  ;;  %v6617_v18 = vld [vmem:[#allocation187_spill] sm:$0xff]  ;;  %v6619_v5 = vld [vmem:[#allocation189_spill] sm:$0xff] }
 0x19f   :  { %3478 = vmatpush1.bf16.msra.mxu0 %v3477_v1  ;;  %v3107_v55 = vpack.c.bf16 %v6573_v35, %v6572_v3  ;;  %v6576_v12 = vand.u32 4294901760, %v6246_v52  ;;  %v6578_v59 = vand.u32 4294901760, %v6577_v24  ;;  %v6579_v4 = vand.u32 4294901760, %v6322_v16  ;;  %v6621_v3 = vld [vmem:[#allocation190_spill] sm:$0xff] }
 0x1a0   :  { %3480 = vmatprep.subr.bf16.mxu0 %v3479_v40  ;;  %v3489_v45 = vpack.c.bf16 %v6575_v13, %v6574_v19  ;;  %v6580_v63 = vand.u32 4294901760, %v6321_v62  ;;  %v6581_v61 = vand.u32 4294901760, %v6252_v7  ;;  %v6583_v43 = vand.u32 4294901760, %v6582_v41  ;;  %v6623_v19 = vld [vmem:[#allocation195_spill] sm:$0xff] }
 0x1a1   :  { %3098 = vmatpush1.bf16.msra.mxu1 %v3097_v22  ;;  %v3491_v37 = vpack.c.bf16 %v6578_v59, %v6576_v12  ;;  %v6584_v10 = vand.u32 4294901760, %v6325_v42  ;;  %v6585_v52 = vand.u32 4294901760, %v6251_v39  ;;  %v6586_v29 = vand.u32 4294901760, %v6254_v27  ;;  %v6595_v39 = vld [vmem:[#allocation168_spill] sm:$0xff]  ;;  %v6599_v22 = vld [vmem:[#allocation173_spill] sm:$0xff] }
 0x1a2   :  { %3100 = vmatprep.subr.bf16.mxu1 %v3099_v11  ;;  %v3109_v25 = vpack.c.bf16 %v6580_v63, %v6579_v4  ;;  %v3111_v23 = vpack.c.bf16 %v6583_v43, %v6581_v61  ;;  %v6588_v16 = vand.u32 4294901760, %v6587_v26  ;;  %v6589_v62 = vand.u32 4294901760, %v6328_v49  ;;  %v6627_v59 = vld [vmem:[#allocation192_spill] sm:$0xff]  ;;  %v6629_v4 = vld [vmem:[#allocation193_spill] sm:$0xff] }
 0x1a3   :  { %3482 = vmatpush1.bf16.msra.mxu0 %v3481_v9  ;;  %v3493_v50 = vpack.c.bf16 %v6585_v52, %v6584_v10  ;;  %v6591_v7 = vand.u32 4294901760, %v6590_v20  ;;  %v6592_v1 = vand.u32 4294901760, %v6259_v33  ;;  %v6594_v42 = vand.u32 4294901760, %v6593_v60  ;;  %v6605_v9 = vld [vmem:[#allocation178_spill] sm:$0xff]  ;;  %v6631_v61 = vld [vmem:[#allocation197_spill] sm:$0xff]  ;;  %v6633_v43 = vld [vmem:[#allocation200_spill] sm:$0xff] }
 0x1a4   :  { %3484 = vmatprep.subr.bf16.mxu0 %v3483_v2  ;;  %v3495_v47 = vpack.c.bf16 %v6588_v16, %v6586_v29  ;;  %v6596_v40 = vand.u32 4294901760, %v6595_v39  ;;  %v6598_v27 = vand.u32 4294901760, %v6597_v53  ;;  %v6600_v34 = vand.u32 4294901760, %v6599_v22  ;;  %v6635_v52 = vld [vmem:[#allocation202_spill] sm:$0xff]  ;;  %v6637_v29 = vld [vmem:[#allocation203_spill] sm:$0xff]  ;;  %v6652_v22 = vld [vmem:[#allocation29_spill] sm:$0xff] }
 0x1a5   :  { %3102 = vmatpush1.bf16.msra.mxu1 %v3101_v8  ;;  %v3113_v6 = vpack.c.bf16 %v6591_v7, %v6589_v62  ;;  %v3115_v28 = vpack.c.bf16 %v6594_v42, %v6592_v1  ;;  %v6602_v49 = vand.u32 4294901760, %v6601_v46  ;;  %v6604_v57 = vand.u32 4294901760, %v6603_v14  ;;  %v6641_v20 = vld [vmem:[#allocation206_spill] sm:$0xff]  ;;  %v6645_v42 = vld [vmem:[#allocation209_spill] sm:$0xff]  ;;  %v6649_v53 = vld [vmem:[#allocation27_spill] sm:$0xff] }
 0x1a6   :  { %3104 = vmatprep.subr.bf16.mxu1 %v3103_v15  ;;  %v3497_v54 = vpack.c.bf16 %v6598_v27, %v6596_v40  ;;  %v6606_v33 = vand.u32 4294901760, %v6605_v9  ;;  %v6608_v2 = vand.u32 4294901760, %v6607_v38  ;;  %v6610_v30 = vand.u32 4294901760, %v6609_v31  ;;  %v6613_v15 = vld [vmem:[#allocation181_spill] sm:$0xff]  ;;  %v6643_v1 = vld [vmem:[#allocation14_spill] sm:$0xff]  ;;  %v6648_v40 = vld [vmem:[#allocation212_spill] sm:$0xff] }
 0x1a7   :  { %3486 = vmatpush1.bf16.msra.mxu0 %v3485_v48  ;;  %v3499_v11 = vpack.c.bf16 %v6602_v49, %v6600_v34  ;;  %v6612_v32 = vand.u32 4294901760, %v6611_v44  ;;  %v6614_v0 = vand.u32 4294901760, %v6613_v15  ;;  %v6615_v48 = vld [vmem:[#allocation185_spill] sm:$0xff]  ;;  %v6622_v35 = vand.u32 4294901760, %v6621_v3  ;;  %v6644_v60 = vld [vmem:[#allocation18_spill] sm:$0xff]  ;;  %v6650_v27 = vld [vmem:[#allocation23_spill] sm:$0xff] }
 0x1a8   :  { %3488 = vmatprep.subr.bf16.mxu0 %v3487_v17  ;;  %v3117_v21 = vpack.c.bf16 %v6606_v33, %v6604_v57  ;;  %v3119_v8 = vpack.c.bf16 %v6610_v30, %v6608_v2  ;;  %v6616_v51 = vand.u32 4294901760, %v6615_v48  ;;  %v6618_v17 = vand.u32 4294901760, %v6617_v18  ;;  %v6647_v39 = vld [vmem:[#allocation198_spill] sm:$0xff]  ;;  %v6653_v34 = vld [vmem:[#allocation33_spill] sm:$0xff]  ;;  %v6655_v49 = vld [vmem:[#allocation36_spill] sm:$0xff] }
 0x1a9   :  { %3106 = vmatpush1.bf16.msra.mxu1 %v3105_v36  ;;  %v3501_v56 = vpack.c.bf16 %v6614_v0, %v6612_v32  ;;  %v6620_v36 = vand.u32 4294901760, %v6619_v5  ;;  %v6624_v13 = vand.u32 4294901760, %v6623_v19  ;;  %v6630_v63 = vand.u32 4294901760, %v6629_v4  ;;  %v6654_v46 = vld [vmem:[#allocation38_spill] sm:$0xff]  ;;  %v6657_v14 = vld [vmem:[#allocation44_spill] sm:$0xff]  ;;  %v6659_v9 = vld [vmem:[#allocation47_spill] sm:$0xff] }
 0x1aa   :  { %3108 = vmatprep.subr.bf16.mxu1 %v3107_v55  ;;  %v3503_v58 = vpack.c.bf16 %v6618_v17, %v6616_v51  ;;  %v6632_v41 = vand.u32 4294901760, %v6631_v61  ;;  %v6638_v26 = vand.u32 4294901760, %v6637_v29  ;;  %v6642_v7 = vand.u32 4294901760, %v6641_v20  ;;  %v6658_v57 = vld [vmem:[#allocation50_spill] sm:$0xff]  ;;  %v6660_v33 = vld [vmem:[#allocation53_spill] sm:$0xff]  ;;  %v6663_v2 = vld [vmem:[#allocation59_spill] sm:$0xff] }
 0x1ab   :  { %3490 = vmatpush1.bf16.msra.mxu0 %v3489_v45  ;;  %v3121_v55 = vpack.c.bf16 %v6622_v35, %v6620_v36  ;;  %v6625_v45 = vld [vmem:[#allocation196_spill] sm:$0xff]  ;;  %v6662_v38 = vld [vmem:[#allocation62_spill] sm:$0xff]  ;;  %v6667_v44 = vld [vmem:[#allocation71_spill] sm:$0xff] }
 0x1ac   :  { %3492 = vmatprep.subr.bf16.mxu0 %v3491_v37  ;;  %v6626_v12 = vand.u32 4294901760, %v6625_v45  ;;  %v6628_v37 = vand.u32 4294901760, %v6627_v59  ;;  %v6664_v31 = vld [vmem:[#allocation66_spill] sm:$0xff]  ;;  %v6665_v30 = vld [vmem:[#allocation68_spill] sm:$0xff]  ;;  %v6675_v17 = vld [vmem:[#allocation95_spill] sm:$0xff] }
 0x1ad   :  { %3110 = vmatpush1.bf16.msra.mxu1 %v3109_v25  ;;  %v6668_v32 = vld [vmem:[#allocation78_spill] sm:$0xff]  ;;  %v6669_v15 = vld [vmem:[#allocation80_spill] sm:$0xff]  ;;  %v6679_v3 = vld [vmem:[#allocation107_spill] sm:$0xff] }
 0x1ae   :  { %3112 = vmatprep.subr.bf16.mxu1 %v3111_v23  ;;  %v3123_v24 = vpack.c.bf16 %v6626_v12, %v6624_v13  ;;  %v3505_v25 = vpack.c.bf16 %v6630_v63, %v6628_v37  ;;  %v6634_v23 = vand.u32 4294901760, %v6633_v43  ;;  %v6670_v0 = vld [vmem:[#allocation86_spill] sm:$0xff]  ;;  %v6673_v51 = vld [vmem:[#allocation92_spill] sm:$0xff]  ;;  %v6683_v13 = vld [vmem:[#allocation119_spill] sm:$0xff] }
 0x1af   :  { %3494 = vmatpush1.bf16.msra.mxu0 %v3493_v50  ;;  %v6636_v50 = vand.u32 4294901760, %v6635_v52  ;;  %v6672_v48 = vld [vmem:[#allocation90_spill] sm:$0xff]  ;;  %v6677_v5 = vld [vmem:[#allocation104_spill] sm:$0xff]  ;;  %v6687_v59 = vld [vmem:[#allocation131_spill] sm:$0xff] }
 0x1b0   :  { %3496 = vmatprep.subr.bf16.mxu0 %v3495_v47  ;;  %v3507_v10 = vpack.c.bf16 %v6634_v23, %v6632_v41  ;;  %v6639_v47 = vld [vmem:[#allocation205_spill] sm:$0xff]  ;;  %v6674_v18 = vld [vmem:[#allocation98_spill] sm:$0xff]  ;;  %v6685_v12 = vld [vmem:[#allocation128_spill] sm:$0xff] }
 0x1b1   :  { %3114 = vmatpush1.bf16.msra.mxu1 %v3113_v6  ;;  %v3125_v16 = vpack.c.bf16 %v6638_v26, %v6636_v50  ;;  %v6640_v62 = vand.u32 4294901760, %v6639_v47  ;;  %v6678_v36 = vld [vmem:[#allocation110_spill] sm:$0xff]  ;;  %v6689_v4 = vld [vmem:[#allocation140_spill] sm:$0xff]  ;;  %v6695_v23 = vld [vmem:[#allocation155_spill] sm:$0xff] }
 0x1b2   :  { %3116 = vmatprep.subr.bf16.mxu1 %v3115_v28  ;;  %v6646_v28 = vld [vmem:[#allocation20_spill] sm:$0xff]  ;;  %v6680_v35 = vld [vmem:[#allocation114_spill] sm:$0xff]  ;;  %v6699_v29 = vld [vmem:[#allocation167_spill] sm:$0xff] }
 0x1b3   :  { %3498 = vmatpush1.bf16.msra.mxu0 %v3497_v54  ;;  %v3509_v6 = vpack.c.bf16 %v6642_v7, %v6640_v62  ;;  %v6651_v54 = vld [vmem:[#allocation208_spill] sm:$0xff]  ;;  %v6682_v19 = vld [vmem:[#allocation122_spill] sm:$0xff]  ;;  %v6703_v62 = vld [vmem:[#allocation179_spill] sm:$0xff] }
 0x1b4   :  { %3500 = vmatprep.subr.bf16.mxu0 %v3499_v11  ;;  %v6656_v11 = vld [vmem:[#allocation41_spill] sm:$0xff]  ;;  %v6684_v45 = vld [vmem:[#allocation126_spill] sm:$0xff]  ;;  %v6693_v41 = vld [vmem:[#allocation152_spill] sm:$0xff] }
 0x1b5   :  { %3118 = vmatpush1.bf16.msra.mxu1 %v3117_v21  ;;  %v6661_v21 = vld [vmem:[#allocation57_spill] sm:$0xff]  ;;  %v6688_v37 = vld [vmem:[#allocation138_spill] sm:$0xff]  ;;  %v6697_v52 = vld [vmem:[#allocation164_spill] sm:$0xff] }
 0x1b6   :  { %3120 = vmatprep.subr.bf16.mxu1 %v3119_v8  ;;  %v6666_v8 = vld [vmem:[#allocation74_spill] sm:$0xff]  ;;  %v6705_v7 = vld [vmem:[#allocation188_spill] sm:$0xff] }
 0x1b7   :  { %3502 = vmatpush1.bf16.msra.mxu0 %v3501_v56  ;;  %v6671_v56 = vld [vmem:[#allocation83_spill] sm:$0xff]  ;;  %v6690_v63 = vld [vmem:[#allocation146_spill] sm:$0xff] }
 0x1b8   :  { %3504 = vmatprep.subr.bf16.mxu0 %v3503_v58  ;;  %v6676_v58 = vld [vmem:[#allocation102_spill] sm:$0xff] }
 0x1b9   :  { %3122 = vmatpush1.bf16.msra.mxu1 %v3121_v55  ;;  %v6681_v55 = vld [vmem:[#allocation116_spill] sm:$0xff]  ;;  %v6692_v61 = vld [vmem:[#allocation150_spill] sm:$0xff] }
 0x1ba   :  { %3124 = vmatprep.subr.bf16.mxu1 %v3123_v24  ;;  %v6686_v24 = vld [vmem:[#allocation134_spill] sm:$0xff] }
 0x1bb   :  { %3506 = vmatpush1.bf16.msra.mxu0 %v3505_v25  ;;  %v6691_v25 = vld [vmem:[#allocation143_spill] sm:$0xff]  ;;  %v6694_v43 = vld [vmem:[#allocation158_spill] sm:$0xff] }
 0x1bc   :  { %3508 = vmatprep.subr.bf16.mxu0 %v3507_v10  ;;  %v6696_v10 = vld [vmem:[#allocation162_spill] sm:$0xff] }
 0x1bd   :  { %3126 = vmatpush1.bf16.msra.mxu1 %v3125_v16  ;;  %v6698_v50 = vld [vmem:[#allocation170_spill] sm:$0xff]  ;;  %v6701_v16 = vld [vmem:[#allocation176_spill] sm:$0xff] }
 0x1be   :  { %3128 = vmatprep.subr.bf16.mxu1 %v6643_v1  ;;  %v6700_v26 = vld [vmem:[#allocation174_spill] sm:$0xff]  ;;  %v6707_v1 = vld [vmem:[#allocation191_spill] sm:$0xff] }
 0x1bf   :  { %3510 = vmatpush1.bf16.msra.mxu0 %v3509_v6  ;;  %v6702_v47 = vld [vmem:[#allocation182_spill] sm:$0xff] }
 0x1c0   :  { %3512 = vmatprep.subr.bf16.mxu0 %v6644_v60  ;;  %1329 = vmatmul.mubr.f32.vlgmr.msra.gmra.mrb[0].mxu1 %v6645_v42  ;;  %v6704_v20 = vld [vmem:[#allocation186_spill] sm:$0xff]  ;;  %v6708_v60 = vld [vmem:[#allocation199_spill] sm:$0xff] }
 0x1c1   :  { %3130 = vmatpush1.bf16.msra.mxu1 %v6646_v28  ;;  %1464 = vmatprep.mubr.f32.mxu1 %v6647_v39  ;;  %v6706_v6 = vld [vmem:[#allocation194_spill] sm:$0xff]  ;;  %v6709_v28 = vld [vmem:[#allocation201_spill] sm:$0xff]  ;;  %v6710_v39 = vld [vmem:[#allocation204_spill] sm:$0xff] }
 0x1c2   :  { %2613 = vmatmul.mubr.f32.vlgmr.msra.gmra.mrb[0].mxu0 %v6648_v40  ;;  %3132 = vmatprep.subr.bf16.mxu1 %v6649_v53  ;;  %v178_v53 = vlaneseq }
 0x1c3   :  { %3514 = vmatpush1.bf16.msra.mxu0 %v6650_v27  ;;  %2748 = vmatprep.mubr.f32.mxu0 %v6651_v54 }
 0x1c4   :  { %3516 = vmatprep.subr.bf16.mxu0 %v6652_v22  ;;  %v179_v27 = vshrl.u32 %v178_v53, 7  ;;  %v176_v22 = vld [vmem:[%s5424_s2] sm:$0x3]  ;;  %s3713_s2 = smov [#allocation7]  }
 0x1c5   :  { %3134 = vmatpush1.bf16.msra.mxu1 %v6653_v34  ;;  %s2783_s15 = sshll.u32 %s3713_s2, 4  ;;  %s2784_s15 = int_to_ptr.vmem [resolvable:$true] %s2783_s15 }
 0x1c6   :  { %3136 = vmatprep.subr.bf16.mxu1 %v6654_v46  ;;  %v180_v54 = vsub.s32 0, %v179_v27  ;;  %v184_v34 = vsub.s32 1, %v179_v27  ;;  %s3657_s18 = scalar_lea.vmem %s2784_s15, 128  ;;  %p3662_p3 = scmp.lt.s32.totalorder %s2784_s15, %s2784_s15 }
 0x1c7   :  { %3518 = vmatpush1.bf16.msra.mxu0 %v6655_v49  ;;  %p3658_p2 = scmp.ne.s32.totalorder %s2784_s15, %s3657_s18  ;;  %p3663_p4 = scmp.lt.s32.totalorder %s3657_s18, %s3657_s18 }
 0x1c8   :  { %3520 = vmatprep.subr.bf16.mxu0 %v6656_v11  ;;  %v181_v46 = vrot.slane %v176_v22, %v180_v54  ;;  %v185_v49 = vrot.slane %v176_v22, %v184_v34 }
 0x1c9   :  { %3138 = vmatpush1.bf16.msra.mxu1 %v6657_v14  ;;  %p3664_p5 = por %p3663_p4, %p3662_p3 }
 0x1ca   :  { %3140 = vmatprep.subr.bf16.mxu1 %v6658_v57 }
 0x1cb   :  { %3522 = vmatpush1.bf16.msra.mxu0 %v6659_v9  ;;  %p3665_p6 = pnand %p3664_p5, %p3658_p2 }
 0x1cc   :  { %3524 = vmatprep.subr.bf16.mxu0 %v6660_v33 }
 0x1cd   :  { %3142 = vmatpush1.bf16.msra.mxu1 %v6661_v21 }
 0x1ce   :  { %3144 = vmatprep.subr.bf16.mxu1 %v6662_v38 }
 0x1cf   :  { %3526 = vmatpush1.bf16.msra.mxu0 %v6663_v2 }
 0x1d0   :  { %3528 = vmatprep.subr.bf16.mxu0 %v6664_v31 }
 0x1d1   :  { %3146 = vmatpush1.bf16.msra.mxu1 %v6665_v30 }
 0x1d2   :  { %3148 = vmatprep.subr.bf16.mxu1 %v6666_v8 }
 0x1d3   :  { %3530 = vmatpush1.bf16.msra.mxu0 %v6667_v44 }
 0x1d4   :  { %3532 = vmatprep.subr.bf16.mxu0 %v6668_v32 }
 0x1d5   :  { %3150 = vmatpush1.bf16.msra.mxu1 %v6669_v15 }
 0x1d6   :  { %3152 = vmatprep.subr.bf16.mxu1 %v6670_v0 }
 0x1d7   :  { %3534 = vmatpush1.bf16.msra.mxu0 %v6671_v56 }
 0x1d8   :  { %3536 = vmatprep.subr.bf16.mxu0 %v6672_v48 }
 0x1d9   :  { %3154 = vmatpush1.bf16.msra.mxu1 %v6673_v51 }
 0x1da   :  { %3156 = vmatprep.subr.bf16.mxu1 %v6674_v18 }
 0x1db   :  { %3538 = vmatpush1.bf16.msra.mxu0 %v6675_v17 }
 0x1dc   :  { %3540 = vmatprep.subr.bf16.mxu0 %v6676_v58 }
 0x1dd   :  { %3158 = vmatpush1.bf16.msra.mxu1 %v6677_v5 }
 0x1de   :  { %3160 = vmatprep.subr.bf16.mxu1 %v6678_v36 }
 0x1df   :  { %3542 = vmatpush1.bf16.msra.mxu0 %v6679_v3 }
 0x1e0   :  { %3544 = vmatprep.subr.bf16.mxu0 %v6680_v35 }
 0x1e1   :  { %3162 = vmatpush1.bf16.msra.mxu1 %v6681_v55 }
 0x1e2   :  { %3164 = vmatprep.subr.bf16.mxu1 %v6682_v19 }
 0x1e3   :  { %3546 = vmatpush1.bf16.msra.mxu0 %v6683_v13 }
 0x1e4   :  { %3548 = vmatprep.subr.bf16.mxu0 %v6684_v45 }
 0x1e5   :  { %3166 = vmatpush1.bf16.msra.mxu1 %v6685_v12 }
 0x1e6   :  { %3168 = vmatprep.subr.bf16.mxu1 %v6686_v24 }
 0x1e7   :  { %3550 = vmatpush1.bf16.msra.mxu0 %v6687_v59 }
 0x1e8   :  { %3552 = vmatprep.subr.bf16.mxu0 %v6688_v37 }
 0x1e9   :  { %3170 = vmatpush1.bf16.msra.mxu1 %v6689_v4 }
 0x1ea   :  { %3172 = vmatprep.subr.bf16.mxu1 %v6690_v63 }
 0x1eb   :  { %3554 = vmatpush1.bf16.msra.mxu0 %v6691_v25 }
 0x1ec   :  { %3556 = vmatprep.subr.bf16.mxu0 %v6692_v61 }
 0x1ed   :  { %3174 = vmatpush1.bf16.msra.mxu1 %v6693_v41 }
 0x1ee   :  { %3176 = vmatprep.subr.bf16.mxu1 %v6694_v43 }
 0x1ef   :  { %3558 = vmatpush1.bf16.msra.mxu0 %v6695_v23 }
 0x1f0   :  { %3560 = vmatprep.subr.bf16.mxu0 %v6696_v10 }
 0x1f1   :  { %3178 = vmatpush1.bf16.msra.mxu1 %v6697_v52 }
 0x1f2   :  { %3180 = vmatprep.subr.bf16.mxu1 %v6698_v50 }
 0x1f3   :  { %3562 = vmatpush1.bf16.msra.mxu0 %v6699_v29 }
 0x1f4   :  { %3564 = vmatprep.subr.bf16.mxu0 %v6700_v26 }
 0x1f5   :  { %3182 = vmatpush1.bf16.msra.mxu1 %v6701_v16 }
 0x1f6   :  { %3184 = vmatprep.subr.bf16.mxu1 %v6702_v47 }
 0x1f7   :  { %3566 = vmatpush1.bf16.msra.mxu0 %v6703_v62 }
 0x1f8   :  { %3568 = vmatprep.subr.bf16.mxu0 %v6704_v20 }
 0x1f9   :  { %3186 = vmatpush1.bf16.msra.mxu1 %v6705_v7 }
 0x1fa   :  { %3188 = vmatprep.subr.bf16.mxu1 %v6706_v6 }
 0x1fb   :  { %3570 = vmatpush1.bf16.msra.mxu0 %v6707_v1 }
 0x1fc   :  { %3572 = vmatprep.subr.bf16.mxu0 %v6708_v60 }
 0x1fd   :  { %3190 = vmatpush1.bf16.msra.mxu1 %v6709_v28 }
 0x1ff   :  { %3574 = vmatpush1.bf16.msra.mxu0 %v6710_v39 }
 0x200   :  { %1466 = vmatmul.mubr.f32.vlgmr.msra.gmra.mrb[0].mxu1 %v6645_v42 }
 0x202   :  { %2750 = vmatmul.mubr.f32.vlgmr.msra.gmra.mrb[0].mxu0 %v6648_v40 }
 0x2d3   :  { %v1467_v11 = vpop.f32.mrb[0].mxu1 }
 0x2d4   :  { %v3575_v14 = vadd.f32 %v1467_v11, %v181_v46  ;;  %v1469_v57 = vpop.f32.mrb[1].mxu1 }
 0x2d5   :  { %v2751_v9 = vpop.f32.mrb[0].mxu0  ;;  %v3577_v33 = vadd.f32 %v1469_v57, %v185_v49 }
 0x2d6   :  { %v3576_v21 = vadd.f32 %v3575_v14, %v2751_v9  ;;  %v2753_v38 = vpop.f32.mrb[1].mxu0 }
 0x2d7   :  { %v3578_v42 = vadd.f32 %v3577_v33, %v2753_v38 }
 0x2d8   :  { %2756 = vmax.xlane.f32.xlu0 %v3576_v21 }
 0x2dc   :  { %2767 = vmax.xlane.f32.xlu0 %v3578_v42 }
 0x365   :  { %v2757_v40 = vpop.xlane.xlu0 %2756 }
 0x366   :  { %v2758_v2 = vsub.f32 %v3576_v21, %v2757_v40 }
 0x368   :  { %v2759_v31 = vmul.f32 1.442695, %v2758_v2 }
 0x369   :  { %v2768_v30 = vpop.xlane.xlu0 %2767 }
 0x36a   :  { %3605 = vpow2.f32 %v2759_v31  ;;  %v2769_v8 = vsub.f32 %v3578_v42, %v2768_v30 }
 0x36c   :  { %v2770_v44 = vmul.f32 1.442695, %v2769_v8 }
 0x36e   :  { %3607 = vpow2.f32 %v2770_v44 }
 0x374   :  { %v3606_v32 = vpop.eup %3605 }
 0x375   :  { %2761 = vadd.xlane.f32.xlu1 %v3606_v32 }
 0x378   :  { %v3608_v15 = vpop.eup %3607 }
 0x379   :  { %2772 = vadd.xlane.f32.xlu1 %v3608_v15 }
 0x402   :  { %v2762_v0 = vpop.xlane.xlu1 %2761 }
 0x403   :  { %3609 = vrcp.f32 %v2762_v0 }
 0x406   :  { %v2773_v56 = vpop.xlane.xlu1 %2772 }
 0x407   :  { %3611 = vrcp.f32 %v2773_v56 }
 0x40d   :  { %v3610_v48 = vpop.eup %3609 }
 0x40e   :  { %v2764_v51 = vmul.f32 %v3610_v48, %v3606_v32 }
 0x410   :  { %2766 = vst.msk [vmem:[#allocation7] sm:$0xff] %vm2765_vm0, %v2764_v51 }
 0x411   :  { %v3612_v18 = vpop.eup %3611 }
 0x412   :  { %3668 = shalt.err (!%p3665_p6)
}
 0x413   :  { %s3669_s21 = scalar_lea.hbm %s5425_s3, 128 }
 0x414   :  { %p3670_p7 = scmp.ne.s32.totalorder %s5425_s3, %s3669_s21  ;;  %p3673_p8 = scmp.lt.u32.totalorder %s3669_s21, %s5425_s3 }
 0x416   :  { %p3675_p9 = pnand %p3673_p8, %p3670_p7 }
 0x418   :  { %3678 = shalt.err (!%p3675_p9)
}
 0x419   :  { %2786 = dma.vmem_to_hbm [thread:$0]  %s2784_s15, 128, %s5425_s3, [#allocation4]   ;;  %v2775_v17 = vmul.f32 %v3612_v18, %v3608_v15 }
 0x41a   :  { %s3679_s28 = scalar_lea.vmem %s2794_s17, 128  ;;  %p3684_p11 = scmp.lt.s32.totalorder %s2794_s17, %s2794_s17 }
 0x41b   :  { %2776 = vst.msk [vmem:[#allocation8] sm:$0xff] %vm2765_vm0, %v2775_v17  ;;  %p3680_p10 = scmp.ne.s32.totalorder %s2794_s17, %s3679_s28  ;;  %p3685_p12 = scmp.lt.s32.totalorder %s3679_s28, %s3679_s28 }
 0x41d   :  { %p3686_p13 = por %p3685_p12, %p3684_p11 }
 0x41f   :  { %p3687_p0 = pnand %p3686_p13, %p3680_p10 }
 0x421   :  { %3690 = shalt.err (!%p3687_p0)
}
 0x422   :  { %s3691_s5 = scalar_lea.hbm %s5426_s4, 128 }
 0x423   :  { %p3692_p1 = scmp.ne.s32.totalorder %s5426_s4, %s3691_s5  ;;  %p3695_p2 = scmp.lt.u32.totalorder %s3691_s5, %s5426_s4 }
 0x425   :  { %p3697_p3 = pnand %p3695_p2, %p3692_p1 }
 0x427   :  { %3700 = shalt.err (!%p3697_p3)
}
 0x428   :  { %2796 = dma.vmem_to_hbm [thread:$0]  %s2794_s17, 128, %s5426_s4, [#allocation9]  }
 0x429   :  { %3705 = dma.done.wait [#allocation4], 128  }
 0x42a   :  { %3706 = vsyncadd [#allocation4], 4294967168 }
 0x42b   :  { %3707 = dma.done.wait [#allocation9], 128  }
 0x42c   :  { %3708 = vsyncadd [#allocation9], 4294967168 }
 0x42d   :  { %2803 = vsyncpa [#allocation3], 1 }
 0x42e   :  { %2804 = vsyncpa [#allocation6], 1 }
 0x42f   :  { %2805 = vsyncpa [#allocation4], 1 }
 0x430   :  { %2806 = vsyncpa [#allocation9], 1 }

</bundles_post_ra>
